<compile_context>
chip_gen: v5e
topology: v5e:2x2
jax: 0.10.0
libtpu: 0.0.40
codegen_flags: <defaults>
</compile_context>

<pallas_src>
import math
from functools import partial

import jax
import jax.numpy as jnp
from jax import lax
from jax.experimental import pallas as pl
from jax.experimental.pallas import tpu as pltpu


# ----------------------------------------------------------------------------
# Fused ADMM kernel: one (batch, head) slice per grid step.
# State layout inside the kernel: (C, T*N)  -- channels on sublanes, time*nodes
# on the lane axis.  All graph/time operators are single right-multiplies.
# ----------------------------------------------------------------------------
def _admm_kernel(scal_ref, coef_ref, cw_ref, y_ref,
                 mlu_ref, mldr_ref, mldrt_ref, mcldr_ref,
                 o_ref, *, N, C, TN, H, A, G, mask):
    h = pl.program_id(1)
    f32 = jnp.float32

    # one MXU push per operator application; operands read from VMEM at use
    def apply_Lu(v):
        return jnp.dot(v, mlu_ref[...], preferred_element_type=f32)

    def apply_Ldr(v):
        return jnp.dot(v, mldr_ref[...], preferred_element_type=f32)

    def apply_LdrT(v):
        return jnp.dot(v, mldrt_ref[...], preferred_element_type=f32)

    def apply_cLdr(v):                       # Ldr^T (Ldr (.)), pre-fused operator
        return jnp.dot(v, mcldr_ref[...], preferred_element_type=f32)

    x0 = y_ref[...]                                           # (C, TN)

    # observation mask: column j = t*N + n is observed iff t < mask  <=>  j < mask*N
    col = lax.broadcasted_iota(jnp.int32, (1, TN), 1)
    obs = (col < mask * N).astype(f32)                        # (1, TN) row broadcast
    Hty = obs * x0

    # ---- state init (values; no scratch) ----
    x, zu, zd = x0, x0, x0
    gu = jnp.full((C, TN), 0.05, f32)
    gd = jnp.full((C, TN), 0.10, f32)
    g = jnp.full((C, TN), 0.10, f32)
    phi = apply_Ldr(x0)

    AGH, GH = A * G * H, G * H

    def coef(k, i, j):                        # per-(array k, ADMM i, CG j, head h)
        return coef_ref[k * AGH + i * GH + j * H + h]

    def cg(LHS, RHS, xs, i, ka, kb):
        r = RHS - LHS(xs)
        p = r
        for j in range(G):                    # CG_iters small -> static unroll
            a = coef(ka, i, j)
            b = coef(kb, i, j)
            Ap = LHS(p)
            xs = xs + a * p
            r = r - a * Ap
            p = r + b * p
        return xs

    for i in range(A):                        # ADMM loop fully unrolled (A static)
        mu_u = scal_ref[i]
        mu_d1 = scal_ref[A + i]
        mu_d2 = scal_ref[2 * A + i]
        rho = scal_ref[3 * A + i]
        rho_u = scal_ref[4 * A + i]
        rho_d = scal_ref[5 * A + i]
        inv_rho = 1.0 / rho                   # hoisted scalar; no vector divides below

        def LHS_x(v):
            return obs * v + (rho_u + rho_d) * 0.5 * v + rho * 0.5 * apply_cLdr(v)

        def LHS_zu(v):
            return mu_u * apply_Lu(v) + rho_u * 0.5 * v

        def LHS_zd(v):
            return mu_d2 * apply_cLdr(v) + rho_d * 0.5 * v

        RHS_x = (apply_LdrT(g + rho * phi) * 0.5
                 + (rho_u * zu + rho_d * zd) * 0.5
                 - (gu + gd) * 0.5 + Hty)
        x = cg(LHS_x, RHS_x, x, i, 0, 1)

        RHS_zu = gu * 0.5 + rho_u * 0.5 * x
        zu = cg(LHS_zu, RHS_zu, zu, i, 2, 3)

        RHS_zd = gd * 0.5 + rho_d * 0.5 * x
        zd = cg(LHS_zd, RHS_zd, zd, i, 4, 5)

        gu = gu + rho_u * (x - zu)
        gd = gd + rho_d * (x - zd)

        # soft-threshold phi update; reuse s = Ldr(x) - g/rho so that the gamma
        # update  g + rho*(phi - Ldr(x))  ==  rho*(phi - s)  (no extra Ldr pass).
        s = apply_Ldr(x) - g * inv_rho
        thr = mu_d1 * inv_rho
        phi = s - jnp.clip(s, -thr, thr)      # == sign(s)*max(|s|-thr, 0)
        g = rho * (phi - s)

    # ---- fused head combination: out[b] = sum_h comb_weights[h] * x[b, h] ----
    contrib = cw_ref[h] * x

    @pl.when(h == 0)
    def _():
        o_ref[...] = contrib

    @pl.when(h != 0)
    def _():
        o_ref[...] = o_ref[...] + contrib


# ----------------------------------------------------------------------------
# Wrapper glue: build (T*N, T*N) block operators for the (C, T*N) layout
# ----------------------------------------------------------------------------
def build_block_operators(W_u, W_d):
    """
    W_u : (B, T,   H, N, N)  with W[n, m] = weight of node m towards node n
    W_d : (B, T-1, H, N, N)
    Returns right-multiply block operators (B, H, T*N, T*N) such that, for the
    layout v[c, t*N+n] = x[t, n, c]:
        Lu(x)   -> v @ M_Lu      (block-diag  : I - W_u[t]^T)
        Ldr(x)  -> v @ M_Ldr     (block upper-bidiagonal in time)
        Ldr^T(x)-> v @ M_LdrT    (= M_Ldr^T)
        cLdr(x) -> v @ M_cLdr    (= M_Ldr @ M_LdrT, pre-fused)
    """
    B, T, H, N, _ = W_u.shape
    TN = T * N
    eyeN = jnp.eye(N, dtype=jnp.float32)
    eyeT = jnp.eye(T, dtype=jnp.float32)

    # block-diagonal: block t = I - W_u[t]^T
    D_u = eyeN - jnp.swapaxes(W_u, -1, -2)                       # (B, T, H, N, N)
    M_Lu = jnp.einsum('ts,bthnm->bhtnsm', eyeT, D_u).reshape(B, H, TN, TN)

    # Ldr: out[0] = 0 ; out[t] = x[t] - W_d[t-1] x[t-1]   (t >= 1)
    M = jnp.zeros((B, H, T, N, T, N), jnp.float32)
    WdT = jnp.swapaxes(W_d, -1, -2)                              # (B, T-1, H, N, N)
    for t in range(1, T):
        M = M.at[:, :, t, :, t, :].set(jnp.broadcast_to(eyeN, (B, H, N, N)))
        M = M.at[:, :, t - 1, :, t, :].set(-jnp.transpose(WdT[:, t - 1], (0, 1, 2, 3)))
    M_Ldr = M.reshape(B, H, TN, TN)
    M_LdrT = jnp.swapaxes(M_Ldr, -1, -2)
    M_cLdr = jnp.einsum('bhij,bhjk->bhik', M_Ldr, M_LdrT,
                        precision=jax.lax.Precision.HIGHEST)
    return M_Lu, M_Ldr, M_LdrT, M_cLdr


# ----------------------------------------------------------------------------
# Forward wrapper (layout glue + single pallas_call)
# ----------------------------------------------------------------------------
def admm_block_forward(y_in, params, W_u, W_d, *, mask, T, n_heads):
    # y_in: (B, T_in, N, C) with T_in >= T ; mask: static int (observed steps <= T)
    B, T_in, N, C = y_in.shape
    H = n_heads
    A = params['mu_u'].shape[0]
    G = params['alpha_x'].shape[1]
    TN = T * N
    assert T_in >= T and mask <= T

    # lane-dense state layout: (B, C, T*N)
    y = jnp.transpose(y_in[:, :T].astype(jnp.float32), (0, 3, 1, 2)).reshape(B, C, TN)

    M_Lu, M_Ldr, M_LdrT, M_cLdr = build_block_operators(
        W_u.astype(jnp.float32), W_d.astype(jnp.float32))
    # NOTE: for v6e/v7x at larger N these operators can be stored in bf16
    # (state math stays f32) to halve DMA/VMEM; kept f32 here for numerics.

    # scalar parameters -> flat SMEM vectors
    scal = jnp.concatenate([params['mu_u'], params['mu_d1'], params['mu_d2'],
                            params['rho'], params['rho_u'], params['rho_d']],
                           axis=0).astype(jnp.float32)                     # (6*A,)
    coef = jnp.stack([params['alpha_x'], params['beta_x'],
                      params['alpha_zu'], params['beta_zu'],
                      params['alpha_zd'], params['beta_zd']],
                     axis=0).astype(jnp.float32).reshape(-1)               # (6*A*G*H,)
    cw = params['comb_weights'].astype(jnp.float32)                        # (H,)

    kernel = partial(_admm_kernel, N=N, C=C, TN=TN, H=H, A=A, G=G, mask=mask)

    op_spec = pl.BlockSpec((None, None, TN, TN), lambda b, h: (b, h, 0, 0))
    out_cn = pl.pallas_call(
        kernel,
        out_shape=jax.ShapeDtypeStruct((B, C, TN), jnp.float32),
        grid=(B, H),
        in_specs=[
            pl.BlockSpec(memory_space=pltpu.MemorySpace.SMEM),             # scal
            pl.BlockSpec(memory_space=pltpu.MemorySpace.SMEM),             # coef
            pl.BlockSpec(memory_space=pltpu.MemorySpace.SMEM),             # comb weights
            pl.BlockSpec((None, C, TN), lambda b, h: (b, 0, 0)),           # y
            op_spec,                                                       # M_Lu
            op_spec,                                                       # M_Ldr
            op_spec,                                                       # M_LdrT
            op_spec,                                                       # M_cLdr
        ],
        out_specs=pl.BlockSpec((None, C, TN), lambda b, h: (b, 0, 0)),
        compiler_params=pltpu.CompilerParams(
            # batch axis is truly parallel (v7x dual-TC); the head axis accumulates
            # into the output block so it must stay "arbitrary".
            dimension_semantics=("parallel", "arbitrary")),
    )(scal, coef, cw, y, M_Lu, M_Ldr, M_LdrT, M_cLdr)

    # tiny one-time relayout back to the module's (B, T, N, C)
    return jnp.transpose(out_cn.reshape(B, C, T, N), (0, 2, 3, 1))


# ----------------------------------------------------------------------------
# Glue: densify the sparse nearest-neighbour operators (pure JAX, one-time)
# ----------------------------------------------------------------------------
def build_dense_operators(nearest_nodes, u_ew, d_ew, n_nodes):
    """
    nearest_nodes : (N, k) int32, col 0 = self, -1 = padded neighbour (contributes 0)
    u_ew          : (B, T,   N, k-1, H)  weights for nearest_nodes[:, 1:]
    d_ew          : (B, T-1, N, k,   H)  weights for nearest_nodes[:, :]
    Returns W_u:(B,T,H,N,N), W_d:(B,T-1,H,N,N)  with W[n, m] = sum_j ew[n,j]*[nn[n,j]==m].
    """
    cols = jnp.arange(n_nodes)

    def one_hot(idx):                                 # (N, J) -> (N, J, N)
        oh = (idx[..., None] == cols[None, None, :]) & (idx[..., None] >= 0)
        return oh.astype(jnp.float32)

    oh_u = one_hot(nearest_nodes[:, 1:])
    oh_d = one_hot(nearest_nodes)
    W_u = jnp.einsum('btnjh,njm->bthnm', u_ew, oh_u)
    W_d = jnp.einsum('btnjh,njm->bthnm', d_ew, oh_d)
    return W_u, W_d


# ----------------------------------------------------------------------------
# Parameters (deterministic init, mirrors ADMMBlock.__init__)
# ----------------------------------------------------------------------------
def init_params(n_heads, n_nodes, T, ADMM_info):
    A, G = ADMM_info['ADMM_iters'], ADMM_info['CG_iters']
    rho_init = math.sqrt(n_nodes / T)
    ones_a = jnp.ones((A,), jnp.float32)
    cg = jnp.ones((A, G, n_heads, 1), jnp.float32) * 0.08
    return dict(
        mu_u=ones_a * ADMM_info['mu_u_init'],
        mu_d1=ones_a * ADMM_info['mu_d1_init'],
        mu_d2=ones_a * ADMM_info['mu_d2_init'],
        rho=ones_a * rho_init,
        rho_u=ones_a * rho_init,
        rho_d=ones_a * rho_init,
        alpha_x=cg, beta_x=cg,
        alpha_zu=cg, beta_zu=cg,
        alpha_zd=cg, beta_zd=cg,
        comb_weights=jnp.ones((n_heads,), jnp.float32) / n_heads,
    )


# ----------------------------------------------------------------------------
# Pure-JAX reference (direct transcription of the PyTorch module) for validation
# ----------------------------------------------------------------------------
def _ref_forward(y_in, params, W_u, W_d, *, mask, T, n_heads):
    B, _, N, C = y_in.shape
    H = n_heads
    W_dT = jnp.swapaxes(W_d, -1, -2)
    hp = jax.lax.Precision.HIGHEST

    x0 = jnp.broadcast_to(y_in[:, :T, None].astype(jnp.float32), (B, T, H, N, C))

    def mm(w, v):
        return jnp.einsum('bthnm,bthmc->bthnc', w, v, precision=hp)

    def Lu(v):
        return v - mm(W_u, v)

    def Ldr(v):
        inner = v[:, 1:] - mm(W_d, v[:, :-1])
        return jnp.concatenate([jnp.zeros_like(v[:, :1]), inner], axis=1)

    def LdrT(v):
        head = v[:, :-1].at[:, 0].set(0.0)
        inner = head - mm(W_dT, v[:, 1:])
        return jnp.concatenate([inner, v[:, -1:]], axis=1)

    def cLdr(v):
        return LdrT(Ldr(v))

    tmask = (jnp.arange(T) < mask).astype(jnp.float32)[None, :, None, None, None]
    Hty = tmask * x0

    A = params['mu_u'].shape[0]
    G = params['alpha_x'].shape[1]

    def cg(LHS, RHS, xs, i, alpha, beta):
        r = RHS - LHS(xs)
        p = r
        for j in range(G):
            a = alpha[i, j].reshape(1, 1, H, 1, 1)
            b = beta[i, j].reshape(1, 1, H, 1, 1)
            Ap = LHS(p)
            xs = xs + a * p
            r = r - a * Ap
            p = r + b * p
        return xs

    x, zu, zd = x0, x0, x0
    gu = jnp.full_like(x0, 0.05)
    gd = jnp.full_like(x0, 0.1)
    g = jnp.full_like(x0, 0.1)
    phi = Ldr(x0)
    for i in range(A):
        mu_u, mu_d1, mu_d2 = params['mu_u'][i], params['mu_d1'][i], params['mu_d2'][i]
        rho, rho_u, rho_d = params['rho'][i], params['rho_u'][i], params['rho_d'][i]

        LHS_x = lambda v: tmask * v + (rho_u + rho_d) / 2 * v + rho / 2 * cLdr(v)
        LHS_zu = lambda v: mu_u * Lu(v) + rho_u / 2 * v
        LHS_zd = lambda v: mu_d2 * cLdr(v) + rho_d / 2 * v

        RHS_x = LdrT(g + rho * phi) / 2 + (rho_u * zu + rho_d * zd) / 2 - (gu + gd) / 2 + Hty
        x = cg(LHS_x, RHS_x, x, i, params['alpha_x'], params['beta_x'])
        RHS_zu = gu / 2 + rho_u / 2 * x
        zu = cg(LHS_zu, RHS_zu, zu, i, params['alpha_zu'], params['beta_zu'])
        RHS_zd = gd / 2 + rho_d / 2 * x
        zd = cg(LHS_zd, RHS_zd, zd, i, params['alpha_zd'], params['beta_zd'])
        gu = gu + rho_u * (x - zu)
        gd = gd + rho_d * (x - zd)
        s = Ldr(x) - g / rho
        u = jnp.abs(s) - mu_d1 / rho
        phi = jnp.sign(s) * jnp.maximum(u, 0.0)
        g = g + rho * (phi - Ldr(x))
    return jnp.einsum('bthnc,h->btnc', x, params['comb_weights'])


# ----------------------------------------------------------------------------
if __name__ == "__main__":
    B, T, N, H, C, K = 2, 8, 8, 2, 4, 4
    mask = 6
    ADMM_info = {'ADMM_iters': 6, 'CG_iters': 3, 'PGD_iters': 3,
                 'mu_u_init': 1.0, 'mu_d1_init': 1.0, 'mu_d2_init': 1.0}

    key = jax.random.PRNGKey(0)
    k1, k2, k3 = jax.random.split(key, 3)

    y_in = jax.random.normal(k1, (B, T, N, C), jnp.float32)

    # nearest_nodes: (N, K) int, col 0 = self; -1 marks a padded neighbour
    idx = jnp.arange(N)
    nearest_nodes = jnp.stack(
        [idx, (idx + 1) % N, (idx + 2) % N,
         jnp.where(idx % 2 == 0, -1, (idx + 3) % N)], axis=1).astype(jnp.int32)

    # edge weights (set externally on the torch module; synthesized here)
    u_ew = jax.random.uniform(k2, (B, T, N, K - 1, H), jnp.float32, 0.0, 0.1)
    d_ew = jax.random.uniform(k3, (B, T - 1, N, K, H), jnp.float32, 0.0, 0.1)

    params = init_params(H, N, T, ADMM_info)
    W_u, W_d = build_dense_operators(nearest_nodes, u_ew, d_ew, N)

    fwd = jax.jit(partial(admm_block_forward, mask=mask, T=T, n_heads=H))
    out = jax.block_until_ready(fwd(y_in, params, W_u, W_d))

    assert out.shape == (B, T, N, C), out.shape
    assert bool(jnp.all(jnp.isfinite(out)))

    ref = _ref_forward(y_in, params, W_u, W_d, mask=mask, T=T, n_heads=H)
    max_err = float(jnp.max(jnp.abs(out - ref)))
    assert max_err < 5e-2, f"max abs err vs pure-JAX reference: {max_err}"

    print("KERNEL_OK")
</pallas_src>

<mosaic_0001>
module attributes {stable_mosaic.version = 11 : i64} {
  func.func @_admm_kernel(%arg0: i32, %arg1: i32, %arg2: memref<36xf32, #tpu.memory_space<smem>>, %arg3: memref<216xf32, #tpu.memory_space<smem>>, %arg4: memref<2xf32, #tpu.memory_space<smem>>, %arg5: memref<1x4x64xf32, #tpu.memory_space<vmem>>, %arg6: memref<1x1x64x64xf32, #tpu.memory_space<vmem>>, %arg7: memref<1x1x64x64xf32, #tpu.memory_space<vmem>>, %arg8: memref<1x1x64x64xf32, #tpu.memory_space<vmem>>, %arg9: memref<1x1x64x64xf32, #tpu.memory_space<vmem>>, %arg10: memref<1x4x64xf32, #tpu.memory_space<vmem>>) attributes {dimension_semantics = [#tpu.dimension_semantics<parallel>, #tpu.dimension_semantics<arbitrary>], iteration_bounds = array<i64: 2, 2>, scalar_prefetch = 0 : i64, scratch_operands = 0 : i64, tpu.core_type = #tpu.core_type<tc>, window_params = [{transform_indices = @transform_0, window_bounds = array<i64: 36>}, {transform_indices = @transform_1, window_bounds = array<i64: 216>}, {transform_indices = @transform_2, window_bounds = array<i64: 2>}, {transform_indices = @transform_3, window_bounds = array<i64: 1, 4, 64>}, {transform_indices = @transform_4, window_bounds = array<i64: 1, 1, 64, 64>}, {transform_indices = @transform_5, window_bounds = array<i64: 1, 1, 64, 64>}, {transform_indices = @transform_6, window_bounds = array<i64: 1, 1, 64, 64>}, {transform_indices = @transform_7, window_bounds = array<i64: 1, 1, 64, 64>}, {transform_indices = @transform_8, window_bounds = array<i64: 1, 4, 64>}]} {
    %c0 = arith.constant 0 : index
    %c0_0 = arith.constant 0 : index
    %c0_1 = arith.constant 0 : index
    %0 = vector.load %arg5[%c0, %c0_0, %c0_1] : memref<1x4x64xf32, #tpu.memory_space<vmem>>, vector<1x4x64xf32>
    %1 = vector.shape_cast %0 : vector<1x4x64xf32> to vector<4x64xf32>
    %2 = tpu.iota {dimensions = array<i32: 1>} : vector<1x64xi32>
    %c48_i32 = arith.constant 48 : i32
    %3 = vector.broadcast %c48_i32 : i32 to vector<1x64xi32>
    %4 = arith.cmpi slt, %2, %3 : vector<1x64xi32>
    %5 = arith.extui %4 : vector<1x64xi1> to vector<1x64xi32>
    %6 = arith.sitofp %5 : vector<1x64xi32> to vector<1x64xf32>
    %7 = vector.broadcast %6 : vector<1x64xf32> to vector<4x64xf32>
    %8 = arith.mulf %7, %1 : vector<4x64xf32>
    %cst = arith.constant 5.000000e-02 : f32
    %9 = vector.broadcast %cst : f32 to vector<4x64xf32>
    %cst_2 = arith.constant 1.000000e-01 : f32
    %10 = vector.broadcast %cst_2 : f32 to vector<4x64xf32>
    %cst_3 = arith.constant 1.000000e-01 : f32
    %11 = vector.broadcast %cst_3 : f32 to vector<4x64xf32>
    %c0_4 = arith.constant 0 : index
    %c0_5 = arith.constant 0 : index
    %c0_6 = arith.constant 0 : index
    %c0_7 = arith.constant 0 : index
    %12 = vector.load %arg7[%c0_4, %c0_5, %c0_6, %c0_7] : memref<1x1x64x64xf32, #tpu.memory_space<vmem>>, vector<1x1x64x64xf32>
    %13 = vector.shape_cast %12 : vector<1x1x64x64xf32> to vector<64x64xf32>
    %cst_8 = arith.constant dense<0.000000e+00> : vector<4x64xf32>
    %14 = tpu.matmul %1, %13, %cst_8 {dimension_numbers = #tpu.dot_dimension_numbers<[1], [0], [0], [1], [0, 0, 1, 1], [], []>} : vector<4x64xf32>, vector<64x64xf32>, vector<4x64xf32> -> vector<4x64xf32>
    %c0_9 = arith.constant 0 : index
    %15 = memref.load %arg2[%c0_9] : memref<36xf32, #tpu.memory_space<smem>>
    %c6 = arith.constant 6 : index
    %16 = memref.load %arg2[%c6] : memref<36xf32, #tpu.memory_space<smem>>
    %c12 = arith.constant 12 : index
    %17 = memref.load %arg2[%c12] : memref<36xf32, #tpu.memory_space<smem>>
    %c18 = arith.constant 18 : index
    %18 = memref.load %arg2[%c18] : memref<36xf32, #tpu.memory_space<smem>>
    %c24 = arith.constant 24 : index
    %19 = memref.load %arg2[%c24] : memref<36xf32, #tpu.memory_space<smem>>
    %c30 = arith.constant 30 : index
    %20 = memref.load %arg2[%c30] : memref<36xf32, #tpu.memory_space<smem>>
    %cst_10 = arith.constant 1.000000e+00 : f32
    %21 = arith.divf %cst_10, %18 : f32
    %22 = vector.broadcast %18 : f32 to vector<4x64xf32>
    %23 = arith.mulf %22, %14 : vector<4x64xf32>
    %24 = arith.addf %11, %23 : vector<4x64xf32>
    %c0_11 = arith.constant 0 : index
    %c0_12 = arith.constant 0 : index
    %c0_13 = arith.constant 0 : index
    %c0_14 = arith.constant 0 : index
    %25 = vector.load %arg8[%c0_11, %c0_12, %c0_13, %c0_14] : memref<1x1x64x64xf32, #tpu.memory_space<vmem>>, vector<1x1x64x64xf32>
    %26 = vector.shape_cast %25 : vector<1x1x64x64xf32> to vector<64x64xf32>
    %cst_15 = arith.constant dense<0.000000e+00> : vector<4x64xf32>
    %27 = tpu.matmul %24, %26, %cst_15 {dimension_numbers = #tpu.dot_dimension_numbers<[1], [0], [0], [1], [0, 0, 1, 1], [], []>} : vector<4x64xf32>, vector<64x64xf32>, vector<4x64xf32> -> vector<4x64xf32>
    %cst_16 = arith.constant 5.000000e-01 : f32
    %28 = vector.broadcast %cst_16 : f32 to vector<4x64xf32>
    %29 = arith.mulf %27, %28 : vector<4x64xf32>
    %30 = vector.broadcast %19 : f32 to vector<4x64xf32>
    %31 = arith.mulf %30, %1 : vector<4x64xf32>
    %32 = vector.broadcast %20 : f32 to vector<4x64xf32>
    %33 = arith.mulf %32, %1 : vector<4x64xf32>
    %34 = arith.addf %31, %33 : vector<4x64xf32>
    %cst_17 = arith.constant 5.000000e-01 : f32
    %35 = vector.broadcast %cst_17 : f32 to vector<4x64xf32>
    %36 = arith.mulf %34, %35 : vector<4x64xf32>
    %37 = arith.addf %29, %36 : vector<4x64xf32>
    %38 = arith.addf %9, %10 : vector<4x64xf32>
    %cst_18 = arith.constant 5.000000e-01 : f32
    %39 = vector.broadcast %cst_18 : f32 to vector<4x64xf32>
    %40 = arith.mulf %38, %39 : vector<4x64xf32>
    %41 = arith.subf %37, %40 : vector<4x64xf32>
    %42 = arith.addf %41, %8 : vector<4x64xf32>
    %43 = vector.broadcast %6 : vector<1x64xf32> to vector<4x64xf32>
    %44 = arith.mulf %43, %1 : vector<4x64xf32>
    %45 = arith.addf %19, %20 : f32
    %cst_19 = arith.constant 5.000000e-01 : f32
    %46 = arith.mulf %45, %cst_19 : f32
    %47 = vector.broadcast %46 : f32 to vector<4x64xf32>
    %48 = arith.mulf %47, %1 : vector<4x64xf32>
    %49 = arith.addf %44, %48 : vector<4x64xf32>
    %cst_20 = arith.constant 5.000000e-01 : f32
    %50 = arith.mulf %18, %cst_20 : f32
    %c0_21 = arith.constant 0 : index
    %c0_22 = arith.constant 0 : index
    %c0_23 = arith.constant 0 : index
    %c0_24 = arith.constant 0 : index
    %51 = vector.load %arg9[%c0_21, %c0_22, %c0_23, %c0_24] : memref<1x1x64x64xf32, #tpu.memory_space<vmem>>, vector<1x1x64x64xf32>
    %52 = vector.shape_cast %51 : vector<1x1x64x64xf32> to vector<64x64xf32>
    %cst_25 = arith.constant dense<0.000000e+00> : vector<4x64xf32>
    %53 = tpu.matmul %1, %52, %cst_25 {dimension_numbers = #tpu.dot_dimension_numbers<[1], [0], [0], [1], [0, 0, 1, 1], [], []>} : vector<4x64xf32>, vector<64x64xf32>, vector<4x64xf32> -> vector<4x64xf32>
    %54 = vector.broadcast %50 : f32 to vector<4x64xf32>
    %55 = arith.mulf %54, %53 : vector<4x64xf32>
    %56 = arith.addf %49, %55 : vector<4x64xf32>
    %57 = arith.subf %42, %56 : vector<4x64xf32>
    %c0_i32 = arith.constant 0 : i32
    %58 = arith.addi %c0_i32, %arg1 : i32
    %59 = arith.index_cast %58 : i32 to index
    %60 = memref.load %arg3[%59] : memref<216xf32, #tpu.memory_space<smem>>
    %c36_i32 = arith.constant 36 : i32
    %61 = arith.addi %c36_i32, %arg1 : i32
    %62 = arith.index_cast %61 : i32 to index
    %63 = memref.load %arg3[%62] : memref<216xf32, #tpu.memory_space<smem>>
    %64 = vector.broadcast %6 : vector<1x64xf32> to vector<4x64xf32>
    %65 = arith.mulf %64, %57 : vector<4x64xf32>
    %66 = arith.addf %19, %20 : f32
    %cst_26 = arith.constant 5.000000e-01 : f32
    %67 = arith.mulf %66, %cst_26 : f32
    %68 = vector.broadcast %67 : f32 to vector<4x64xf32>
    %69 = arith.mulf %68, %57 : vector<4x64xf32>
    %70 = arith.addf %65, %69 : vector<4x64xf32>
    %cst_27 = arith.constant 5.000000e-01 : f32
    %71 = arith.mulf %18, %cst_27 : f32
    %c0_28 = arith.constant 0 : index
    %c0_29 = arith.constant 0 : index
    %c0_30 = arith.constant 0 : index
    %c0_31 = arith.constant 0 : index
    %72 = vector.load %arg9[%c0_28, %c0_29, %c0_30, %c0_31] : memref<1x1x64x64xf32, #tpu.memory_space<vmem>>, vector<1x1x64x64xf32>
    %73 = vector.shape_cast %72 : vector<1x1x64x64xf32> to vector<64x64xf32>
    %cst_32 = arith.constant dense<0.000000e+00> : vector<4x64xf32>
    %74 = tpu.matmul %57, %73, %cst_32 {dimension_numbers = #tpu.dot_dimension_numbers<[1], [0], [0], [1], [0, 0, 1, 1], [], []>} : vector<4x64xf32>, vector<64x64xf32>, vector<4x64xf32> -> vector<4x64xf32>
    %75 = vector.broadcast %71 : f32 to vector<4x64xf32>
    %76 = arith.mulf %75, %74 : vector<4x64xf32>
    %77 = arith.addf %70, %76 : vector<4x64xf32>
    %78 = vector.broadcast %60 : f32 to vector<4x64xf32>
    %79 = arith.mulf %78, %57 : vector<4x64xf32>
    %80 = arith.addf %1, %79 : vector<4x64xf32>
    %81 = vector.broadcast %60 : f32 to vector<4x64xf32>
    %82 = arith.mulf %81, %77 : vector<4x64xf32>
    %83 = arith.subf %57, %82 : vector<4x64xf32>
    %84 = vector.broadcast %63 : f32 to vector<4x64xf32>
    %85 = arith.mulf %84, %57 : vector<4x64xf32>
    %86 = arith.addf %83, %85 : vector<4x64xf32>
    %c2_i32 = arith.constant 2 : i32
    %87 = arith.addi %c2_i32, %arg1 : i32
    %88 = arith.index_cast %87 : i32 to index
    %89 = memref.load %arg3[%88] : memref<216xf32, #tpu.memory_space<smem>>
    %c38_i32 = arith.constant 38 : i32
    %90 = arith.addi %c38_i32, %arg1 : i32
    %91 = arith.index_cast %90 : i32 to index
    %92 = memref.load %arg3[%91] : memref<216xf32, #tpu.memory_space<smem>>
    %93 = vector.broadcast %6 : vector<1x64xf32> to vector<4x64xf32>
    %94 = arith.mulf %93, %86 : vector<4x64xf32>
    %95 = arith.addf %19, %20 : f32
    %cst_33 = arith.constant 5.000000e-01 : f32
    %96 = arith.mulf %95, %cst_33 : f32
    %97 = vector.broadcast %96 : f32 to vector<4x64xf32>
    %98 = arith.mulf %97, %86 : vector<4x64xf32>
    %99 = arith.addf %94, %98 : vector<4x64xf32>
    %cst_34 = arith.constant 5.000000e-01 : f32
    %100 = arith.mulf %18, %cst_34 : f32
    %c0_35 = arith.constant 0 : index
    %c0_36 = arith.constant 0 : index
    %c0_37 = arith.constant 0 : index
    %c0_38 = arith.constant 0 : index
    %101 = vector.load %arg9[%c0_35, %c0_36, %c0_37, %c0_38] : memref<1x1x64x64xf32, #tpu.memory_space<vmem>>, vector<1x1x64x64xf32>
    %102 = vector.shape_cast %101 : vector<1x1x64x64xf32> to vector<64x64xf32>
    %cst_39 = arith.constant dense<0.000000e+00> : vector<4x64xf32>
    %103 = tpu.matmul %86, %102, %cst_39 {dimension_numbers = #tpu.dot_dimension_numbers<[1], [0], [0], [1], [0, 0, 1, 1], [], []>} : vector<4x64xf32>, vector<64x64xf32>, vector<4x64xf32> -> vector<4x64xf32>
    %104 = vector.broadcast %100 : f32 to vector<4x64xf32>
    %105 = arith.mulf %104, %103 : vector<4x64xf32>
    %106 = arith.addf %99, %105 : vector<4x64xf32>
    %107 = vector.broadcast %89 : f32 to vector<4x64xf32>
    %108 = arith.mulf %107, %86 : vector<4x64xf32>
    %109 = arith.addf %80, %108 : vector<4x64xf32>
    %110 = vector.broadcast %89 : f32 to vector<4x64xf32>
    %111 = arith.mulf %110, %106 : vector<4x64xf32>
    %112 = arith.subf %83, %111 : vector<4x64xf32>
    %113 = vector.broadcast %92 : f32 to vector<4x64xf32>
    %114 = arith.mulf %113, %86 : vector<4x64xf32>
    %115 = arith.addf %112, %114 : vector<4x64xf32>
    %c4_i32 = arith.constant 4 : i32
    %116 = arith.addi %c4_i32, %arg1 : i32
    %117 = arith.index_cast %116 : i32 to index
    %118 = memref.load %arg3[%117] : memref<216xf32, #tpu.memory_space<smem>>
    %119 = vector.broadcast %118 : f32 to vector<4x64xf32>
    %120 = arith.mulf %119, %115 : vector<4x64xf32>
    %121 = arith.addf %109, %120 : vector<4x64xf32>
    %cst_40 = arith.constant 5.000000e-01 : f32
    %122 = vector.broadcast %cst_40 : f32 to vector<4x64xf32>
    %123 = arith.mulf %9, %122 : vector<4x64xf32>
    %cst_41 = arith.constant 5.000000e-01 : f32
    %124 = arith.mulf %19, %cst_41 : f32
    %125 = vector.broadcast %124 : f32 to vector<4x64xf32>
    %126 = arith.mulf %125, %121 : vector<4x64xf32>
    %127 = arith.addf %123, %126 : vector<4x64xf32>
    %c0_42 = arith.constant 0 : index
    %c0_43 = arith.constant 0 : index
    %c0_44 = arith.constant 0 : index
    %c0_45 = arith.constant 0 : index
    %128 = vector.load %arg6[%c0_42, %c0_43, %c0_44, %c0_45] : memref<1x1x64x64xf32, #tpu.memory_space<vmem>>, vector<1x1x64x64xf32>
    %129 = vector.shape_cast %128 : vector<1x1x64x64xf32> to vector<64x64xf32>
    %cst_46 = arith.constant dense<0.000000e+00> : vector<4x64xf32>
    %130 = tpu.matmul %1, %129, %cst_46 {dimension_numbers = #tpu.dot_dimension_numbers<[1], [0], [0], [1], [0, 0, 1, 1], [], []>} : vector<4x64xf32>, vector<64x64xf32>, vector<4x64xf32> -> vector<4x64xf32>
    %131 = vector.broadcast %15 : f32 to vector<4x64xf32>
    %132 = arith.mulf %131, %130 : vector<4x64xf32>
    %cst_47 = arith.constant 5.000000e-01 : f32
    %133 = arith.mulf %19, %cst_47 : f32
    %134 = vector.broadcast %133 : f32 to vector<4x64xf32>
    %135 = arith.mulf %134, %1 : vector<4x64xf32>
    %136 = arith.addf %132, %135 : vector<4x64xf32>
    %137 = arith.subf %127, %136 : vector<4x64xf32>
    %c72_i32 = arith.constant 72 : i32
    %138 = arith.addi %c72_i32, %arg1 : i32
    %139 = arith.index_cast %138 : i32 to index
    %140 = memref.load %arg3[%139] : memref<216xf32, #tpu.memory_space<smem>>
    %c108_i32 = arith.constant 108 : i32
    %141 = arith.addi %c108_i32, %arg1 : i32
    %142 = arith.index_cast %141 : i32 to index
    %143 = memref.load %arg3[%142] : memref<216xf32, #tpu.memory_space<smem>>
    %c0_48 = arith.constant 0 : index
    %c0_49 = arith.constant 0 : index
    %c0_50 = arith.constant 0 : index
    %c0_51 = arith.constant 0 : index
    %144 = vector.load %arg6[%c0_48, %c0_49, %c0_50, %c0_51] : memref<1x1x64x64xf32, #tpu.memory_space<vmem>>, vector<1x1x64x64xf32>
    %145 = vector.shape_cast %144 : vector<1x1x64x64xf32> to vector<64x64xf32>
    %cst_52 = arith.constant dense<0.000000e+00> : vector<4x64xf32>
    %146 = tpu.matmul %137, %145, %cst_52 {dimension_numbers = #tpu.dot_dimension_numbers<[1], [0], [0], [1], [0, 0, 1, 1], [], []>} : vector<4x64xf32>, vector<64x64xf32>, vector<4x64xf32> -> vector<4x64xf32>
    %147 = vector.broadcast %15 : f32 to vector<4x64xf32>
    %148 = arith.mulf %147, %146 : vector<4x64xf32>
    %cst_53 = arith.constant 5.000000e-01 : f32
    %149 = arith.mulf %19, %cst_53 : f32
    %150 = vector.broadcast %149 : f32 to vector<4x64xf32>
    %151 = arith.mulf %150, %137 : vector<4x64xf32>
    %152 = arith.addf %148, %151 : vector<4x64xf32>
    %153 = vector.broadcast %140 : f32 to vector<4x64xf32>
    %154 = arith.mulf %153, %137 : vector<4x64xf32>
    %155 = arith.addf %1, %154 : vector<4x64xf32>
    %156 = vector.broadcast %140 : f32 to vector<4x64xf32>
    %157 = arith.mulf %156, %152 : vector<4x64xf32>
    %158 = arith.subf %137, %157 : vector<4x64xf32>
    %159 = vector.broadcast %143 : f32 to vector<4x64xf32>
    %160 = arith.mulf %159, %137 : vector<4x64xf32>
    %161 = arith.addf %158, %160 : vector<4x64xf32>
    %c74_i32 = arith.constant 74 : i32
    %162 = arith.addi %c74_i32, %arg1 : i32
    %163 = arith.index_cast %162 : i32 to index
    %164 = memref.load %arg3[%163] : memref<216xf32, #tpu.memory_space<smem>>
    %c110_i32 = arith.constant 110 : i32
    %165 = arith.addi %c110_i32, %arg1 : i32
    %166 = arith.index_cast %165 : i32 to index
    %167 = memref.load %arg3[%166] : memref<216xf32, #tpu.memory_space<smem>>
    %c0_54 = arith.constant 0 : index
    %c0_55 = arith.constant 0 : index
    %c0_56 = arith.constant 0 : index
    %c0_57 = arith.constant 0 : index
    %168 = vector.load %arg6[%c0_54, %c0_55, %c0_56, %c0_57] : memref<1x1x64x64xf32, #tpu.memory_space<vmem>>, vector<1x1x64x64xf32>
    %169 = vector.shape_cast %168 : vector<1x1x64x64xf32> to vector<64x64xf32>
    %cst_58 = arith.constant dense<0.000000e+00> : vector<4x64xf32>
    %170 = tpu.matmul %161, %169, %cst_58 {dimension_numbers = #tpu.dot_dimension_numbers<[1], [0], [0], [1], [0, 0, 1, 1], [], []>} : vector<4x64xf32>, vector<64x64xf32>, vector<4x64xf32> -> vector<4x64xf32>
    %171 = vector.broadcast %15 : f32 to vector<4x64xf32>
    %172 = arith.mulf %171, %170 : vector<4x64xf32>
    %cst_59 = arith.constant 5.000000e-01 : f32
    %173 = arith.mulf %19, %cst_59 : f32
    %174 = vector.broadcast %173 : f32 to vector<4x64xf32>
    %175 = arith.mulf %174, %161 : vector<4x64xf32>
    %176 = arith.addf %172, %175 : vector<4x64xf32>
    %177 = vector.broadcast %164 : f32 to vector<4x64xf32>
    %178 = arith.mulf %177, %161 : vector<4x64xf32>
    %179 = arith.addf %155, %178 : vector<4x64xf32>
    %180 = vector.broadcast %164 : f32 to vector<4x64xf32>
    %181 = arith.mulf %180, %176 : vector<4x64xf32>
    %182 = arith.subf %158, %181 : vector<4x64xf32>
    %183 = vector.broadcast %167 : f32 to vector<4x64xf32>
    %184 = arith.mulf %183, %161 : vector<4x64xf32>
    %185 = arith.addf %182, %184 : vector<4x64xf32>
    %c76_i32 = arith.constant 76 : i32
    %186 = arith.addi %c76_i32, %arg1 : i32
    %187 = arith.index_cast %186 : i32 to index
    %188 = memref.load %arg3[%187] : memref<216xf32, #tpu.memory_space<smem>>
    %189 = vector.broadcast %188 : f32 to vector<4x64xf32>
    %190 = arith.mulf %189, %185 : vector<4x64xf32>
    %191 = arith.addf %179, %190 : vector<4x64xf32>
    %cst_60 = arith.constant 5.000000e-01 : f32
    %192 = vector.broadcast %cst_60 : f32 to vector<4x64xf32>
    %193 = arith.mulf %10, %192 : vector<4x64xf32>
    %cst_61 = arith.constant 5.000000e-01 : f32
    %194 = arith.mulf %20, %cst_61 : f32
    %195 = vector.broadcast %194 : f32 to vector<4x64xf32>
    %196 = arith.mulf %195, %121 : vector<4x64xf32>
    %197 = arith.addf %193, %196 : vector<4x64xf32>
    %c0_62 = arith.constant 0 : index
    %c0_63 = arith.constant 0 : index
    %c0_64 = arith.constant 0 : index
    %c0_65 = arith.constant 0 : index
    %198 = vector.load %arg9[%c0_62, %c0_63, %c0_64, %c0_65] : memref<1x1x64x64xf32, #tpu.memory_space<vmem>>, vector<1x1x64x64xf32>
    %199 = vector.shape_cast %198 : vector<1x1x64x64xf32> to vector<64x64xf32>
    %cst_66 = arith.constant dense<0.000000e+00> : vector<4x64xf32>
    %200 = tpu.matmul %1, %199, %cst_66 {dimension_numbers = #tpu.dot_dimension_numbers<[1], [0], [0], [1], [0, 0, 1, 1], [], []>} : vector<4x64xf32>, vector<64x64xf32>, vector<4x64xf32> -> vector<4x64xf32>
    %201 = vector.broadcast %17 : f32 to vector<4x64xf32>
    %202 = arith.mulf %201, %200 : vector<4x64xf32>
    %cst_67 = arith.constant 5.000000e-01 : f32
    %203 = arith.mulf %20, %cst_67 : f32
    %204 = vector.broadcast %203 : f32 to vector<4x64xf32>
    %205 = arith.mulf %204, %1 : vector<4x64xf32>
    %206 = arith.addf %202, %205 : vector<4x64xf32>
    %207 = arith.subf %197, %206 : vector<4x64xf32>
    %c144_i32 = arith.constant 144 : i32
    %208 = arith.addi %c144_i32, %arg1 : i32
    %209 = arith.index_cast %208 : i32 to index
    %210 = memref.load %arg3[%209] : memref<216xf32, #tpu.memory_space<smem>>
    %c180_i32 = arith.constant 180 : i32
    %211 = arith.addi %c180_i32, %arg1 : i32
    %212 = arith.index_cast %211 : i32 to index
    %213 = memref.load %arg3[%212] : memref<216xf32, #tpu.memory_space<smem>>
    %c0_68 = arith.constant 0 : index
    %c0_69 = arith.constant 0 : index
    %c0_70 = arith.constant 0 : index
    %c0_71 = arith.constant 0 : index
    %214 = vector.load %arg9[%c0_68, %c0_69, %c0_70, %c0_71] : memref<1x1x64x64xf32, #tpu.memory_space<vmem>>, vector<1x1x64x64xf32>
    %215 = vector.shape_cast %214 : vector<1x1x64x64xf32> to vector<64x64xf32>
    %cst_72 = arith.constant dense<0.000000e+00> : vector<4x64xf32>
    %216 = tpu.matmul %207, %215, %cst_72 {dimension_numbers = #tpu.dot_dimension_numbers<[1], [0], [0], [1], [0, 0, 1, 1], [], []>} : vector<4x64xf32>, vector<64x64xf32>, vector<4x64xf32> -> vector<4x64xf32>
    %217 = vector.broadcast %17 : f32 to vector<4x64xf32>
    %218 = arith.mulf %217, %216 : vector<4x64xf32>
    %cst_73 = arith.constant 5.000000e-01 : f32
    %219 = arith.mulf %20, %cst_73 : f32
    %220 = vector.broadcast %219 : f32 to vector<4x64xf32>
    %221 = arith.mulf %220, %207 : vector<4x64xf32>
    %222 = arith.addf %218, %221 : vector<4x64xf32>
    %223 = vector.broadcast %210 : f32 to vector<4x64xf32>
    %224 = arith.mulf %223, %207 : vector<4x64xf32>
    %225 = arith.addf %1, %224 : vector<4x64xf32>
    %226 = vector.broadcast %210 : f32 to vector<4x64xf32>
    %227 = arith.mulf %226, %222 : vector<4x64xf32>
    %228 = arith.subf %207, %227 : vector<4x64xf32>
    %229 = vector.broadcast %213 : f32 to vector<4x64xf32>
    %230 = arith.mulf %229, %207 : vector<4x64xf32>
    %231 = arith.addf %228, %230 : vector<4x64xf32>
    %c146_i32 = arith.constant 146 : i32
    %232 = arith.addi %c146_i32, %arg1 : i32
    %233 = arith.index_cast %232 : i32 to index
    %234 = memref.load %arg3[%233] : memref<216xf32, #tpu.memory_space<smem>>
    %c182_i32 = arith.constant 182 : i32
    %235 = arith.addi %c182_i32, %arg1 : i32
    %236 = arith.index_cast %235 : i32 to index
    %237 = memref.load %arg3[%236] : memref<216xf32, #tpu.memory_space<smem>>
    %c0_74 = arith.constant 0 : index
    %c0_75 = arith.constant 0 : index
    %c0_76 = arith.constant 0 : index
    %c0_77 = arith.constant 0 : index
    %238 = vector.load %arg9[%c0_74, %c0_75, %c0_76, %c0_77] : memref<1x1x64x64xf32, #tpu.memory_space<vmem>>, vector<1x1x64x64xf32>
    %239 = vector.shape_cast %238 : vector<1x1x64x64xf32> to vector<64x64xf32>
    %cst_78 = arith.constant dense<0.000000e+00> : vector<4x64xf32>
    %240 = tpu.matmul %231, %239, %cst_78 {dimension_numbers = #tpu.dot_dimension_numbers<[1], [0], [0], [1], [0, 0, 1, 1], [], []>} : vector<4x64xf32>, vector<64x64xf32>, vector<4x64xf32> -> vector<4x64xf32>
    %241 = vector.broadcast %17 : f32 to vector<4x64xf32>
    %242 = arith.mulf %241, %240 : vector<4x64xf32>
    %cst_79 = arith.constant 5.000000e-01 : f32
    %243 = arith.mulf %20, %cst_79 : f32
    %244 = vector.broadcast %243 : f32 to vector<4x64xf32>
    %245 = arith.mulf %244, %231 : vector<4x64xf32>
    %246 = arith.addf %242, %245 : vector<4x64xf32>
    %247 = vector.broadcast %234 : f32 to vector<4x64xf32>
    %248 = arith.mulf %247, %231 : vector<4x64xf32>
    %249 = arith.addf %225, %248 : vector<4x64xf32>
    %250 = vector.broadcast %234 : f32 to vector<4x64xf32>
    %251 = arith.mulf %250, %246 : vector<4x64xf32>
    %252 = arith.subf %228, %251 : vector<4x64xf32>
    %253 = vector.broadcast %237 : f32 to vector<4x64xf32>
    %254 = arith.mulf %253, %231 : vector<4x64xf32>
    %255 = arith.addf %252, %254 : vector<4x64xf32>
    %c148_i32 = arith.constant 148 : i32
    %256 = arith.addi %c148_i32, %arg1 : i32
    %257 = arith.index_cast %256 : i32 to index
    %258 = memref.load %arg3[%257] : memref<216xf32, #tpu.memory_space<smem>>
    %259 = vector.broadcast %258 : f32 to vector<4x64xf32>
    %260 = arith.mulf %259, %255 : vector<4x64xf32>
    %261 = arith.addf %249, %260 : vector<4x64xf32>
    %262 = arith.subf %121, %191 : vector<4x64xf32>
    %263 = vector.broadcast %19 : f32 to vector<4x64xf32>
    %264 = arith.mulf %263, %262 : vector<4x64xf32>
    %265 = arith.addf %9, %264 : vector<4x64xf32>
    %266 = arith.subf %121, %261 : vector<4x64xf32>
    %267 = vector.broadcast %20 : f32 to vector<4x64xf32>
    %268 = arith.mulf %267, %266 : vector<4x64xf32>
    %269 = arith.addf %10, %268 : vector<4x64xf32>
    %c0_80 = arith.constant 0 : index
    %c0_81 = arith.constant 0 : index
    %c0_82 = arith.constant 0 : index
    %c0_83 = arith.constant 0 : index
    %270 = vector.load %arg7[%c0_80, %c0_81, %c0_82, %c0_83] : memref<1x1x64x64xf32, #tpu.memory_space<vmem>>, vector<1x1x64x64xf32>
    %271 = vector.shape_cast %270 : vector<1x1x64x64xf32> to vector<64x64xf32>
    %cst_84 = arith.constant dense<0.000000e+00> : vector<4x64xf32>
    %272 = tpu.matmul %121, %271, %cst_84 {dimension_numbers = #tpu.dot_dimension_numbers<[1], [0], [0], [1], [0, 0, 1, 1], [], []>} : vector<4x64xf32>, vector<64x64xf32>, vector<4x64xf32> -> vector<4x64xf32>
    %273 = vector.broadcast %21 : f32 to vector<4x64xf32>
    %274 = arith.mulf %11, %273 : vector<4x64xf32>
    %275 = arith.subf %272, %274 : vector<4x64xf32>
    %276 = arith.mulf %16, %21 : f32
    %cst_85 = arith.constant 0.000000e+00 : f32
    %277 = arith.subf %cst_85, %276 : f32
    %278 = vector.broadcast %277 : f32 to vector<4x64xf32>
    %279 = arith.maximumf %278, %275 : vector<4x64xf32>
    %280 = vector.broadcast %276 : f32 to vector<4x64xf32>
    %281 = arith.minimumf %280, %279 : vector<4x64xf32>
    %282 = arith.subf %275, %281 : vector<4x64xf32>
    %283 = arith.subf %282, %275 : vector<4x64xf32>
    %284 = vector.broadcast %18 : f32 to vector<4x64xf32>
    %285 = arith.mulf %284, %283 : vector<4x64xf32>
    %c1 = arith.constant 1 : index
    %286 = memref.load %arg2[%c1] : memref<36xf32, #tpu.memory_space<smem>>
    %c7 = arith.constant 7 : index
    %287 = memref.load %arg2[%c7] : memref<36xf32, #tpu.memory_space<smem>>
    %c13 = arith.constant 13 : index
    %288 = memref.load %arg2[%c13] : memref<36xf32, #tpu.memory_space<smem>>
    %c19 = arith.constant 19 : index
    %289 = memref.load %arg2[%c19] : memref<36xf32, #tpu.memory_space<smem>>
    %c25 = arith.constant 25 : index
    %290 = memref.load %arg2[%c25] : memref<36xf32, #tpu.memory_space<smem>>
    %c31 = arith.constant 31 : index
    %291 = memref.load %arg2[%c31] : memref<36xf32, #tpu.memory_space<smem>>
    %cst_86 = arith.constant 1.000000e+00 : f32
    %292 = arith.divf %cst_86, %289 : f32
    %293 = vector.broadcast %289 : f32 to vector<4x64xf32>
    %294 = arith.mulf %293, %282 : vector<4x64xf32>
    %295 = arith.addf %285, %294 : vector<4x64xf32>
    %c0_87 = arith.constant 0 : index
    %c0_88 = arith.constant 0 : index
    %c0_89 = arith.constant 0 : index
    %c0_90 = arith.constant 0 : index
    %296 = vector.load %arg8[%c0_87, %c0_88, %c0_89, %c0_90] : memref<1x1x64x64xf32, #tpu.memory_space<vmem>>, vector<1x1x64x64xf32>
    %297 = vector.shape_cast %296 : vector<1x1x64x64xf32> to vector<64x64xf32>
    %cst_91 = arith.constant dense<0.000000e+00> : vector<4x64xf32>
    %298 = tpu.matmul %295, %297, %cst_91 {dimension_numbers = #tpu.dot_dimension_numbers<[1], [0], [0], [1], [0, 0, 1, 1], [], []>} : vector<4x64xf32>, vector<64x64xf32>, vector<4x64xf32> -> vector<4x64xf32>
    %cst_92 = arith.constant 5.000000e-01 : f32
    %299 = vector.broadcast %cst_92 : f32 to vector<4x64xf32>
    %300 = arith.mulf %298, %299 : vector<4x64xf32>
    %301 = vector.broadcast %290 : f32 to vector<4x64xf32>
    %302 = arith.mulf %301, %191 : vector<4x64xf32>
    %303 = vector.broadcast %291 : f32 to vector<4x64xf32>
    %304 = arith.mulf %303, %261 : vector<4x64xf32>
    %305 = arith.addf %302, %304 : vector<4x64xf32>
    %cst_93 = arith.constant 5.000000e-01 : f32
    %306 = vector.broadcast %cst_93 : f32 to vector<4x64xf32>
    %307 = arith.mulf %305, %306 : vector<4x64xf32>
    %308 = arith.addf %300, %307 : vector<4x64xf32>
    %309 = arith.addf %265, %269 : vector<4x64xf32>
    %cst_94 = arith.constant 5.000000e-01 : f32
    %310 = vector.broadcast %cst_94 : f32 to vector<4x64xf32>
    %311 = arith.mulf %309, %310 : vector<4x64xf32>
    %312 = arith.subf %308, %311 : vector<4x64xf32>
    %313 = arith.addf %312, %8 : vector<4x64xf32>
    %314 = vector.broadcast %6 : vector<1x64xf32> to vector<4x64xf32>
    %315 = arith.mulf %314, %121 : vector<4x64xf32>
    %316 = arith.addf %290, %291 : f32
    %cst_95 = arith.constant 5.000000e-01 : f32
    %317 = arith.mulf %316, %cst_95 : f32
    %318 = vector.broadcast %317 : f32 to vector<4x64xf32>
    %319 = arith.mulf %318, %121 : vector<4x64xf32>
    %320 = arith.addf %315, %319 : vector<4x64xf32>
    %cst_96 = arith.constant 5.000000e-01 : f32
    %321 = arith.mulf %289, %cst_96 : f32
    %c0_97 = arith.constant 0 : index
    %c0_98 = arith.constant 0 : index
    %c0_99 = arith.constant 0 : index
    %c0_100 = arith.constant 0 : index
    %322 = vector.load %arg9[%c0_97, %c0_98, %c0_99, %c0_100] : memref<1x1x64x64xf32, #tpu.memory_space<vmem>>, vector<1x1x64x64xf32>
    %323 = vector.shape_cast %322 : vector<1x1x64x64xf32> to vector<64x64xf32>
    %cst_101 = arith.constant dense<0.000000e+00> : vector<4x64xf32>
    %324 = tpu.matmul %121, %323, %cst_101 {dimension_numbers = #tpu.dot_dimension_numbers<[1], [0], [0], [1], [0, 0, 1, 1], [], []>} : vector<4x64xf32>, vector<64x64xf32>, vector<4x64xf32> -> vector<4x64xf32>
    %325 = vector.broadcast %321 : f32 to vector<4x64xf32>
    %326 = arith.mulf %325, %324 : vector<4x64xf32>
    %327 = arith.addf %320, %326 : vector<4x64xf32>
    %328 = arith.subf %313, %327 : vector<4x64xf32>
    %c6_i32 = arith.constant 6 : i32
    %329 = arith.addi %c6_i32, %arg1 : i32
    %330 = arith.index_cast %329 : i32 to index
    %331 = memref.load %arg3[%330] : memref<216xf32, #tpu.memory_space<smem>>
    %c42_i32 = arith.constant 42 : i32
    %332 = arith.addi %c42_i32, %arg1 : i32
    %333 = arith.index_cast %332 : i32 to index
    %334 = memref.load %arg3[%333] : memref<216xf32, #tpu.memory_space<smem>>
    %335 = vector.broadcast %6 : vector<1x64xf32> to vector<4x64xf32>
    %336 = arith.mulf %335, %328 : vector<4x64xf32>
    %337 = arith.addf %290, %291 : f32
    %cst_102 = arith.constant 5.000000e-01 : f32
    %338 = arith.mulf %337, %cst_102 : f32
    %339 = vector.broadcast %338 : f32 to vector<4x64xf32>
    %340 = arith.mulf %339, %328 : vector<4x64xf32>
    %341 = arith.addf %336, %340 : vector<4x64xf32>
    %cst_103 = arith.constant 5.000000e-01 : f32
    %342 = arith.mulf %289, %cst_103 : f32
    %c0_104 = arith.constant 0 : index
    %c0_105 = arith.constant 0 : index
    %c0_106 = arith.constant 0 : index
    %c0_107 = arith.constant 0 : index
    %343 = vector.load %arg9[%c0_104, %c0_105, %c0_106, %c0_107] : memref<1x1x64x64xf32, #tpu.memory_space<vmem>>, vector<1x1x64x64xf32>
    %344 = vector.shape_cast %343 : vector<1x1x64x64xf32> to vector<64x64xf32>
    %cst_108 = arith.constant dense<0.000000e+00> : vector<4x64xf32>
    %345 = tpu.matmul %328, %344, %cst_108 {dimension_numbers = #tpu.dot_dimension_numbers<[1], [0], [0], [1], [0, 0, 1, 1], [], []>} : vector<4x64xf32>, vector<64x64xf32>, vector<4x64xf32> -> vector<4x64xf32>
    %346 = vector.broadcast %342 : f32 to vector<4x64xf32>
    %347 = arith.mulf %346, %345 : vector<4x64xf32>
    %348 = arith.addf %341, %347 : vector<4x64xf32>
    %349 = vector.broadcast %331 : f32 to vector<4x64xf32>
    %350 = arith.mulf %349, %328 : vector<4x64xf32>
    %351 = arith.addf %121, %350 : vector<4x64xf32>
    %352 = vector.broadcast %331 : f32 to vector<4x64xf32>
    %353 = arith.mulf %352, %348 : vector<4x64xf32>
    %354 = arith.subf %328, %353 : vector<4x64xf32>
    %355 = vector.broadcast %334 : f32 to vector<4x64xf32>
    %356 = arith.mulf %355, %328 : vector<4x64xf32>
    %357 = arith.addf %354, %356 : vector<4x64xf32>
    %c8_i32 = arith.constant 8 : i32
    %358 = arith.addi %c8_i32, %arg1 : i32
    %359 = arith.index_cast %358 : i32 to index
    %360 = memref.load %arg3[%359] : memref<216xf32, #tpu.memory_space<smem>>
    %c44_i32 = arith.constant 44 : i32
    %361 = arith.addi %c44_i32, %arg1 : i32
    %362 = arith.index_cast %361 : i32 to index
    %363 = memref.load %arg3[%362] : memref<216xf32, #tpu.memory_space<smem>>
    %364 = vector.broadcast %6 : vector<1x64xf32> to vector<4x64xf32>
    %365 = arith.mulf %364, %357 : vector<4x64xf32>
    %366 = arith.addf %290, %291 : f32
    %cst_109 = arith.constant 5.000000e-01 : f32
    %367 = arith.mulf %366, %cst_109 : f32
    %368 = vector.broadcast %367 : f32 to vector<4x64xf32>
    %369 = arith.mulf %368, %357 : vector<4x64xf32>
    %370 = arith.addf %365, %369 : vector<4x64xf32>
    %cst_110 = arith.constant 5.000000e-01 : f32
    %371 = arith.mulf %289, %cst_110 : f32
    %c0_111 = arith.constant 0 : index
    %c0_112 = arith.constant 0 : index
    %c0_113 = arith.constant 0 : index
    %c0_114 = arith.constant 0 : index
    %372 = vector.load %arg9[%c0_111, %c0_112, %c0_113, %c0_114] : memref<1x1x64x64xf32, #tpu.memory_space<vmem>>, vector<1x1x64x64xf32>
    %373 = vector.shape_cast %372 : vector<1x1x64x64xf32> to vector<64x64xf32>
    %cst_115 = arith.constant dense<0.000000e+00> : vector<4x64xf32>
    %374 = tpu.matmul %357, %373, %cst_115 {dimension_numbers = #tpu.dot_dimension_numbers<[1], [0], [0], [1], [0, 0, 1, 1], [], []>} : vector<4x64xf32>, vector<64x64xf32>, vector<4x64xf32> -> vector<4x64xf32>
    %375 = vector.broadcast %371 : f32 to vector<4x64xf32>
    %376 = arith.mulf %375, %374 : vector<4x64xf32>
    %377 = arith.addf %370, %376 : vector<4x64xf32>
    %378 = vector.broadcast %360 : f32 to vector<4x64xf32>
    %379 = arith.mulf %378, %357 : vector<4x64xf32>
    %380 = arith.addf %351, %379 : vector<4x64xf32>
    %381 = vector.broadcast %360 : f32 to vector<4x64xf32>
    %382 = arith.mulf %381, %377 : vector<4x64xf32>
    %383 = arith.subf %354, %382 : vector<4x64xf32>
    %384 = vector.broadcast %363 : f32 to vector<4x64xf32>
    %385 = arith.mulf %384, %357 : vector<4x64xf32>
    %386 = arith.addf %383, %385 : vector<4x64xf32>
    %c10_i32 = arith.constant 10 : i32
    %387 = arith.addi %c10_i32, %arg1 : i32
    %388 = arith.index_cast %387 : i32 to index
    %389 = memref.load %arg3[%388] : memref<216xf32, #tpu.memory_space<smem>>
    %390 = vector.broadcast %389 : f32 to vector<4x64xf32>
    %391 = arith.mulf %390, %386 : vector<4x64xf32>
    %392 = arith.addf %380, %391 : vector<4x64xf32>
    %cst_116 = arith.constant 5.000000e-01 : f32
    %393 = vector.broadcast %cst_116 : f32 to vector<4x64xf32>
    %394 = arith.mulf %265, %393 : vector<4x64xf32>
    %cst_117 = arith.constant 5.000000e-01 : f32
    %395 = arith.mulf %290, %cst_117 : f32
    %396 = vector.broadcast %395 : f32 to vector<4x64xf32>
    %397 = arith.mulf %396, %392 : vector<4x64xf32>
    %398 = arith.addf %394, %397 : vector<4x64xf32>
    %c0_118 = arith.constant 0 : index
    %c0_119 = arith.constant 0 : index
    %c0_120 = arith.constant 0 : index
    %c0_121 = arith.constant 0 : index
    %399 = vector.load %arg6[%c0_118, %c0_119, %c0_120, %c0_121] : memref<1x1x64x64xf32, #tpu.memory_space<vmem>>, vector<1x1x64x64xf32>
    %400 = vector.shape_cast %399 : vector<1x1x64x64xf32> to vector<64x64xf32>
    %cst_122 = arith.constant dense<0.000000e+00> : vector<4x64xf32>
    %401 = tpu.matmul %191, %400, %cst_122 {dimension_numbers = #tpu.dot_dimension_numbers<[1], [0], [0], [1], [0, 0, 1, 1], [], []>} : vector<4x64xf32>, vector<64x64xf32>, vector<4x64xf32> -> vector<4x64xf32>
    %402 = vector.broadcast %286 : f32 to vector<4x64xf32>
    %403 = arith.mulf %402, %401 : vector<4x64xf32>
    %cst_123 = arith.constant 5.000000e-01 : f32
    %404 = arith.mulf %290, %cst_123 : f32
    %405 = vector.broadcast %404 : f32 to vector<4x64xf32>
    %406 = arith.mulf %405, %191 : vector<4x64xf32>
    %407 = arith.addf %403, %406 : vector<4x64xf32>
    %408 = arith.subf %398, %407 : vector<4x64xf32>
    %c78_i32 = arith.constant 78 : i32
    %409 = arith.addi %c78_i32, %arg1 : i32
    %410 = arith.index_cast %409 : i32 to index
    %411 = memref.load %arg3[%410] : memref<216xf32, #tpu.memory_space<smem>>
    %c114_i32 = arith.constant 114 : i32
    %412 = arith.addi %c114_i32, %arg1 : i32
    %413 = arith.index_cast %412 : i32 to index
    %414 = memref.load %arg3[%413] : memref<216xf32, #tpu.memory_space<smem>>
    %c0_124 = arith.constant 0 : index
    %c0_125 = arith.constant 0 : index
    %c0_126 = arith.constant 0 : index
    %c0_127 = arith.constant 0 : index
    %415 = vector.load %arg6[%c0_124, %c0_125, %c0_126, %c0_127] : memref<1x1x64x64xf32, #tpu.memory_space<vmem>>, vector<1x1x64x64xf32>
    %416 = vector.shape_cast %415 : vector<1x1x64x64xf32> to vector<64x64xf32>
    %cst_128 = arith.constant dense<0.000000e+00> : vector<4x64xf32>
    %417 = tpu.matmul %408, %416, %cst_128 {dimension_numbers = #tpu.dot_dimension_numbers<[1], [0], [0], [1], [0, 0, 1, 1], [], []>} : vector<4x64xf32>, vector<64x64xf32>, vector<4x64xf32> -> vector<4x64xf32>
    %418 = vector.broadcast %286 : f32 to vector<4x64xf32>
    %419 = arith.mulf %418, %417 : vector<4x64xf32>
    %cst_129 = arith.constant 5.000000e-01 : f32
    %420 = arith.mulf %290, %cst_129 : f32
    %421 = vector.broadcast %420 : f32 to vector<4x64xf32>
    %422 = arith.mulf %421, %408 : vector<4x64xf32>
    %423 = arith.addf %419, %422 : vector<4x64xf32>
    %424 = vector.broadcast %411 : f32 to vector<4x64xf32>
    %425 = arith.mulf %424, %408 : vector<4x64xf32>
    %426 = arith.addf %191, %425 : vector<4x64xf32>
    %427 = vector.broadcast %411 : f32 to vector<4x64xf32>
    %428 = arith.mulf %427, %423 : vector<4x64xf32>
    %429 = arith.subf %408, %428 : vector<4x64xf32>
    %430 = vector.broadcast %414 : f32 to vector<4x64xf32>
    %431 = arith.mulf %430, %408 : vector<4x64xf32>
    %432 = arith.addf %429, %431 : vector<4x64xf32>
    %c80_i32 = arith.constant 80 : i32
    %433 = arith.addi %c80_i32, %arg1 : i32
    %434 = arith.index_cast %433 : i32 to index
    %435 = memref.load %arg3[%434] : memref<216xf32, #tpu.memory_space<smem>>
    %c116_i32 = arith.constant 116 : i32
    %436 = arith.addi %c116_i32, %arg1 : i32
    %437 = arith.index_cast %436 : i32 to index
    %438 = memref.load %arg3[%437] : memref<216xf32, #tpu.memory_space<smem>>
    %c0_130 = arith.constant 0 : index
    %c0_131 = arith.constant 0 : index
    %c0_132 = arith.constant 0 : index
    %c0_133 = arith.constant 0 : index
    %439 = vector.load %arg6[%c0_130, %c0_131, %c0_132, %c0_133] : memref<1x1x64x64xf32, #tpu.memory_space<vmem>>, vector<1x1x64x64xf32>
    %440 = vector.shape_cast %439 : vector<1x1x64x64xf32> to vector<64x64xf32>
    %cst_134 = arith.constant dense<0.000000e+00> : vector<4x64xf32>
    %441 = tpu.matmul %432, %440, %cst_134 {dimension_numbers = #tpu.dot_dimension_numbers<[1], [0], [0], [1], [0, 0, 1, 1], [], []>} : vector<4x64xf32>, vector<64x64xf32>, vector<4x64xf32> -> vector<4x64xf32>
    %442 = vector.broadcast %286 : f32 to vector<4x64xf32>
    %443 = arith.mulf %442, %441 : vector<4x64xf32>
    %cst_135 = arith.constant 5.000000e-01 : f32
    %444 = arith.mulf %290, %cst_135 : f32
    %445 = vector.broadcast %444 : f32 to vector<4x64xf32>
    %446 = arith.mulf %445, %432 : vector<4x64xf32>
    %447 = arith.addf %443, %446 : vector<4x64xf32>
    %448 = vector.broadcast %435 : f32 to vector<4x64xf32>
    %449 = arith.mulf %448, %432 : vector<4x64xf32>
    %450 = arith.addf %426, %449 : vector<4x64xf32>
    %451 = vector.broadcast %435 : f32 to vector<4x64xf32>
    %452 = arith.mulf %451, %447 : vector<4x64xf32>
    %453 = arith.subf %429, %452 : vector<4x64xf32>
    %454 = vector.broadcast %438 : f32 to vector<4x64xf32>
    %455 = arith.mulf %454, %432 : vector<4x64xf32>
    %456 = arith.addf %453, %455 : vector<4x64xf32>
    %c82_i32 = arith.constant 82 : i32
    %457 = arith.addi %c82_i32, %arg1 : i32
    %458 = arith.index_cast %457 : i32 to index
    %459 = memref.load %arg3[%458] : memref<216xf32, #tpu.memory_space<smem>>
    %460 = vector.broadcast %459 : f32 to vector<4x64xf32>
    %461 = arith.mulf %460, %456 : vector<4x64xf32>
    %462 = arith.addf %450, %461 : vector<4x64xf32>
    %cst_136 = arith.constant 5.000000e-01 : f32
    %463 = vector.broadcast %cst_136 : f32 to vector<4x64xf32>
    %464 = arith.mulf %269, %463 : vector<4x64xf32>
    %cst_137 = arith.constant 5.000000e-01 : f32
    %465 = arith.mulf %291, %cst_137 : f32
    %466 = vector.broadcast %465 : f32 to vector<4x64xf32>
    %467 = arith.mulf %466, %392 : vector<4x64xf32>
    %468 = arith.addf %464, %467 : vector<4x64xf32>
    %c0_138 = arith.constant 0 : index
    %c0_139 = arith.constant 0 : index
    %c0_140 = arith.constant 0 : index
    %c0_141 = arith.constant 0 : index
    %469 = vector.load %arg9[%c0_138, %c0_139, %c0_140, %c0_141] : memref<1x1x64x64xf32, #tpu.memory_space<vmem>>, vector<1x1x64x64xf32>
    %470 = vector.shape_cast %469 : vector<1x1x64x64xf32> to vector<64x64xf32>
    %cst_142 = arith.constant dense<0.000000e+00> : vector<4x64xf32>
    %471 = tpu.matmul %261, %470, %cst_142 {dimension_numbers = #tpu.dot_dimension_numbers<[1], [0], [0], [1], [0, 0, 1, 1], [], []>} : vector<4x64xf32>, vector<64x64xf32>, vector<4x64xf32> -> vector<4x64xf32>
    %472 = vector.broadcast %288 : f32 to vector<4x64xf32>
    %473 = arith.mulf %472, %471 : vector<4x64xf32>
    %cst_143 = arith.constant 5.000000e-01 : f32
    %474 = arith.mulf %291, %cst_143 : f32
    %475 = vector.broadcast %474 : f32 to vector<4x64xf32>
    %476 = arith.mulf %475, %261 : vector<4x64xf32>
    %477 = arith.addf %473, %476 : vector<4x64xf32>
    %478 = arith.subf %468, %477 : vector<4x64xf32>
    %c150_i32 = arith.constant 150 : i32
    %479 = arith.addi %c150_i32, %arg1 : i32
    %480 = arith.index_cast %479 : i32 to index
    %481 = memref.load %arg3[%480] : memref<216xf32, #tpu.memory_space<smem>>
    %c186_i32 = arith.constant 186 : i32
    %482 = arith.addi %c186_i32, %arg1 : i32
    %483 = arith.index_cast %482 : i32 to index
    %484 = memref.load %arg3[%483] : memref<216xf32, #tpu.memory_space<smem>>
    %c0_144 = arith.constant 0 : index
    %c0_145 = arith.constant 0 : index
    %c0_146 = arith.constant 0 : index
    %c0_147 = arith.constant 0 : index
    %485 = vector.load %arg9[%c0_144, %c0_145, %c0_146, %c0_147] : memref<1x1x64x64xf32, #tpu.memory_space<vmem>>, vector<1x1x64x64xf32>
    %486 = vector.shape_cast %485 : vector<1x1x64x64xf32> to vector<64x64xf32>
    %cst_148 = arith.constant dense<0.000000e+00> : vector<4x64xf32>
    %487 = tpu.matmul %478, %486, %cst_148 {dimension_numbers = #tpu.dot_dimension_numbers<[1], [0], [0], [1], [0, 0, 1, 1], [], []>} : vector<4x64xf32>, vector<64x64xf32>, vector<4x64xf32> -> vector<4x64xf32>
    %488 = vector.broadcast %288 : f32 to vector<4x64xf32>
    %489 = arith.mulf %488, %487 : vector<4x64xf32>
    %cst_149 = arith.constant 5.000000e-01 : f32
    %490 = arith.mulf %291, %cst_149 : f32
    %491 = vector.broadcast %490 : f32 to vector<4x64xf32>
    %492 = arith.mulf %491, %478 : vector<4x64xf32>
    %493 = arith.addf %489, %492 : vector<4x64xf32>
    %494 = vector.broadcast %481 : f32 to vector<4x64xf32>
    %495 = arith.mulf %494, %478 : vector<4x64xf32>
    %496 = arith.addf %261, %495 : vector<4x64xf32>
    %497 = vector.broadcast %481 : f32 to vector<4x64xf32>
    %498 = arith.mulf %497, %493 : vector<4x64xf32>
    %499 = arith.subf %478, %498 : vector<4x64xf32>
    %500 = vector.broadcast %484 : f32 to vector<4x64xf32>
    %501 = arith.mulf %500, %478 : vector<4x64xf32>
    %502 = arith.addf %499, %501 : vector<4x64xf32>
    %c152_i32 = arith.constant 152 : i32
    %503 = arith.addi %c152_i32, %arg1 : i32
    %504 = arith.index_cast %503 : i32 to index
    %505 = memref.load %arg3[%504] : memref<216xf32, #tpu.memory_space<smem>>
    %c188_i32 = arith.constant 188 : i32
    %506 = arith.addi %c188_i32, %arg1 : i32
    %507 = arith.index_cast %506 : i32 to index
    %508 = memref.load %arg3[%507] : memref<216xf32, #tpu.memory_space<smem>>
    %c0_150 = arith.constant 0 : index
    %c0_151 = arith.constant 0 : index
    %c0_152 = arith.constant 0 : index
    %c0_153 = arith.constant 0 : index
    %509 = vector.load %arg9[%c0_150, %c0_151, %c0_152, %c0_153] : memref<1x1x64x64xf32, #tpu.memory_space<vmem>>, vector<1x1x64x64xf32>
    %510 = vector.shape_cast %509 : vector<1x1x64x64xf32> to vector<64x64xf32>
    %cst_154 = arith.constant dense<0.000000e+00> : vector<4x64xf32>
    %511 = tpu.matmul %502, %510, %cst_154 {dimension_numbers = #tpu.dot_dimension_numbers<[1], [0], [0], [1], [0, 0, 1, 1], [], []>} : vector<4x64xf32>, vector<64x64xf32>, vector<4x64xf32> -> vector<4x64xf32>
    %512 = vector.broadcast %288 : f32 to vector<4x64xf32>
    %513 = arith.mulf %512, %511 : vector<4x64xf32>
    %cst_155 = arith.constant 5.000000e-01 : f32
    %514 = arith.mulf %291, %cst_155 : f32
    %515 = vector.broadcast %514 : f32 to vector<4x64xf32>
    %516 = arith.mulf %515, %502 : vector<4x64xf32>
    %517 = arith.addf %513, %516 : vector<4x64xf32>
    %518 = vector.broadcast %505 : f32 to vector<4x64xf32>
    %519 = arith.mulf %518, %502 : vector<4x64xf32>
    %520 = arith.addf %496, %519 : vector<4x64xf32>
    %521 = vector.broadcast %505 : f32 to vector<4x64xf32>
    %522 = arith.mulf %521, %517 : vector<4x64xf32>
    %523 = arith.subf %499, %522 : vector<4x64xf32>
    %524 = vector.broadcast %508 : f32 to vector<4x64xf32>
    %525 = arith.mulf %524, %502 : vector<4x64xf32>
    %526 = arith.addf %523, %525 : vector<4x64xf32>
    %c154_i32 = arith.constant 154 : i32
    %527 = arith.addi %c154_i32, %arg1 : i32
    %528 = arith.index_cast %527 : i32 to index
    %529 = memref.load %arg3[%528] : memref<216xf32, #tpu.memory_space<smem>>
    %530 = vector.broadcast %529 : f32 to vector<4x64xf32>
    %531 = arith.mulf %530, %526 : vector<4x64xf32>
    %532 = arith.addf %520, %531 : vector<4x64xf32>
    %533 = arith.subf %392, %462 : vector<4x64xf32>
    %534 = vector.broadcast %290 : f32 to vector<4x64xf32>
    %535 = arith.mulf %534, %533 : vector<4x64xf32>
    %536 = arith.addf %265, %535 : vector<4x64xf32>
    %537 = arith.subf %392, %532 : vector<4x64xf32>
    %538 = vector.broadcast %291 : f32 to vector<4x64xf32>
    %539 = arith.mulf %538, %537 : vector<4x64xf32>
    %540 = arith.addf %269, %539 : vector<4x64xf32>
    %c0_156 = arith.constant 0 : index
    %c0_157 = arith.constant 0 : index
    %c0_158 = arith.constant 0 : index
    %c0_159 = arith.constant 0 : index
    %541 = vector.load %arg7[%c0_156, %c0_157, %c0_158, %c0_159] : memref<1x1x64x64xf32, #tpu.memory_space<vmem>>, vector<1x1x64x64xf32>
    %542 = vector.shape_cast %541 : vector<1x1x64x64xf32> to vector<64x64xf32>
    %cst_160 = arith.constant dense<0.000000e+00> : vector<4x64xf32>
    %543 = tpu.matmul %392, %542, %cst_160 {dimension_numbers = #tpu.dot_dimension_numbers<[1], [0], [0], [1], [0, 0, 1, 1], [], []>} : vector<4x64xf32>, vector<64x64xf32>, vector<4x64xf32> -> vector<4x64xf32>
    %544 = vector.broadcast %292 : f32 to vector<4x64xf32>
    %545 = arith.mulf %285, %544 : vector<4x64xf32>
    %546 = arith.subf %543, %545 : vector<4x64xf32>
    %547 = arith.mulf %287, %292 : f32
    %cst_161 = arith.constant 0.000000e+00 : f32
    %548 = arith.subf %cst_161, %547 : f32
    %549 = vector.broadcast %548 : f32 to vector<4x64xf32>
    %550 = arith.maximumf %549, %546 : vector<4x64xf32>
    %551 = vector.broadcast %547 : f32 to vector<4x64xf32>
    %552 = arith.minimumf %551, %550 : vector<4x64xf32>
    %553 = arith.subf %546, %552 : vector<4x64xf32>
    %554 = arith.subf %553, %546 : vector<4x64xf32>
    %555 = vector.broadcast %289 : f32 to vector<4x64xf32>
    %556 = arith.mulf %555, %554 : vector<4x64xf32>
    %c2 = arith.constant 2 : index
    %557 = memref.load %arg2[%c2] : memref<36xf32, #tpu.memory_space<smem>>
    %c8 = arith.constant 8 : index
    %558 = memref.load %arg2[%c8] : memref<36xf32, #tpu.memory_space<smem>>
    %c14 = arith.constant 14 : index
    %559 = memref.load %arg2[%c14] : memref<36xf32, #tpu.memory_space<smem>>
    %c20 = arith.constant 20 : index
    %560 = memref.load %arg2[%c20] : memref<36xf32, #tpu.memory_space<smem>>
    %c26 = arith.constant 26 : index
    %561 = memref.load %arg2[%c26] : memref<36xf32, #tpu.memory_space<smem>>
    %c32 = arith.constant 32 : index
    %562 = memref.load %arg2[%c32] : memref<36xf32, #tpu.memory_space<smem>>
    %cst_162 = arith.constant 1.000000e+00 : f32
    %563 = arith.divf %cst_162, %560 : f32
    %564 = vector.broadcast %560 : f32 to vector<4x64xf32>
    %565 = arith.mulf %564, %553 : vector<4x64xf32>
    %566 = arith.addf %556, %565 : vector<4x64xf32>
    %c0_163 = arith.constant 0 : index
    %c0_164 = arith.constant 0 : index
    %c0_165 = arith.constant 0 : index
    %c0_166 = arith.constant 0 : index
    %567 = vector.load %arg8[%c0_163, %c0_164, %c0_165, %c0_166] : memref<1x1x64x64xf32, #tpu.memory_space<vmem>>, vector<1x1x64x64xf32>
    %568 = vector.shape_cast %567 : vector<1x1x64x64xf32> to vector<64x64xf32>
    %cst_167 = arith.constant dense<0.000000e+00> : vector<4x64xf32>
    %569 = tpu.matmul %566, %568, %cst_167 {dimension_numbers = #tpu.dot_dimension_numbers<[1], [0], [0], [1], [0, 0, 1, 1], [], []>} : vector<4x64xf32>, vector<64x64xf32>, vector<4x64xf32> -> vector<4x64xf32>
    %cst_168 = arith.constant 5.000000e-01 : f32
    %570 = vector.broadcast %cst_168 : f32 to vector<4x64xf32>
    %571 = arith.mulf %569, %570 : vector<4x64xf32>
    %572 = vector.broadcast %561 : f32 to vector<4x64xf32>
    %573 = arith.mulf %572, %462 : vector<4x64xf32>
    %574 = vector.broadcast %562 : f32 to vector<4x64xf32>
    %575 = arith.mulf %574, %532 : vector<4x64xf32>
    %576 = arith.addf %573, %575 : vector<4x64xf32>
    %cst_169 = arith.constant 5.000000e-01 : f32
    %577 = vector.broadcast %cst_169 : f32 to vector<4x64xf32>
    %578 = arith.mulf %576, %577 : vector<4x64xf32>
    %579 = arith.addf %571, %578 : vector<4x64xf32>
    %580 = arith.addf %536, %540 : vector<4x64xf32>
    %cst_170 = arith.constant 5.000000e-01 : f32
    %581 = vector.broadcast %cst_170 : f32 to vector<4x64xf32>
    %582 = arith.mulf %580, %581 : vector<4x64xf32>
    %583 = arith.subf %579, %582 : vector<4x64xf32>
    %584 = arith.addf %583, %8 : vector<4x64xf32>
    %585 = vector.broadcast %6 : vector<1x64xf32> to vector<4x64xf32>
    %586 = arith.mulf %585, %392 : vector<4x64xf32>
    %587 = arith.addf %561, %562 : f32
    %cst_171 = arith.constant 5.000000e-01 : f32
    %588 = arith.mulf %587, %cst_171 : f32
    %589 = vector.broadcast %588 : f32 to vector<4x64xf32>
    %590 = arith.mulf %589, %392 : vector<4x64xf32>
    %591 = arith.addf %586, %590 : vector<4x64xf32>
    %cst_172 = arith.constant 5.000000e-01 : f32
    %592 = arith.mulf %560, %cst_172 : f32
    %c0_173 = arith.constant 0 : index
    %c0_174 = arith.constant 0 : index
    %c0_175 = arith.constant 0 : index
    %c0_176 = arith.constant 0 : index
    %593 = vector.load %arg9[%c0_173, %c0_174, %c0_175, %c0_176] : memref<1x1x64x64xf32, #tpu.memory_space<vmem>>, vector<1x1x64x64xf32>
    %594 = vector.shape_cast %593 : vector<1x1x64x64xf32> to vector<64x64xf32>
    %cst_177 = arith.constant dense<0.000000e+00> : vector<4x64xf32>
    %595 = tpu.matmul %392, %594, %cst_177 {dimension_numbers = #tpu.dot_dimension_numbers<[1], [0], [0], [1], [0, 0, 1, 1], [], []>} : vector<4x64xf32>, vector<64x64xf32>, vector<4x64xf32> -> vector<4x64xf32>
    %596 = vector.broadcast %592 : f32 to vector<4x64xf32>
    %597 = arith.mulf %596, %595 : vector<4x64xf32>
    %598 = arith.addf %591, %597 : vector<4x64xf32>
    %599 = arith.subf %584, %598 : vector<4x64xf32>
    %c12_i32 = arith.constant 12 : i32
    %600 = arith.addi %c12_i32, %arg1 : i32
    %601 = arith.index_cast %600 : i32 to index
    %602 = memref.load %arg3[%601] : memref<216xf32, #tpu.memory_space<smem>>
    %c48_i32_178 = arith.constant 48 : i32
    %603 = arith.addi %c48_i32_178, %arg1 : i32
    %604 = arith.index_cast %603 : i32 to index
    %605 = memref.load %arg3[%604] : memref<216xf32, #tpu.memory_space<smem>>
    %606 = vector.broadcast %6 : vector<1x64xf32> to vector<4x64xf32>
    %607 = arith.mulf %606, %599 : vector<4x64xf32>
    %608 = arith.addf %561, %562 : f32
    %cst_179 = arith.constant 5.000000e-01 : f32
    %609 = arith.mulf %608, %cst_179 : f32
    %610 = vector.broadcast %609 : f32 to vector<4x64xf32>
    %611 = arith.mulf %610, %599 : vector<4x64xf32>
    %612 = arith.addf %607, %611 : vector<4x64xf32>
    %cst_180 = arith.constant 5.000000e-01 : f32
    %613 = arith.mulf %560, %cst_180 : f32
    %c0_181 = arith.constant 0 : index
    %c0_182 = arith.constant 0 : index
    %c0_183 = arith.constant 0 : index
    %c0_184 = arith.constant 0 : index
    %614 = vector.load %arg9[%c0_181, %c0_182, %c0_183, %c0_184] : memref<1x1x64x64xf32, #tpu.memory_space<vmem>>, vector<1x1x64x64xf32>
    %615 = vector.shape_cast %614 : vector<1x1x64x64xf32> to vector<64x64xf32>
    %cst_185 = arith.constant dense<0.000000e+00> : vector<4x64xf32>
    %616 = tpu.matmul %599, %615, %cst_185 {dimension_numbers = #tpu.dot_dimension_numbers<[1], [0], [0], [1], [0, 0, 1, 1], [], []>} : vector<4x64xf32>, vector<64x64xf32>, vector<4x64xf32> -> vector<4x64xf32>
    %617 = vector.broadcast %613 : f32 to vector<4x64xf32>
    %618 = arith.mulf %617, %616 : vector<4x64xf32>
    %619 = arith.addf %612, %618 : vector<4x64xf32>
    %620 = vector.broadcast %602 : f32 to vector<4x64xf32>
    %621 = arith.mulf %620, %599 : vector<4x64xf32>
    %622 = arith.addf %392, %621 : vector<4x64xf32>
    %623 = vector.broadcast %602 : f32 to vector<4x64xf32>
    %624 = arith.mulf %623, %619 : vector<4x64xf32>
    %625 = arith.subf %599, %624 : vector<4x64xf32>
    %626 = vector.broadcast %605 : f32 to vector<4x64xf32>
    %627 = arith.mulf %626, %599 : vector<4x64xf32>
    %628 = arith.addf %625, %627 : vector<4x64xf32>
    %c14_i32 = arith.constant 14 : i32
    %629 = arith.addi %c14_i32, %arg1 : i32
    %630 = arith.index_cast %629 : i32 to index
    %631 = memref.load %arg3[%630] : memref<216xf32, #tpu.memory_space<smem>>
    %c50_i32 = arith.constant 50 : i32
    %632 = arith.addi %c50_i32, %arg1 : i32
    %633 = arith.index_cast %632 : i32 to index
    %634 = memref.load %arg3[%633] : memref<216xf32, #tpu.memory_space<smem>>
    %635 = vector.broadcast %6 : vector<1x64xf32> to vector<4x64xf32>
    %636 = arith.mulf %635, %628 : vector<4x64xf32>
    %637 = arith.addf %561, %562 : f32
    %cst_186 = arith.constant 5.000000e-01 : f32
    %638 = arith.mulf %637, %cst_186 : f32
    %639 = vector.broadcast %638 : f32 to vector<4x64xf32>
    %640 = arith.mulf %639, %628 : vector<4x64xf32>
    %641 = arith.addf %636, %640 : vector<4x64xf32>
    %cst_187 = arith.constant 5.000000e-01 : f32
    %642 = arith.mulf %560, %cst_187 : f32
    %c0_188 = arith.constant 0 : index
    %c0_189 = arith.constant 0 : index
    %c0_190 = arith.constant 0 : index
    %c0_191 = arith.constant 0 : index
    %643 = vector.load %arg9[%c0_188, %c0_189, %c0_190, %c0_191] : memref<1x1x64x64xf32, #tpu.memory_space<vmem>>, vector<1x1x64x64xf32>
    %644 = vector.shape_cast %643 : vector<1x1x64x64xf32> to vector<64x64xf32>
    %cst_192 = arith.constant dense<0.000000e+00> : vector<4x64xf32>
    %645 = tpu.matmul %628, %644, %cst_192 {dimension_numbers = #tpu.dot_dimension_numbers<[1], [0], [0], [1], [0, 0, 1, 1], [], []>} : vector<4x64xf32>, vector<64x64xf32>, vector<4x64xf32> -> vector<4x64xf32>
    %646 = vector.broadcast %642 : f32 to vector<4x64xf32>
    %647 = arith.mulf %646, %645 : vector<4x64xf32>
    %648 = arith.addf %641, %647 : vector<4x64xf32>
    %649 = vector.broadcast %631 : f32 to vector<4x64xf32>
    %650 = arith.mulf %649, %628 : vector<4x64xf32>
    %651 = arith.addf %622, %650 : vector<4x64xf32>
    %652 = vector.broadcast %631 : f32 to vector<4x64xf32>
    %653 = arith.mulf %652, %648 : vector<4x64xf32>
    %654 = arith.subf %625, %653 : vector<4x64xf32>
    %655 = vector.broadcast %634 : f32 to vector<4x64xf32>
    %656 = arith.mulf %655, %628 : vector<4x64xf32>
    %657 = arith.addf %654, %656 : vector<4x64xf32>
    %c16_i32 = arith.constant 16 : i32
    %658 = arith.addi %c16_i32, %arg1 : i32
    %659 = arith.index_cast %658 : i32 to index
    %660 = memref.load %arg3[%659] : memref<216xf32, #tpu.memory_space<smem>>
    %661 = vector.broadcast %660 : f32 to vector<4x64xf32>
    %662 = arith.mulf %661, %657 : vector<4x64xf32>
    %663 = arith.addf %651, %662 : vector<4x64xf32>
    %cst_193 = arith.constant 5.000000e-01 : f32
    %664 = vector.broadcast %cst_193 : f32 to vector<4x64xf32>
    %665 = arith.mulf %536, %664 : vector<4x64xf32>
    %cst_194 = arith.constant 5.000000e-01 : f32
    %666 = arith.mulf %561, %cst_194 : f32
    %667 = vector.broadcast %666 : f32 to vector<4x64xf32>
    %668 = arith.mulf %667, %663 : vector<4x64xf32>
    %669 = arith.addf %665, %668 : vector<4x64xf32>
    %c0_195 = arith.constant 0 : index
    %c0_196 = arith.constant 0 : index
    %c0_197 = arith.constant 0 : index
    %c0_198 = arith.constant 0 : index
    %670 = vector.load %arg6[%c0_195, %c0_196, %c0_197, %c0_198] : memref<1x1x64x64xf32, #tpu.memory_space<vmem>>, vector<1x1x64x64xf32>
    %671 = vector.shape_cast %670 : vector<1x1x64x64xf32> to vector<64x64xf32>
    %cst_199 = arith.constant dense<0.000000e+00> : vector<4x64xf32>
    %672 = tpu.matmul %462, %671, %cst_199 {dimension_numbers = #tpu.dot_dimension_numbers<[1], [0], [0], [1], [0, 0, 1, 1], [], []>} : vector<4x64xf32>, vector<64x64xf32>, vector<4x64xf32> -> vector<4x64xf32>
    %673 = vector.broadcast %557 : f32 to vector<4x64xf32>
    %674 = arith.mulf %673, %672 : vector<4x64xf32>
    %cst_200 = arith.constant 5.000000e-01 : f32
    %675 = arith.mulf %561, %cst_200 : f32
    %676 = vector.broadcast %675 : f32 to vector<4x64xf32>
    %677 = arith.mulf %676, %462 : vector<4x64xf32>
    %678 = arith.addf %674, %677 : vector<4x64xf32>
    %679 = arith.subf %669, %678 : vector<4x64xf32>
    %c84_i32 = arith.constant 84 : i32
    %680 = arith.addi %c84_i32, %arg1 : i32
    %681 = arith.index_cast %680 : i32 to index
    %682 = memref.load %arg3[%681] : memref<216xf32, #tpu.memory_space<smem>>
    %c120_i32 = arith.constant 120 : i32
    %683 = arith.addi %c120_i32, %arg1 : i32
    %684 = arith.index_cast %683 : i32 to index
    %685 = memref.load %arg3[%684] : memref<216xf32, #tpu.memory_space<smem>>
    %c0_201 = arith.constant 0 : index
    %c0_202 = arith.constant 0 : index
    %c0_203 = arith.constant 0 : index
    %c0_204 = arith.constant 0 : index
    %686 = vector.load %arg6[%c0_201, %c0_202, %c0_203, %c0_204] : memref<1x1x64x64xf32, #tpu.memory_space<vmem>>, vector<1x1x64x64xf32>
    %687 = vector.shape_cast %686 : vector<1x1x64x64xf32> to vector<64x64xf32>
    %cst_205 = arith.constant dense<0.000000e+00> : vector<4x64xf32>
    %688 = tpu.matmul %679, %687, %cst_205 {dimension_numbers = #tpu.dot_dimension_numbers<[1], [0], [0], [1], [0, 0, 1, 1], [], []>} : vector<4x64xf32>, vector<64x64xf32>, vector<4x64xf32> -> vector<4x64xf32>
    %689 = vector.broadcast %557 : f32 to vector<4x64xf32>
    %690 = arith.mulf %689, %688 : vector<4x64xf32>
    %cst_206 = arith.constant 5.000000e-01 : f32
    %691 = arith.mulf %561, %cst_206 : f32
    %692 = vector.broadcast %691 : f32 to vector<4x64xf32>
    %693 = arith.mulf %692, %679 : vector<4x64xf32>
    %694 = arith.addf %690, %693 : vector<4x64xf32>
    %695 = vector.broadcast %682 : f32 to vector<4x64xf32>
    %696 = arith.mulf %695, %679 : vector<4x64xf32>
    %697 = arith.addf %462, %696 : vector<4x64xf32>
    %698 = vector.broadcast %682 : f32 to vector<4x64xf32>
    %699 = arith.mulf %698, %694 : vector<4x64xf32>
    %700 = arith.subf %679, %699 : vector<4x64xf32>
    %701 = vector.broadcast %685 : f32 to vector<4x64xf32>
    %702 = arith.mulf %701, %679 : vector<4x64xf32>
    %703 = arith.addf %700, %702 : vector<4x64xf32>
    %c86_i32 = arith.constant 86 : i32
    %704 = arith.addi %c86_i32, %arg1 : i32
    %705 = arith.index_cast %704 : i32 to index
    %706 = memref.load %arg3[%705] : memref<216xf32, #tpu.memory_space<smem>>
    %c122_i32 = arith.constant 122 : i32
    %707 = arith.addi %c122_i32, %arg1 : i32
    %708 = arith.index_cast %707 : i32 to index
    %709 = memref.load %arg3[%708] : memref<216xf32, #tpu.memory_space<smem>>
    %c0_207 = arith.constant 0 : index
    %c0_208 = arith.constant 0 : index
    %c0_209 = arith.constant 0 : index
    %c0_210 = arith.constant 0 : index
    %710 = vector.load %arg6[%c0_207, %c0_208, %c0_209, %c0_210] : memref<1x1x64x64xf32, #tpu.memory_space<vmem>>, vector<1x1x64x64xf32>
    %711 = vector.shape_cast %710 : vector<1x1x64x64xf32> to vector<64x64xf32>
    %cst_211 = arith.constant dense<0.000000e+00> : vector<4x64xf32>
    %712 = tpu.matmul %703, %711, %cst_211 {dimension_numbers = #tpu.dot_dimension_numbers<[1], [0], [0], [1], [0, 0, 1, 1], [], []>} : vector<4x64xf32>, vector<64x64xf32>, vector<4x64xf32> -> vector<4x64xf32>
    %713 = vector.broadcast %557 : f32 to vector<4x64xf32>
    %714 = arith.mulf %713, %712 : vector<4x64xf32>
    %cst_212 = arith.constant 5.000000e-01 : f32
    %715 = arith.mulf %561, %cst_212 : f32
    %716 = vector.broadcast %715 : f32 to vector<4x64xf32>
    %717 = arith.mulf %716, %703 : vector<4x64xf32>
    %718 = arith.addf %714, %717 : vector<4x64xf32>
    %719 = vector.broadcast %706 : f32 to vector<4x64xf32>
    %720 = arith.mulf %719, %703 : vector<4x64xf32>
    %721 = arith.addf %697, %720 : vector<4x64xf32>
    %722 = vector.broadcast %706 : f32 to vector<4x64xf32>
    %723 = arith.mulf %722, %718 : vector<4x64xf32>
    %724 = arith.subf %700, %723 : vector<4x64xf32>
    %725 = vector.broadcast %709 : f32 to vector<4x64xf32>
    %726 = arith.mulf %725, %703 : vector<4x64xf32>
    %727 = arith.addf %724, %726 : vector<4x64xf32>
    %c88_i32 = arith.constant 88 : i32
    %728 = arith.addi %c88_i32, %arg1 : i32
    %729 = arith.index_cast %728 : i32 to index
    %730 = memref.load %arg3[%729] : memref<216xf32, #tpu.memory_space<smem>>
    %731 = vector.broadcast %730 : f32 to vector<4x64xf32>
    %732 = arith.mulf %731, %727 : vector<4x64xf32>
    %733 = arith.addf %721, %732 : vector<4x64xf32>
    %cst_213 = arith.constant 5.000000e-01 : f32
    %734 = vector.broadcast %cst_213 : f32 to vector<4x64xf32>
    %735 = arith.mulf %540, %734 : vector<4x64xf32>
    %cst_214 = arith.constant 5.000000e-01 : f32
    %736 = arith.mulf %562, %cst_214 : f32
    %737 = vector.broadcast %736 : f32 to vector<4x64xf32>
    %738 = arith.mulf %737, %663 : vector<4x64xf32>
    %739 = arith.addf %735, %738 : vector<4x64xf32>
    %c0_215 = arith.constant 0 : index
    %c0_216 = arith.constant 0 : index
    %c0_217 = arith.constant 0 : index
    %c0_218 = arith.constant 0 : index
    %740 = vector.load %arg9[%c0_215, %c0_216, %c0_217, %c0_218] : memref<1x1x64x64xf32, #tpu.memory_space<vmem>>, vector<1x1x64x64xf32>
    %741 = vector.shape_cast %740 : vector<1x1x64x64xf32> to vector<64x64xf32>
    %cst_219 = arith.constant dense<0.000000e+00> : vector<4x64xf32>
    %742 = tpu.matmul %532, %741, %cst_219 {dimension_numbers = #tpu.dot_dimension_numbers<[1], [0], [0], [1], [0, 0, 1, 1], [], []>} : vector<4x64xf32>, vector<64x64xf32>, vector<4x64xf32> -> vector<4x64xf32>
    %743 = vector.broadcast %559 : f32 to vector<4x64xf32>
    %744 = arith.mulf %743, %742 : vector<4x64xf32>
    %cst_220 = arith.constant 5.000000e-01 : f32
    %745 = arith.mulf %562, %cst_220 : f32
    %746 = vector.broadcast %745 : f32 to vector<4x64xf32>
    %747 = arith.mulf %746, %532 : vector<4x64xf32>
    %748 = arith.addf %744, %747 : vector<4x64xf32>
    %749 = arith.subf %739, %748 : vector<4x64xf32>
    %c156_i32 = arith.constant 156 : i32
    %750 = arith.addi %c156_i32, %arg1 : i32
    %751 = arith.index_cast %750 : i32 to index
    %752 = memref.load %arg3[%751] : memref<216xf32, #tpu.memory_space<smem>>
    %c192_i32 = arith.constant 192 : i32
    %753 = arith.addi %c192_i32, %arg1 : i32
    %754 = arith.index_cast %753 : i32 to index
    %755 = memref.load %arg3[%754] : memref<216xf32, #tpu.memory_space<smem>>
    %c0_221 = arith.constant 0 : index
    %c0_222 = arith.constant 0 : index
    %c0_223 = arith.constant 0 : index
    %c0_224 = arith.constant 0 : index
    %756 = vector.load %arg9[%c0_221, %c0_222, %c0_223, %c0_224] : memref<1x1x64x64xf32, #tpu.memory_space<vmem>>, vector<1x1x64x64xf32>
    %757 = vector.shape_cast %756 : vector<1x1x64x64xf32> to vector<64x64xf32>
    %cst_225 = arith.constant dense<0.000000e+00> : vector<4x64xf32>
    %758 = tpu.matmul %749, %757, %cst_225 {dimension_numbers = #tpu.dot_dimension_numbers<[1], [0], [0], [1], [0, 0, 1, 1], [], []>} : vector<4x64xf32>, vector<64x64xf32>, vector<4x64xf32> -> vector<4x64xf32>
    %759 = vector.broadcast %559 : f32 to vector<4x64xf32>
    %760 = arith.mulf %759, %758 : vector<4x64xf32>
    %cst_226 = arith.constant 5.000000e-01 : f32
    %761 = arith.mulf %562, %cst_226 : f32
    %762 = vector.broadcast %761 : f32 to vector<4x64xf32>
    %763 = arith.mulf %762, %749 : vector<4x64xf32>
    %764 = arith.addf %760, %763 : vector<4x64xf32>
    %765 = vector.broadcast %752 : f32 to vector<4x64xf32>
    %766 = arith.mulf %765, %749 : vector<4x64xf32>
    %767 = arith.addf %532, %766 : vector<4x64xf32>
    %768 = vector.broadcast %752 : f32 to vector<4x64xf32>
    %769 = arith.mulf %768, %764 : vector<4x64xf32>
    %770 = arith.subf %749, %769 : vector<4x64xf32>
    %771 = vector.broadcast %755 : f32 to vector<4x64xf32>
    %772 = arith.mulf %771, %749 : vector<4x64xf32>
    %773 = arith.addf %770, %772 : vector<4x64xf32>
    %c158_i32 = arith.constant 158 : i32
    %774 = arith.addi %c158_i32, %arg1 : i32
    %775 = arith.index_cast %774 : i32 to index
    %776 = memref.load %arg3[%775] : memref<216xf32, #tpu.memory_space<smem>>
    %c194_i32 = arith.constant 194 : i32
    %777 = arith.addi %c194_i32, %arg1 : i32
    %778 = arith.index_cast %777 : i32 to index
    %779 = memref.load %arg3[%778] : memref<216xf32, #tpu.memory_space<smem>>
    %c0_227 = arith.constant 0 : index
    %c0_228 = arith.constant 0 : index
    %c0_229 = arith.constant 0 : index
    %c0_230 = arith.constant 0 : index
    %780 = vector.load %arg9[%c0_227, %c0_228, %c0_229, %c0_230] : memref<1x1x64x64xf32, #tpu.memory_space<vmem>>, vector<1x1x64x64xf32>
    %781 = vector.shape_cast %780 : vector<1x1x64x64xf32> to vector<64x64xf32>
    %cst_231 = arith.constant dense<0.000000e+00> : vector<4x64xf32>
    %782 = tpu.matmul %773, %781, %cst_231 {dimension_numbers = #tpu.dot_dimension_numbers<[1], [0], [0], [1], [0, 0, 1, 1], [], []>} : vector<4x64xf32>, vector<64x64xf32>, vector<4x64xf32> -> vector<4x64xf32>
    %783 = vector.broadcast %559 : f32 to vector<4x64xf32>
    %784 = arith.mulf %783, %782 : vector<4x64xf32>
    %cst_232 = arith.constant 5.000000e-01 : f32
    %785 = arith.mulf %562, %cst_232 : f32
    %786 = vector.broadcast %785 : f32 to vector<4x64xf32>
    %787 = arith.mulf %786, %773 : vector<4x64xf32>
    %788 = arith.addf %784, %787 : vector<4x64xf32>
    %789 = vector.broadcast %776 : f32 to vector<4x64xf32>
    %790 = arith.mulf %789, %773 : vector<4x64xf32>
    %791 = arith.addf %767, %790 : vector<4x64xf32>
    %792 = vector.broadcast %776 : f32 to vector<4x64xf32>
    %793 = arith.mulf %792, %788 : vector<4x64xf32>
    %794 = arith.subf %770, %793 : vector<4x64xf32>
    %795 = vector.broadcast %779 : f32 to vector<4x64xf32>
    %796 = arith.mulf %795, %773 : vector<4x64xf32>
    %797 = arith.addf %794, %796 : vector<4x64xf32>
    %c160_i32 = arith.constant 160 : i32
    %798 = arith.addi %c160_i32, %arg1 : i32
    %799 = arith.index_cast %798 : i32 to index
    %800 = memref.load %arg3[%799] : memref<216xf32, #tpu.memory_space<smem>>
    %801 = vector.broadcast %800 : f32 to vector<4x64xf32>
    %802 = arith.mulf %801, %797 : vector<4x64xf32>
    %803 = arith.addf %791, %802 : vector<4x64xf32>
    %804 = arith.subf %663, %733 : vector<4x64xf32>
    %805 = vector.broadcast %561 : f32 to vector<4x64xf32>
    %806 = arith.mulf %805, %804 : vector<4x64xf32>
    %807 = arith.addf %536, %806 : vector<4x64xf32>
    %808 = arith.subf %663, %803 : vector<4x64xf32>
    %809 = vector.broadcast %562 : f32 to vector<4x64xf32>
    %810 = arith.mulf %809, %808 : vector<4x64xf32>
    %811 = arith.addf %540, %810 : vector<4x64xf32>
    %c0_233 = arith.constant 0 : index
    %c0_234 = arith.constant 0 : index
    %c0_235 = arith.constant 0 : index
    %c0_236 = arith.constant 0 : index
    %812 = vector.load %arg7[%c0_233, %c0_234, %c0_235, %c0_236] : memref<1x1x64x64xf32, #tpu.memory_space<vmem>>, vector<1x1x64x64xf32>
    %813 = vector.shape_cast %812 : vector<1x1x64x64xf32> to vector<64x64xf32>
    %cst_237 = arith.constant dense<0.000000e+00> : vector<4x64xf32>
    %814 = tpu.matmul %663, %813, %cst_237 {dimension_numbers = #tpu.dot_dimension_numbers<[1], [0], [0], [1], [0, 0, 1, 1], [], []>} : vector<4x64xf32>, vector<64x64xf32>, vector<4x64xf32> -> vector<4x64xf32>
    %815 = vector.broadcast %563 : f32 to vector<4x64xf32>
    %816 = arith.mulf %556, %815 : vector<4x64xf32>
    %817 = arith.subf %814, %816 : vector<4x64xf32>
    %818 = arith.mulf %558, %563 : f32
    %cst_238 = arith.constant 0.000000e+00 : f32
    %819 = arith.subf %cst_238, %818 : f32
    %820 = vector.broadcast %819 : f32 to vector<4x64xf32>
    %821 = arith.maximumf %820, %817 : vector<4x64xf32>
    %822 = vector.broadcast %818 : f32 to vector<4x64xf32>
    %823 = arith.minimumf %822, %821 : vector<4x64xf32>
    %824 = arith.subf %817, %823 : vector<4x64xf32>
    %825 = arith.subf %824, %817 : vector<4x64xf32>
    %826 = vector.broadcast %560 : f32 to vector<4x64xf32>
    %827 = arith.mulf %826, %825 : vector<4x64xf32>
    %c3 = arith.constant 3 : index
    %828 = memref.load %arg2[%c3] : memref<36xf32, #tpu.memory_space<smem>>
    %c9 = arith.constant 9 : index
    %829 = memref.load %arg2[%c9] : memref<36xf32, #tpu.memory_space<smem>>
    %c15 = arith.constant 15 : index
    %830 = memref.load %arg2[%c15] : memref<36xf32, #tpu.memory_space<smem>>
    %c21 = arith.constant 21 : index
    %831 = memref.load %arg2[%c21] : memref<36xf32, #tpu.memory_space<smem>>
    %c27 = arith.constant 27 : index
    %832 = memref.load %arg2[%c27] : memref<36xf32, #tpu.memory_space<smem>>
    %c33 = arith.constant 33 : index
    %833 = memref.load %arg2[%c33] : memref<36xf32, #tpu.memory_space<smem>>
    %cst_239 = arith.constant 1.000000e+00 : f32
    %834 = arith.divf %cst_239, %831 : f32
    %835 = vector.broadcast %831 : f32 to vector<4x64xf32>
    %836 = arith.mulf %835, %824 : vector<4x64xf32>
    %837 = arith.addf %827, %836 : vector<4x64xf32>
    %c0_240 = arith.constant 0 : index
    %c0_241 = arith.constant 0 : index
    %c0_242 = arith.constant 0 : index
    %c0_243 = arith.constant 0 : index
    %838 = vector.load %arg8[%c0_240, %c0_241, %c0_242, %c0_243] : memref<1x1x64x64xf32, #tpu.memory_space<vmem>>, vector<1x1x64x64xf32>
    %839 = vector.shape_cast %838 : vector<1x1x64x64xf32> to vector<64x64xf32>
    %cst_244 = arith.constant dense<0.000000e+00> : vector<4x64xf32>
    %840 = tpu.matmul %837, %839, %cst_244 {dimension_numbers = #tpu.dot_dimension_numbers<[1], [0], [0], [1], [0, 0, 1, 1], [], []>} : vector<4x64xf32>, vector<64x64xf32>, vector<4x64xf32> -> vector<4x64xf32>
    %cst_245 = arith.constant 5.000000e-01 : f32
    %841 = vector.broadcast %cst_245 : f32 to vector<4x64xf32>
    %842 = arith.mulf %840, %841 : vector<4x64xf32>
    %843 = vector.broadcast %832 : f32 to vector<4x64xf32>
    %844 = arith.mulf %843, %733 : vector<4x64xf32>
    %845 = vector.broadcast %833 : f32 to vector<4x64xf32>
    %846 = arith.mulf %845, %803 : vector<4x64xf32>
    %847 = arith.addf %844, %846 : vector<4x64xf32>
    %cst_246 = arith.constant 5.000000e-01 : f32
    %848 = vector.broadcast %cst_246 : f32 to vector<4x64xf32>
    %849 = arith.mulf %847, %848 : vector<4x64xf32>
    %850 = arith.addf %842, %849 : vector<4x64xf32>
    %851 = arith.addf %807, %811 : vector<4x64xf32>
    %cst_247 = arith.constant 5.000000e-01 : f32
    %852 = vector.broadcast %cst_247 : f32 to vector<4x64xf32>
    %853 = arith.mulf %851, %852 : vector<4x64xf32>
    %854 = arith.subf %850, %853 : vector<4x64xf32>
    %855 = arith.addf %854, %8 : vector<4x64xf32>
    %856 = vector.broadcast %6 : vector<1x64xf32> to vector<4x64xf32>
    %857 = arith.mulf %856, %663 : vector<4x64xf32>
    %858 = arith.addf %832, %833 : f32
    %cst_248 = arith.constant 5.000000e-01 : f32
    %859 = arith.mulf %858, %cst_248 : f32
    %860 = vector.broadcast %859 : f32 to vector<4x64xf32>
    %861 = arith.mulf %860, %663 : vector<4x64xf32>
    %862 = arith.addf %857, %861 : vector<4x64xf32>
    %cst_249 = arith.constant 5.000000e-01 : f32
    %863 = arith.mulf %831, %cst_249 : f32
    %c0_250 = arith.constant 0 : index
    %c0_251 = arith.constant 0 : index
    %c0_252 = arith.constant 0 : index
    %c0_253 = arith.constant 0 : index
    %864 = vector.load %arg9[%c0_250, %c0_251, %c0_252, %c0_253] : memref<1x1x64x64xf32, #tpu.memory_space<vmem>>, vector<1x1x64x64xf32>
    %865 = vector.shape_cast %864 : vector<1x1x64x64xf32> to vector<64x64xf32>
    %cst_254 = arith.constant dense<0.000000e+00> : vector<4x64xf32>
    %866 = tpu.matmul %663, %865, %cst_254 {dimension_numbers = #tpu.dot_dimension_numbers<[1], [0], [0], [1], [0, 0, 1, 1], [], []>} : vector<4x64xf32>, vector<64x64xf32>, vector<4x64xf32> -> vector<4x64xf32>
    %867 = vector.broadcast %863 : f32 to vector<4x64xf32>
    %868 = arith.mulf %867, %866 : vector<4x64xf32>
    %869 = arith.addf %862, %868 : vector<4x64xf32>
    %870 = arith.subf %855, %869 : vector<4x64xf32>
    %c18_i32 = arith.constant 18 : i32
    %871 = arith.addi %c18_i32, %arg1 : i32
    %872 = arith.index_cast %871 : i32 to index
    %873 = memref.load %arg3[%872] : memref<216xf32, #tpu.memory_space<smem>>
    %c54_i32 = arith.constant 54 : i32
    %874 = arith.addi %c54_i32, %arg1 : i32
    %875 = arith.index_cast %874 : i32 to index
    %876 = memref.load %arg3[%875] : memref<216xf32, #tpu.memory_space<smem>>
    %877 = vector.broadcast %6 : vector<1x64xf32> to vector<4x64xf32>
    %878 = arith.mulf %877, %870 : vector<4x64xf32>
    %879 = arith.addf %832, %833 : f32
    %cst_255 = arith.constant 5.000000e-01 : f32
    %880 = arith.mulf %879, %cst_255 : f32
    %881 = vector.broadcast %880 : f32 to vector<4x64xf32>
    %882 = arith.mulf %881, %870 : vector<4x64xf32>
    %883 = arith.addf %878, %882 : vector<4x64xf32>
    %cst_256 = arith.constant 5.000000e-01 : f32
    %884 = arith.mulf %831, %cst_256 : f32
    %c0_257 = arith.constant 0 : index
    %c0_258 = arith.constant 0 : index
    %c0_259 = arith.constant 0 : index
    %c0_260 = arith.constant 0 : index
    %885 = vector.load %arg9[%c0_257, %c0_258, %c0_259, %c0_260] : memref<1x1x64x64xf32, #tpu.memory_space<vmem>>, vector<1x1x64x64xf32>
    %886 = vector.shape_cast %885 : vector<1x1x64x64xf32> to vector<64x64xf32>
    %cst_261 = arith.constant dense<0.000000e+00> : vector<4x64xf32>
    %887 = tpu.matmul %870, %886, %cst_261 {dimension_numbers = #tpu.dot_dimension_numbers<[1], [0], [0], [1], [0, 0, 1, 1], [], []>} : vector<4x64xf32>, vector<64x64xf32>, vector<4x64xf32> -> vector<4x64xf32>
    %888 = vector.broadcast %884 : f32 to vector<4x64xf32>
    %889 = arith.mulf %888, %887 : vector<4x64xf32>
    %890 = arith.addf %883, %889 : vector<4x64xf32>
    %891 = vector.broadcast %873 : f32 to vector<4x64xf32>
    %892 = arith.mulf %891, %870 : vector<4x64xf32>
    %893 = arith.addf %663, %892 : vector<4x64xf32>
    %894 = vector.broadcast %873 : f32 to vector<4x64xf32>
    %895 = arith.mulf %894, %890 : vector<4x64xf32>
    %896 = arith.subf %870, %895 : vector<4x64xf32>
    %897 = vector.broadcast %876 : f32 to vector<4x64xf32>
    %898 = arith.mulf %897, %870 : vector<4x64xf32>
    %899 = arith.addf %896, %898 : vector<4x64xf32>
    %c20_i32 = arith.constant 20 : i32
    %900 = arith.addi %c20_i32, %arg1 : i32
    %901 = arith.index_cast %900 : i32 to index
    %902 = memref.load %arg3[%901] : memref<216xf32, #tpu.memory_space<smem>>
    %c56_i32 = arith.constant 56 : i32
    %903 = arith.addi %c56_i32, %arg1 : i32
    %904 = arith.index_cast %903 : i32 to index
    %905 = memref.load %arg3[%904] : memref<216xf32, #tpu.memory_space<smem>>
    %906 = vector.broadcast %6 : vector<1x64xf32> to vector<4x64xf32>
    %907 = arith.mulf %906, %899 : vector<4x64xf32>
    %908 = arith.addf %832, %833 : f32
    %cst_262 = arith.constant 5.000000e-01 : f32
    %909 = arith.mulf %908, %cst_262 : f32
    %910 = vector.broadcast %909 : f32 to vector<4x64xf32>
    %911 = arith.mulf %910, %899 : vector<4x64xf32>
    %912 = arith.addf %907, %911 : vector<4x64xf32>
    %cst_263 = arith.constant 5.000000e-01 : f32
    %913 = arith.mulf %831, %cst_263 : f32
    %c0_264 = arith.constant 0 : index
    %c0_265 = arith.constant 0 : index
    %c0_266 = arith.constant 0 : index
    %c0_267 = arith.constant 0 : index
    %914 = vector.load %arg9[%c0_264, %c0_265, %c0_266, %c0_267] : memref<1x1x64x64xf32, #tpu.memory_space<vmem>>, vector<1x1x64x64xf32>
    %915 = vector.shape_cast %914 : vector<1x1x64x64xf32> to vector<64x64xf32>
    %cst_268 = arith.constant dense<0.000000e+00> : vector<4x64xf32>
    %916 = tpu.matmul %899, %915, %cst_268 {dimension_numbers = #tpu.dot_dimension_numbers<[1], [0], [0], [1], [0, 0, 1, 1], [], []>} : vector<4x64xf32>, vector<64x64xf32>, vector<4x64xf32> -> vector<4x64xf32>
    %917 = vector.broadcast %913 : f32 to vector<4x64xf32>
    %918 = arith.mulf %917, %916 : vector<4x64xf32>
    %919 = arith.addf %912, %918 : vector<4x64xf32>
    %920 = vector.broadcast %902 : f32 to vector<4x64xf32>
    %921 = arith.mulf %920, %899 : vector<4x64xf32>
    %922 = arith.addf %893, %921 : vector<4x64xf32>
    %923 = vector.broadcast %902 : f32 to vector<4x64xf32>
    %924 = arith.mulf %923, %919 : vector<4x64xf32>
    %925 = arith.subf %896, %924 : vector<4x64xf32>
    %926 = vector.broadcast %905 : f32 to vector<4x64xf32>
    %927 = arith.mulf %926, %899 : vector<4x64xf32>
    %928 = arith.addf %925, %927 : vector<4x64xf32>
    %c22_i32 = arith.constant 22 : i32
    %929 = arith.addi %c22_i32, %arg1 : i32
    %930 = arith.index_cast %929 : i32 to index
    %931 = memref.load %arg3[%930] : memref<216xf32, #tpu.memory_space<smem>>
    %932 = vector.broadcast %931 : f32 to vector<4x64xf32>
    %933 = arith.mulf %932, %928 : vector<4x64xf32>
    %934 = arith.addf %922, %933 : vector<4x64xf32>
    %cst_269 = arith.constant 5.000000e-01 : f32
    %935 = vector.broadcast %cst_269 : f32 to vector<4x64xf32>
    %936 = arith.mulf %807, %935 : vector<4x64xf32>
    %cst_270 = arith.constant 5.000000e-01 : f32
    %937 = arith.mulf %832, %cst_270 : f32
    %938 = vector.broadcast %937 : f32 to vector<4x64xf32>
    %939 = arith.mulf %938, %934 : vector<4x64xf32>
    %940 = arith.addf %936, %939 : vector<4x64xf32>
    %c0_271 = arith.constant 0 : index
    %c0_272 = arith.constant 0 : index
    %c0_273 = arith.constant 0 : index
    %c0_274 = arith.constant 0 : index
    %941 = vector.load %arg6[%c0_271, %c0_272, %c0_273, %c0_274] : memref<1x1x64x64xf32, #tpu.memory_space<vmem>>, vector<1x1x64x64xf32>
    %942 = vector.shape_cast %941 : vector<1x1x64x64xf32> to vector<64x64xf32>
    %cst_275 = arith.constant dense<0.000000e+00> : vector<4x64xf32>
    %943 = tpu.matmul %733, %942, %cst_275 {dimension_numbers = #tpu.dot_dimension_numbers<[1], [0], [0], [1], [0, 0, 1, 1], [], []>} : vector<4x64xf32>, vector<64x64xf32>, vector<4x64xf32> -> vector<4x64xf32>
    %944 = vector.broadcast %828 : f32 to vector<4x64xf32>
    %945 = arith.mulf %944, %943 : vector<4x64xf32>
    %cst_276 = arith.constant 5.000000e-01 : f32
    %946 = arith.mulf %832, %cst_276 : f32
    %947 = vector.broadcast %946 : f32 to vector<4x64xf32>
    %948 = arith.mulf %947, %733 : vector<4x64xf32>
    %949 = arith.addf %945, %948 : vector<4x64xf32>
    %950 = arith.subf %940, %949 : vector<4x64xf32>
    %c90_i32 = arith.constant 90 : i32
    %951 = arith.addi %c90_i32, %arg1 : i32
    %952 = arith.index_cast %951 : i32 to index
    %953 = memref.load %arg3[%952] : memref<216xf32, #tpu.memory_space<smem>>
    %c126_i32 = arith.constant 126 : i32
    %954 = arith.addi %c126_i32, %arg1 : i32
    %955 = arith.index_cast %954 : i32 to index
    %956 = memref.load %arg3[%955] : memref<216xf32, #tpu.memory_space<smem>>
    %c0_277 = arith.constant 0 : index
    %c0_278 = arith.constant 0 : index
    %c0_279 = arith.constant 0 : index
    %c0_280 = arith.constant 0 : index
    %957 = vector.load %arg6[%c0_277, %c0_278, %c0_279, %c0_280] : memref<1x1x64x64xf32, #tpu.memory_space<vmem>>, vector<1x1x64x64xf32>
    %958 = vector.shape_cast %957 : vector<1x1x64x64xf32> to vector<64x64xf32>
    %cst_281 = arith.constant dense<0.000000e+00> : vector<4x64xf32>
    %959 = tpu.matmul %950, %958, %cst_281 {dimension_numbers = #tpu.dot_dimension_numbers<[1], [0], [0], [1], [0, 0, 1, 1], [], []>} : vector<4x64xf32>, vector<64x64xf32>, vector<4x64xf32> -> vector<4x64xf32>
    %960 = vector.broadcast %828 : f32 to vector<4x64xf32>
    %961 = arith.mulf %960, %959 : vector<4x64xf32>
    %cst_282 = arith.constant 5.000000e-01 : f32
    %962 = arith.mulf %832, %cst_282 : f32
    %963 = vector.broadcast %962 : f32 to vector<4x64xf32>
    %964 = arith.mulf %963, %950 : vector<4x64xf32>
    %965 = arith.addf %961, %964 : vector<4x64xf32>
    %966 = vector.broadcast %953 : f32 to vector<4x64xf32>
    %967 = arith.mulf %966, %950 : vector<4x64xf32>
    %968 = arith.addf %733, %967 : vector<4x64xf32>
    %969 = vector.broadcast %953 : f32 to vector<4x64xf32>
    %970 = arith.mulf %969, %965 : vector<4x64xf32>
    %971 = arith.subf %950, %970 : vector<4x64xf32>
    %972 = vector.broadcast %956 : f32 to vector<4x64xf32>
    %973 = arith.mulf %972, %950 : vector<4x64xf32>
    %974 = arith.addf %971, %973 : vector<4x64xf32>
    %c92_i32 = arith.constant 92 : i32
    %975 = arith.addi %c92_i32, %arg1 : i32
    %976 = arith.index_cast %975 : i32 to index
    %977 = memref.load %arg3[%976] : memref<216xf32, #tpu.memory_space<smem>>
    %c128_i32 = arith.constant 128 : i32
    %978 = arith.addi %c128_i32, %arg1 : i32
    %979 = arith.index_cast %978 : i32 to index
    %980 = memref.load %arg3[%979] : memref<216xf32, #tpu.memory_space<smem>>
    %c0_283 = arith.constant 0 : index
    %c0_284 = arith.constant 0 : index
    %c0_285 = arith.constant 0 : index
    %c0_286 = arith.constant 0 : index
    %981 = vector.load %arg6[%c0_283, %c0_284, %c0_285, %c0_286] : memref<1x1x64x64xf32, #tpu.memory_space<vmem>>, vector<1x1x64x64xf32>
    %982 = vector.shape_cast %981 : vector<1x1x64x64xf32> to vector<64x64xf32>
    %cst_287 = arith.constant dense<0.000000e+00> : vector<4x64xf32>
    %983 = tpu.matmul %974, %982, %cst_287 {dimension_numbers = #tpu.dot_dimension_numbers<[1], [0], [0], [1], [0, 0, 1, 1], [], []>} : vector<4x64xf32>, vector<64x64xf32>, vector<4x64xf32> -> vector<4x64xf32>
    %984 = vector.broadcast %828 : f32 to vector<4x64xf32>
    %985 = arith.mulf %984, %983 : vector<4x64xf32>
    %cst_288 = arith.constant 5.000000e-01 : f32
    %986 = arith.mulf %832, %cst_288 : f32
    %987 = vector.broadcast %986 : f32 to vector<4x64xf32>
    %988 = arith.mulf %987, %974 : vector<4x64xf32>
    %989 = arith.addf %985, %988 : vector<4x64xf32>
    %990 = vector.broadcast %977 : f32 to vector<4x64xf32>
    %991 = arith.mulf %990, %974 : vector<4x64xf32>
    %992 = arith.addf %968, %991 : vector<4x64xf32>
    %993 = vector.broadcast %977 : f32 to vector<4x64xf32>
    %994 = arith.mulf %993, %989 : vector<4x64xf32>
    %995 = arith.subf %971, %994 : vector<4x64xf32>
    %996 = vector.broadcast %980 : f32 to vector<4x64xf32>
    %997 = arith.mulf %996, %974 : vector<4x64xf32>
    %998 = arith.addf %995, %997 : vector<4x64xf32>
    %c94_i32 = arith.constant 94 : i32
    %999 = arith.addi %c94_i32, %arg1 : i32
    %1000 = arith.index_cast %999 : i32 to index
    %1001 = memref.load %arg3[%1000] : memref<216xf32, #tpu.memory_space<smem>>
    %1002 = vector.broadcast %1001 : f32 to vector<4x64xf32>
    %1003 = arith.mulf %1002, %998 : vector<4x64xf32>
    %1004 = arith.addf %992, %1003 : vector<4x64xf32>
    %cst_289 = arith.constant 5.000000e-01 : f32
    %1005 = vector.broadcast %cst_289 : f32 to vector<4x64xf32>
    %1006 = arith.mulf %811, %1005 : vector<4x64xf32>
    %cst_290 = arith.constant 5.000000e-01 : f32
    %1007 = arith.mulf %833, %cst_290 : f32
    %1008 = vector.broadcast %1007 : f32 to vector<4x64xf32>
    %1009 = arith.mulf %1008, %934 : vector<4x64xf32>
    %1010 = arith.addf %1006, %1009 : vector<4x64xf32>
    %c0_291 = arith.constant 0 : index
    %c0_292 = arith.constant 0 : index
    %c0_293 = arith.constant 0 : index
    %c0_294 = arith.constant 0 : index
    %1011 = vector.load %arg9[%c0_291, %c0_292, %c0_293, %c0_294] : memref<1x1x64x64xf32, #tpu.memory_space<vmem>>, vector<1x1x64x64xf32>
    %1012 = vector.shape_cast %1011 : vector<1x1x64x64xf32> to vector<64x64xf32>
    %cst_295 = arith.constant dense<0.000000e+00> : vector<4x64xf32>
    %1013 = tpu.matmul %803, %1012, %cst_295 {dimension_numbers = #tpu.dot_dimension_numbers<[1], [0], [0], [1], [0, 0, 1, 1], [], []>} : vector<4x64xf32>, vector<64x64xf32>, vector<4x64xf32> -> vector<4x64xf32>
    %1014 = vector.broadcast %830 : f32 to vector<4x64xf32>
    %1015 = arith.mulf %1014, %1013 : vector<4x64xf32>
    %cst_296 = arith.constant 5.000000e-01 : f32
    %1016 = arith.mulf %833, %cst_296 : f32
    %1017 = vector.broadcast %1016 : f32 to vector<4x64xf32>
    %1018 = arith.mulf %1017, %803 : vector<4x64xf32>
    %1019 = arith.addf %1015, %1018 : vector<4x64xf32>
    %1020 = arith.subf %1010, %1019 : vector<4x64xf32>
    %c162_i32 = arith.constant 162 : i32
    %1021 = arith.addi %c162_i32, %arg1 : i32
    %1022 = arith.index_cast %1021 : i32 to index
    %1023 = memref.load %arg3[%1022] : memref<216xf32, #tpu.memory_space<smem>>
    %c198_i32 = arith.constant 198 : i32
    %1024 = arith.addi %c198_i32, %arg1 : i32
    %1025 = arith.index_cast %1024 : i32 to index
    %1026 = memref.load %arg3[%1025] : memref<216xf32, #tpu.memory_space<smem>>
    %c0_297 = arith.constant 0 : index
    %c0_298 = arith.constant 0 : index
    %c0_299 = arith.constant 0 : index
    %c0_300 = arith.constant 0 : index
    %1027 = vector.load %arg9[%c0_297, %c0_298, %c0_299, %c0_300] : memref<1x1x64x64xf32, #tpu.memory_space<vmem>>, vector<1x1x64x64xf32>
    %1028 = vector.shape_cast %1027 : vector<1x1x64x64xf32> to vector<64x64xf32>
    %cst_301 = arith.constant dense<0.000000e+00> : vector<4x64xf32>
    %1029 = tpu.matmul %1020, %1028, %cst_301 {dimension_numbers = #tpu.dot_dimension_numbers<[1], [0], [0], [1], [0, 0, 1, 1], [], []>} : vector<4x64xf32>, vector<64x64xf32>, vector<4x64xf32> -> vector<4x64xf32>
    %1030 = vector.broadcast %830 : f32 to vector<4x64xf32>
    %1031 = arith.mulf %1030, %1029 : vector<4x64xf32>
    %cst_302 = arith.constant 5.000000e-01 : f32
    %1032 = arith.mulf %833, %cst_302 : f32
    %1033 = vector.broadcast %1032 : f32 to vector<4x64xf32>
    %1034 = arith.mulf %1033, %1020 : vector<4x64xf32>
    %1035 = arith.addf %1031, %1034 : vector<4x64xf32>
    %1036 = vector.broadcast %1023 : f32 to vector<4x64xf32>
    %1037 = arith.mulf %1036, %1020 : vector<4x64xf32>
    %1038 = arith.addf %803, %1037 : vector<4x64xf32>
    %1039 = vector.broadcast %1023 : f32 to vector<4x64xf32>
    %1040 = arith.mulf %1039, %1035 : vector<4x64xf32>
    %1041 = arith.subf %1020, %1040 : vector<4x64xf32>
    %1042 = vector.broadcast %1026 : f32 to vector<4x64xf32>
    %1043 = arith.mulf %1042, %1020 : vector<4x64xf32>
    %1044 = arith.addf %1041, %1043 : vector<4x64xf32>
    %c164_i32 = arith.constant 164 : i32
    %1045 = arith.addi %c164_i32, %arg1 : i32
    %1046 = arith.index_cast %1045 : i32 to index
    %1047 = memref.load %arg3[%1046] : memref<216xf32, #tpu.memory_space<smem>>
    %c200_i32 = arith.constant 200 : i32
    %1048 = arith.addi %c200_i32, %arg1 : i32
    %1049 = arith.index_cast %1048 : i32 to index
    %1050 = memref.load %arg3[%1049] : memref<216xf32, #tpu.memory_space<smem>>
    %c0_303 = arith.constant 0 : index
    %c0_304 = arith.constant 0 : index
    %c0_305 = arith.constant 0 : index
    %c0_306 = arith.constant 0 : index
    %1051 = vector.load %arg9[%c0_303, %c0_304, %c0_305, %c0_306] : memref<1x1x64x64xf32, #tpu.memory_space<vmem>>, vector<1x1x64x64xf32>
    %1052 = vector.shape_cast %1051 : vector<1x1x64x64xf32> to vector<64x64xf32>
    %cst_307 = arith.constant dense<0.000000e+00> : vector<4x64xf32>
    %1053 = tpu.matmul %1044, %1052, %cst_307 {dimension_numbers = #tpu.dot_dimension_numbers<[1], [0], [0], [1], [0, 0, 1, 1], [], []>} : vector<4x64xf32>, vector<64x64xf32>, vector<4x64xf32> -> vector<4x64xf32>
    %1054 = vector.broadcast %830 : f32 to vector<4x64xf32>
    %1055 = arith.mulf %1054, %1053 : vector<4x64xf32>
    %cst_308 = arith.constant 5.000000e-01 : f32
    %1056 = arith.mulf %833, %cst_308 : f32
    %1057 = vector.broadcast %1056 : f32 to vector<4x64xf32>
    %1058 = arith.mulf %1057, %1044 : vector<4x64xf32>
    %1059 = arith.addf %1055, %1058 : vector<4x64xf32>
    %1060 = vector.broadcast %1047 : f32 to vector<4x64xf32>
    %1061 = arith.mulf %1060, %1044 : vector<4x64xf32>
    %1062 = arith.addf %1038, %1061 : vector<4x64xf32>
    %1063 = vector.broadcast %1047 : f32 to vector<4x64xf32>
    %1064 = arith.mulf %1063, %1059 : vector<4x64xf32>
    %1065 = arith.subf %1041, %1064 : vector<4x64xf32>
    %1066 = vector.broadcast %1050 : f32 to vector<4x64xf32>
    %1067 = arith.mulf %1066, %1044 : vector<4x64xf32>
    %1068 = arith.addf %1065, %1067 : vector<4x64xf32>
    %c166_i32 = arith.constant 166 : i32
    %1069 = arith.addi %c166_i32, %arg1 : i32
    %1070 = arith.index_cast %1069 : i32 to index
    %1071 = memref.load %arg3[%1070] : memref<216xf32, #tpu.memory_space<smem>>
    %1072 = vector.broadcast %1071 : f32 to vector<4x64xf32>
    %1073 = arith.mulf %1072, %1068 : vector<4x64xf32>
    %1074 = arith.addf %1062, %1073 : vector<4x64xf32>
    %1075 = arith.subf %934, %1004 : vector<4x64xf32>
    %1076 = vector.broadcast %832 : f32 to vector<4x64xf32>
    %1077 = arith.mulf %1076, %1075 : vector<4x64xf32>
    %1078 = arith.addf %807, %1077 : vector<4x64xf32>
    %1079 = arith.subf %934, %1074 : vector<4x64xf32>
    %1080 = vector.broadcast %833 : f32 to vector<4x64xf32>
    %1081 = arith.mulf %1080, %1079 : vector<4x64xf32>
    %1082 = arith.addf %811, %1081 : vector<4x64xf32>
    %c0_309 = arith.constant 0 : index
    %c0_310 = arith.constant 0 : index
    %c0_311 = arith.constant 0 : index
    %c0_312 = arith.constant 0 : index
    %1083 = vector.load %arg7[%c0_309, %c0_310, %c0_311, %c0_312] : memref<1x1x64x64xf32, #tpu.memory_space<vmem>>, vector<1x1x64x64xf32>
    %1084 = vector.shape_cast %1083 : vector<1x1x64x64xf32> to vector<64x64xf32>
    %cst_313 = arith.constant dense<0.000000e+00> : vector<4x64xf32>
    %1085 = tpu.matmul %934, %1084, %cst_313 {dimension_numbers = #tpu.dot_dimension_numbers<[1], [0], [0], [1], [0, 0, 1, 1], [], []>} : vector<4x64xf32>, vector<64x64xf32>, vector<4x64xf32> -> vector<4x64xf32>
    %1086 = vector.broadcast %834 : f32 to vector<4x64xf32>
    %1087 = arith.mulf %827, %1086 : vector<4x64xf32>
    %1088 = arith.subf %1085, %1087 : vector<4x64xf32>
    %1089 = arith.mulf %829, %834 : f32
    %cst_314 = arith.constant 0.000000e+00 : f32
    %1090 = arith.subf %cst_314, %1089 : f32
    %1091 = vector.broadcast %1090 : f32 to vector<4x64xf32>
    %1092 = arith.maximumf %1091, %1088 : vector<4x64xf32>
    %1093 = vector.broadcast %1089 : f32 to vector<4x64xf32>
    %1094 = arith.minimumf %1093, %1092 : vector<4x64xf32>
    %1095 = arith.subf %1088, %1094 : vector<4x64xf32>
    %1096 = arith.subf %1095, %1088 : vector<4x64xf32>
    %1097 = vector.broadcast %831 : f32 to vector<4x64xf32>
    %1098 = arith.mulf %1097, %1096 : vector<4x64xf32>
    %c4 = arith.constant 4 : index
    %1099 = memref.load %arg2[%c4] : memref<36xf32, #tpu.memory_space<smem>>
    %c10 = arith.constant 10 : index
    %1100 = memref.load %arg2[%c10] : memref<36xf32, #tpu.memory_space<smem>>
    %c16 = arith.constant 16 : index
    %1101 = memref.load %arg2[%c16] : memref<36xf32, #tpu.memory_space<smem>>
    %c22 = arith.constant 22 : index
    %1102 = memref.load %arg2[%c22] : memref<36xf32, #tpu.memory_space<smem>>
    %c28 = arith.constant 28 : index
    %1103 = memref.load %arg2[%c28] : memref<36xf32, #tpu.memory_space<smem>>
    %c34 = arith.constant 34 : index
    %1104 = memref.load %arg2[%c34] : memref<36xf32, #tpu.memory_space<smem>>
    %cst_315 = arith.constant 1.000000e+00 : f32
    %1105 = arith.divf %cst_315, %1102 : f32
    %1106 = vector.broadcast %1102 : f32 to vector<4x64xf32>
    %1107 = arith.mulf %1106, %1095 : vector<4x64xf32>
    %1108 = arith.addf %1098, %1107 : vector<4x64xf32>
    %c0_316 = arith.constant 0 : index
    %c0_317 = arith.constant 0 : index
    %c0_318 = arith.constant 0 : index
    %c0_319 = arith.constant 0 : index
    %1109 = vector.load %arg8[%c0_316, %c0_317, %c0_318, %c0_319] : memref<1x1x64x64xf32, #tpu.memory_space<vmem>>, vector<1x1x64x64xf32>
    %1110 = vector.shape_cast %1109 : vector<1x1x64x64xf32> to vector<64x64xf32>
    %cst_320 = arith.constant dense<0.000000e+00> : vector<4x64xf32>
    %1111 = tpu.matmul %1108, %1110, %cst_320 {dimension_numbers = #tpu.dot_dimension_numbers<[1], [0], [0], [1], [0, 0, 1, 1], [], []>} : vector<4x64xf32>, vector<64x64xf32>, vector<4x64xf32> -> vector<4x64xf32>
    %cst_321 = arith.constant 5.000000e-01 : f32
    %1112 = vector.broadcast %cst_321 : f32 to vector<4x64xf32>
    %1113 = arith.mulf %1111, %1112 : vector<4x64xf32>
    %1114 = vector.broadcast %1103 : f32 to vector<4x64xf32>
    %1115 = arith.mulf %1114, %1004 : vector<4x64xf32>
    %1116 = vector.broadcast %1104 : f32 to vector<4x64xf32>
    %1117 = arith.mulf %1116, %1074 : vector<4x64xf32>
    %1118 = arith.addf %1115, %1117 : vector<4x64xf32>
    %cst_322 = arith.constant 5.000000e-01 : f32
    %1119 = vector.broadcast %cst_322 : f32 to vector<4x64xf32>
    %1120 = arith.mulf %1118, %1119 : vector<4x64xf32>
    %1121 = arith.addf %1113, %1120 : vector<4x64xf32>
    %1122 = arith.addf %1078, %1082 : vector<4x64xf32>
    %cst_323 = arith.constant 5.000000e-01 : f32
    %1123 = vector.broadcast %cst_323 : f32 to vector<4x64xf32>
    %1124 = arith.mulf %1122, %1123 : vector<4x64xf32>
    %1125 = arith.subf %1121, %1124 : vector<4x64xf32>
    %1126 = arith.addf %1125, %8 : vector<4x64xf32>
    %1127 = vector.broadcast %6 : vector<1x64xf32> to vector<4x64xf32>
    %1128 = arith.mulf %1127, %934 : vector<4x64xf32>
    %1129 = arith.addf %1103, %1104 : f32
    %cst_324 = arith.constant 5.000000e-01 : f32
    %1130 = arith.mulf %1129, %cst_324 : f32
    %1131 = vector.broadcast %1130 : f32 to vector<4x64xf32>
    %1132 = arith.mulf %1131, %934 : vector<4x64xf32>
    %1133 = arith.addf %1128, %1132 : vector<4x64xf32>
    %cst_325 = arith.constant 5.000000e-01 : f32
    %1134 = arith.mulf %1102, %cst_325 : f32
    %c0_326 = arith.constant 0 : index
    %c0_327 = arith.constant 0 : index
    %c0_328 = arith.constant 0 : index
    %c0_329 = arith.constant 0 : index
    %1135 = vector.load %arg9[%c0_326, %c0_327, %c0_328, %c0_329] : memref<1x1x64x64xf32, #tpu.memory_space<vmem>>, vector<1x1x64x64xf32>
    %1136 = vector.shape_cast %1135 : vector<1x1x64x64xf32> to vector<64x64xf32>
    %cst_330 = arith.constant dense<0.000000e+00> : vector<4x64xf32>
    %1137 = tpu.matmul %934, %1136, %cst_330 {dimension_numbers = #tpu.dot_dimension_numbers<[1], [0], [0], [1], [0, 0, 1, 1], [], []>} : vector<4x64xf32>, vector<64x64xf32>, vector<4x64xf32> -> vector<4x64xf32>
    %1138 = vector.broadcast %1134 : f32 to vector<4x64xf32>
    %1139 = arith.mulf %1138, %1137 : vector<4x64xf32>
    %1140 = arith.addf %1133, %1139 : vector<4x64xf32>
    %1141 = arith.subf %1126, %1140 : vector<4x64xf32>
    %c24_i32 = arith.constant 24 : i32
    %1142 = arith.addi %c24_i32, %arg1 : i32
    %1143 = arith.index_cast %1142 : i32 to index
    %1144 = memref.load %arg3[%1143] : memref<216xf32, #tpu.memory_space<smem>>
    %c60_i32 = arith.constant 60 : i32
    %1145 = arith.addi %c60_i32, %arg1 : i32
    %1146 = arith.index_cast %1145 : i32 to index
    %1147 = memref.load %arg3[%1146] : memref<216xf32, #tpu.memory_space<smem>>
    %1148 = vector.broadcast %6 : vector<1x64xf32> to vector<4x64xf32>
    %1149 = arith.mulf %1148, %1141 : vector<4x64xf32>
    %1150 = arith.addf %1103, %1104 : f32
    %cst_331 = arith.constant 5.000000e-01 : f32
    %1151 = arith.mulf %1150, %cst_331 : f32
    %1152 = vector.broadcast %1151 : f32 to vector<4x64xf32>
    %1153 = arith.mulf %1152, %1141 : vector<4x64xf32>
    %1154 = arith.addf %1149, %1153 : vector<4x64xf32>
    %cst_332 = arith.constant 5.000000e-01 : f32
    %1155 = arith.mulf %1102, %cst_332 : f32
    %c0_333 = arith.constant 0 : index
    %c0_334 = arith.constant 0 : index
    %c0_335 = arith.constant 0 : index
    %c0_336 = arith.constant 0 : index
    %1156 = vector.load %arg9[%c0_333, %c0_334, %c0_335, %c0_336] : memref<1x1x64x64xf32, #tpu.memory_space<vmem>>, vector<1x1x64x64xf32>
    %1157 = vector.shape_cast %1156 : vector<1x1x64x64xf32> to vector<64x64xf32>
    %cst_337 = arith.constant dense<0.000000e+00> : vector<4x64xf32>
    %1158 = tpu.matmul %1141, %1157, %cst_337 {dimension_numbers = #tpu.dot_dimension_numbers<[1], [0], [0], [1], [0, 0, 1, 1], [], []>} : vector<4x64xf32>, vector<64x64xf32>, vector<4x64xf32> -> vector<4x64xf32>
    %1159 = vector.broadcast %1155 : f32 to vector<4x64xf32>
    %1160 = arith.mulf %1159, %1158 : vector<4x64xf32>
    %1161 = arith.addf %1154, %1160 : vector<4x64xf32>
    %1162 = vector.broadcast %1144 : f32 to vector<4x64xf32>
    %1163 = arith.mulf %1162, %1141 : vector<4x64xf32>
    %1164 = arith.addf %934, %1163 : vector<4x64xf32>
    %1165 = vector.broadcast %1144 : f32 to vector<4x64xf32>
    %1166 = arith.mulf %1165, %1161 : vector<4x64xf32>
    %1167 = arith.subf %1141, %1166 : vector<4x64xf32>
    %1168 = vector.broadcast %1147 : f32 to vector<4x64xf32>
    %1169 = arith.mulf %1168, %1141 : vector<4x64xf32>
    %1170 = arith.addf %1167, %1169 : vector<4x64xf32>
    %c26_i32 = arith.constant 26 : i32
    %1171 = arith.addi %c26_i32, %arg1 : i32
    %1172 = arith.index_cast %1171 : i32 to index
    %1173 = memref.load %arg3[%1172] : memref<216xf32, #tpu.memory_space<smem>>
    %c62_i32 = arith.constant 62 : i32
    %1174 = arith.addi %c62_i32, %arg1 : i32
    %1175 = arith.index_cast %1174 : i32 to index
    %1176 = memref.load %arg3[%1175] : memref<216xf32, #tpu.memory_space<smem>>
    %1177 = vector.broadcast %6 : vector<1x64xf32> to vector<4x64xf32>
    %1178 = arith.mulf %1177, %1170 : vector<4x64xf32>
    %1179 = arith.addf %1103, %1104 : f32
    %cst_338 = arith.constant 5.000000e-01 : f32
    %1180 = arith.mulf %1179, %cst_338 : f32
    %1181 = vector.broadcast %1180 : f32 to vector<4x64xf32>
    %1182 = arith.mulf %1181, %1170 : vector<4x64xf32>
    %1183 = arith.addf %1178, %1182 : vector<4x64xf32>
    %cst_339 = arith.constant 5.000000e-01 : f32
    %1184 = arith.mulf %1102, %cst_339 : f32
    %c0_340 = arith.constant 0 : index
    %c0_341 = arith.constant 0 : index
    %c0_342 = arith.constant 0 : index
    %c0_343 = arith.constant 0 : index
    %1185 = vector.load %arg9[%c0_340, %c0_341, %c0_342, %c0_343] : memref<1x1x64x64xf32, #tpu.memory_space<vmem>>, vector<1x1x64x64xf32>
    %1186 = vector.shape_cast %1185 : vector<1x1x64x64xf32> to vector<64x64xf32>
    %cst_344 = arith.constant dense<0.000000e+00> : vector<4x64xf32>
    %1187 = tpu.matmul %1170, %1186, %cst_344 {dimension_numbers = #tpu.dot_dimension_numbers<[1], [0], [0], [1], [0, 0, 1, 1], [], []>} : vector<4x64xf32>, vector<64x64xf32>, vector<4x64xf32> -> vector<4x64xf32>
    %1188 = vector.broadcast %1184 : f32 to vector<4x64xf32>
    %1189 = arith.mulf %1188, %1187 : vector<4x64xf32>
    %1190 = arith.addf %1183, %1189 : vector<4x64xf32>
    %1191 = vector.broadcast %1173 : f32 to vector<4x64xf32>
    %1192 = arith.mulf %1191, %1170 : vector<4x64xf32>
    %1193 = arith.addf %1164, %1192 : vector<4x64xf32>
    %1194 = vector.broadcast %1173 : f32 to vector<4x64xf32>
    %1195 = arith.mulf %1194, %1190 : vector<4x64xf32>
    %1196 = arith.subf %1167, %1195 : vector<4x64xf32>
    %1197 = vector.broadcast %1176 : f32 to vector<4x64xf32>
    %1198 = arith.mulf %1197, %1170 : vector<4x64xf32>
    %1199 = arith.addf %1196, %1198 : vector<4x64xf32>
    %c28_i32 = arith.constant 28 : i32
    %1200 = arith.addi %c28_i32, %arg1 : i32
    %1201 = arith.index_cast %1200 : i32 to index
    %1202 = memref.load %arg3[%1201] : memref<216xf32, #tpu.memory_space<smem>>
    %1203 = vector.broadcast %1202 : f32 to vector<4x64xf32>
    %1204 = arith.mulf %1203, %1199 : vector<4x64xf32>
    %1205 = arith.addf %1193, %1204 : vector<4x64xf32>
    %cst_345 = arith.constant 5.000000e-01 : f32
    %1206 = vector.broadcast %cst_345 : f32 to vector<4x64xf32>
    %1207 = arith.mulf %1078, %1206 : vector<4x64xf32>
    %cst_346 = arith.constant 5.000000e-01 : f32
    %1208 = arith.mulf %1103, %cst_346 : f32
    %1209 = vector.broadcast %1208 : f32 to vector<4x64xf32>
    %1210 = arith.mulf %1209, %1205 : vector<4x64xf32>
    %1211 = arith.addf %1207, %1210 : vector<4x64xf32>
    %c0_347 = arith.constant 0 : index
    %c0_348 = arith.constant 0 : index
    %c0_349 = arith.constant 0 : index
    %c0_350 = arith.constant 0 : index
    %1212 = vector.load %arg6[%c0_347, %c0_348, %c0_349, %c0_350] : memref<1x1x64x64xf32, #tpu.memory_space<vmem>>, vector<1x1x64x64xf32>
    %1213 = vector.shape_cast %1212 : vector<1x1x64x64xf32> to vector<64x64xf32>
    %cst_351 = arith.constant dense<0.000000e+00> : vector<4x64xf32>
    %1214 = tpu.matmul %1004, %1213, %cst_351 {dimension_numbers = #tpu.dot_dimension_numbers<[1], [0], [0], [1], [0, 0, 1, 1], [], []>} : vector<4x64xf32>, vector<64x64xf32>, vector<4x64xf32> -> vector<4x64xf32>
    %1215 = vector.broadcast %1099 : f32 to vector<4x64xf32>
    %1216 = arith.mulf %1215, %1214 : vector<4x64xf32>
    %cst_352 = arith.constant 5.000000e-01 : f32
    %1217 = arith.mulf %1103, %cst_352 : f32
    %1218 = vector.broadcast %1217 : f32 to vector<4x64xf32>
    %1219 = arith.mulf %1218, %1004 : vector<4x64xf32>
    %1220 = arith.addf %1216, %1219 : vector<4x64xf32>
    %1221 = arith.subf %1211, %1220 : vector<4x64xf32>
    %c96_i32 = arith.constant 96 : i32
    %1222 = arith.addi %c96_i32, %arg1 : i32
    %1223 = arith.index_cast %1222 : i32 to index
    %1224 = memref.load %arg3[%1223] : memref<216xf32, #tpu.memory_space<smem>>
    %c132_i32 = arith.constant 132 : i32
    %1225 = arith.addi %c132_i32, %arg1 : i32
    %1226 = arith.index_cast %1225 : i32 to index
    %1227 = memref.load %arg3[%1226] : memref<216xf32, #tpu.memory_space<smem>>
    %c0_353 = arith.constant 0 : index
    %c0_354 = arith.constant 0 : index
    %c0_355 = arith.constant 0 : index
    %c0_356 = arith.constant 0 : index
    %1228 = vector.load %arg6[%c0_353, %c0_354, %c0_355, %c0_356] : memref<1x1x64x64xf32, #tpu.memory_space<vmem>>, vector<1x1x64x64xf32>
    %1229 = vector.shape_cast %1228 : vector<1x1x64x64xf32> to vector<64x64xf32>
    %cst_357 = arith.constant dense<0.000000e+00> : vector<4x64xf32>
    %1230 = tpu.matmul %1221, %1229, %cst_357 {dimension_numbers = #tpu.dot_dimension_numbers<[1], [0], [0], [1], [0, 0, 1, 1], [], []>} : vector<4x64xf32>, vector<64x64xf32>, vector<4x64xf32> -> vector<4x64xf32>
    %1231 = vector.broadcast %1099 : f32 to vector<4x64xf32>
    %1232 = arith.mulf %1231, %1230 : vector<4x64xf32>
    %cst_358 = arith.constant 5.000000e-01 : f32
    %1233 = arith.mulf %1103, %cst_358 : f32
    %1234 = vector.broadcast %1233 : f32 to vector<4x64xf32>
    %1235 = arith.mulf %1234, %1221 : vector<4x64xf32>
    %1236 = arith.addf %1232, %1235 : vector<4x64xf32>
    %1237 = vector.broadcast %1224 : f32 to vector<4x64xf32>
    %1238 = arith.mulf %1237, %1221 : vector<4x64xf32>
    %1239 = arith.addf %1004, %1238 : vector<4x64xf32>
    %1240 = vector.broadcast %1224 : f32 to vector<4x64xf32>
    %1241 = arith.mulf %1240, %1236 : vector<4x64xf32>
    %1242 = arith.subf %1221, %1241 : vector<4x64xf32>
    %1243 = vector.broadcast %1227 : f32 to vector<4x64xf32>
    %1244 = arith.mulf %1243, %1221 : vector<4x64xf32>
    %1245 = arith.addf %1242, %1244 : vector<4x64xf32>
    %c98_i32 = arith.constant 98 : i32
    %1246 = arith.addi %c98_i32, %arg1 : i32
    %1247 = arith.index_cast %1246 : i32 to index
    %1248 = memref.load %arg3[%1247] : memref<216xf32, #tpu.memory_space<smem>>
    %c134_i32 = arith.constant 134 : i32
    %1249 = arith.addi %c134_i32, %arg1 : i32
    %1250 = arith.index_cast %1249 : i32 to index
    %1251 = memref.load %arg3[%1250] : memref<216xf32, #tpu.memory_space<smem>>
    %c0_359 = arith.constant 0 : index
    %c0_360 = arith.constant 0 : index
    %c0_361 = arith.constant 0 : index
    %c0_362 = arith.constant 0 : index
    %1252 = vector.load %arg6[%c0_359, %c0_360, %c0_361, %c0_362] : memref<1x1x64x64xf32, #tpu.memory_space<vmem>>, vector<1x1x64x64xf32>
    %1253 = vector.shape_cast %1252 : vector<1x1x64x64xf32> to vector<64x64xf32>
    %cst_363 = arith.constant dense<0.000000e+00> : vector<4x64xf32>
    %1254 = tpu.matmul %1245, %1253, %cst_363 {dimension_numbers = #tpu.dot_dimension_numbers<[1], [0], [0], [1], [0, 0, 1, 1], [], []>} : vector<4x64xf32>, vector<64x64xf32>, vector<4x64xf32> -> vector<4x64xf32>
    %1255 = vector.broadcast %1099 : f32 to vector<4x64xf32>
    %1256 = arith.mulf %1255, %1254 : vector<4x64xf32>
    %cst_364 = arith.constant 5.000000e-01 : f32
    %1257 = arith.mulf %1103, %cst_364 : f32
    %1258 = vector.broadcast %1257 : f32 to vector<4x64xf32>
    %1259 = arith.mulf %1258, %1245 : vector<4x64xf32>
    %1260 = arith.addf %1256, %1259 : vector<4x64xf32>
    %1261 = vector.broadcast %1248 : f32 to vector<4x64xf32>
    %1262 = arith.mulf %1261, %1245 : vector<4x64xf32>
    %1263 = arith.addf %1239, %1262 : vector<4x64xf32>
    %1264 = vector.broadcast %1248 : f32 to vector<4x64xf32>
    %1265 = arith.mulf %1264, %1260 : vector<4x64xf32>
    %1266 = arith.subf %1242, %1265 : vector<4x64xf32>
    %1267 = vector.broadcast %1251 : f32 to vector<4x64xf32>
    %1268 = arith.mulf %1267, %1245 : vector<4x64xf32>
    %1269 = arith.addf %1266, %1268 : vector<4x64xf32>
    %c100_i32 = arith.constant 100 : i32
    %1270 = arith.addi %c100_i32, %arg1 : i32
    %1271 = arith.index_cast %1270 : i32 to index
    %1272 = memref.load %arg3[%1271] : memref<216xf32, #tpu.memory_space<smem>>
    %1273 = vector.broadcast %1272 : f32 to vector<4x64xf32>
    %1274 = arith.mulf %1273, %1269 : vector<4x64xf32>
    %1275 = arith.addf %1263, %1274 : vector<4x64xf32>
    %cst_365 = arith.constant 5.000000e-01 : f32
    %1276 = vector.broadcast %cst_365 : f32 to vector<4x64xf32>
    %1277 = arith.mulf %1082, %1276 : vector<4x64xf32>
    %cst_366 = arith.constant 5.000000e-01 : f32
    %1278 = arith.mulf %1104, %cst_366 : f32
    %1279 = vector.broadcast %1278 : f32 to vector<4x64xf32>
    %1280 = arith.mulf %1279, %1205 : vector<4x64xf32>
    %1281 = arith.addf %1277, %1280 : vector<4x64xf32>
    %c0_367 = arith.constant 0 : index
    %c0_368 = arith.constant 0 : index
    %c0_369 = arith.constant 0 : index
    %c0_370 = arith.constant 0 : index
    %1282 = vector.load %arg9[%c0_367, %c0_368, %c0_369, %c0_370] : memref<1x1x64x64xf32, #tpu.memory_space<vmem>>, vector<1x1x64x64xf32>
    %1283 = vector.shape_cast %1282 : vector<1x1x64x64xf32> to vector<64x64xf32>
    %cst_371 = arith.constant dense<0.000000e+00> : vector<4x64xf32>
    %1284 = tpu.matmul %1074, %1283, %cst_371 {dimension_numbers = #tpu.dot_dimension_numbers<[1], [0], [0], [1], [0, 0, 1, 1], [], []>} : vector<4x64xf32>, vector<64x64xf32>, vector<4x64xf32> -> vector<4x64xf32>
    %1285 = vector.broadcast %1101 : f32 to vector<4x64xf32>
    %1286 = arith.mulf %1285, %1284 : vector<4x64xf32>
    %cst_372 = arith.constant 5.000000e-01 : f32
    %1287 = arith.mulf %1104, %cst_372 : f32
    %1288 = vector.broadcast %1287 : f32 to vector<4x64xf32>
    %1289 = arith.mulf %1288, %1074 : vector<4x64xf32>
    %1290 = arith.addf %1286, %1289 : vector<4x64xf32>
    %1291 = arith.subf %1281, %1290 : vector<4x64xf32>
    %c168_i32 = arith.constant 168 : i32
    %1292 = arith.addi %c168_i32, %arg1 : i32
    %1293 = arith.index_cast %1292 : i32 to index
    %1294 = memref.load %arg3[%1293] : memref<216xf32, #tpu.memory_space<smem>>
    %c204_i32 = arith.constant 204 : i32
    %1295 = arith.addi %c204_i32, %arg1 : i32
    %1296 = arith.index_cast %1295 : i32 to index
    %1297 = memref.load %arg3[%1296] : memref<216xf32, #tpu.memory_space<smem>>
    %c0_373 = arith.constant 0 : index
    %c0_374 = arith.constant 0 : index
    %c0_375 = arith.constant 0 : index
    %c0_376 = arith.constant 0 : index
    %1298 = vector.load %arg9[%c0_373, %c0_374, %c0_375, %c0_376] : memref<1x1x64x64xf32, #tpu.memory_space<vmem>>, vector<1x1x64x64xf32>
    %1299 = vector.shape_cast %1298 : vector<1x1x64x64xf32> to vector<64x64xf32>
    %cst_377 = arith.constant dense<0.000000e+00> : vector<4x64xf32>
    %1300 = tpu.matmul %1291, %1299, %cst_377 {dimension_numbers = #tpu.dot_dimension_numbers<[1], [0], [0], [1], [0, 0, 1, 1], [], []>} : vector<4x64xf32>, vector<64x64xf32>, vector<4x64xf32> -> vector<4x64xf32>
    %1301 = vector.broadcast %1101 : f32 to vector<4x64xf32>
    %1302 = arith.mulf %1301, %1300 : vector<4x64xf32>
    %cst_378 = arith.constant 5.000000e-01 : f32
    %1303 = arith.mulf %1104, %cst_378 : f32
    %1304 = vector.broadcast %1303 : f32 to vector<4x64xf32>
    %1305 = arith.mulf %1304, %1291 : vector<4x64xf32>
    %1306 = arith.addf %1302, %1305 : vector<4x64xf32>
    %1307 = vector.broadcast %1294 : f32 to vector<4x64xf32>
    %1308 = arith.mulf %1307, %1291 : vector<4x64xf32>
    %1309 = arith.addf %1074, %1308 : vector<4x64xf32>
    %1310 = vector.broadcast %1294 : f32 to vector<4x64xf32>
    %1311 = arith.mulf %1310, %1306 : vector<4x64xf32>
    %1312 = arith.subf %1291, %1311 : vector<4x64xf32>
    %1313 = vector.broadcast %1297 : f32 to vector<4x64xf32>
    %1314 = arith.mulf %1313, %1291 : vector<4x64xf32>
    %1315 = arith.addf %1312, %1314 : vector<4x64xf32>
    %c170_i32 = arith.constant 170 : i32
    %1316 = arith.addi %c170_i32, %arg1 : i32
    %1317 = arith.index_cast %1316 : i32 to index
    %1318 = memref.load %arg3[%1317] : memref<216xf32, #tpu.memory_space<smem>>
    %c206_i32 = arith.constant 206 : i32
    %1319 = arith.addi %c206_i32, %arg1 : i32
    %1320 = arith.index_cast %1319 : i32 to index
    %1321 = memref.load %arg3[%1320] : memref<216xf32, #tpu.memory_space<smem>>
    %c0_379 = arith.constant 0 : index
    %c0_380 = arith.constant 0 : index
    %c0_381 = arith.constant 0 : index
    %c0_382 = arith.constant 0 : index
    %1322 = vector.load %arg9[%c0_379, %c0_380, %c0_381, %c0_382] : memref<1x1x64x64xf32, #tpu.memory_space<vmem>>, vector<1x1x64x64xf32>
    %1323 = vector.shape_cast %1322 : vector<1x1x64x64xf32> to vector<64x64xf32>
    %cst_383 = arith.constant dense<0.000000e+00> : vector<4x64xf32>
    %1324 = tpu.matmul %1315, %1323, %cst_383 {dimension_numbers = #tpu.dot_dimension_numbers<[1], [0], [0], [1], [0, 0, 1, 1], [], []>} : vector<4x64xf32>, vector<64x64xf32>, vector<4x64xf32> -> vector<4x64xf32>
    %1325 = vector.broadcast %1101 : f32 to vector<4x64xf32>
    %1326 = arith.mulf %1325, %1324 : vector<4x64xf32>
    %cst_384 = arith.constant 5.000000e-01 : f32
    %1327 = arith.mulf %1104, %cst_384 : f32
    %1328 = vector.broadcast %1327 : f32 to vector<4x64xf32>
    %1329 = arith.mulf %1328, %1315 : vector<4x64xf32>
    %1330 = arith.addf %1326, %1329 : vector<4x64xf32>
    %1331 = vector.broadcast %1318 : f32 to vector<4x64xf32>
    %1332 = arith.mulf %1331, %1315 : vector<4x64xf32>
    %1333 = arith.addf %1309, %1332 : vector<4x64xf32>
    %1334 = vector.broadcast %1318 : f32 to vector<4x64xf32>
    %1335 = arith.mulf %1334, %1330 : vector<4x64xf32>
    %1336 = arith.subf %1312, %1335 : vector<4x64xf32>
    %1337 = vector.broadcast %1321 : f32 to vector<4x64xf32>
    %1338 = arith.mulf %1337, %1315 : vector<4x64xf32>
    %1339 = arith.addf %1336, %1338 : vector<4x64xf32>
    %c172_i32 = arith.constant 172 : i32
    %1340 = arith.addi %c172_i32, %arg1 : i32
    %1341 = arith.index_cast %1340 : i32 to index
    %1342 = memref.load %arg3[%1341] : memref<216xf32, #tpu.memory_space<smem>>
    %1343 = vector.broadcast %1342 : f32 to vector<4x64xf32>
    %1344 = arith.mulf %1343, %1339 : vector<4x64xf32>
    %1345 = arith.addf %1333, %1344 : vector<4x64xf32>
    %1346 = arith.subf %1205, %1275 : vector<4x64xf32>
    %1347 = vector.broadcast %1103 : f32 to vector<4x64xf32>
    %1348 = arith.mulf %1347, %1346 : vector<4x64xf32>
    %1349 = arith.addf %1078, %1348 : vector<4x64xf32>
    %1350 = arith.subf %1205, %1345 : vector<4x64xf32>
    %1351 = vector.broadcast %1104 : f32 to vector<4x64xf32>
    %1352 = arith.mulf %1351, %1350 : vector<4x64xf32>
    %1353 = arith.addf %1082, %1352 : vector<4x64xf32>
    %c0_385 = arith.constant 0 : index
    %c0_386 = arith.constant 0 : index
    %c0_387 = arith.constant 0 : index
    %c0_388 = arith.constant 0 : index
    %1354 = vector.load %arg7[%c0_385, %c0_386, %c0_387, %c0_388] : memref<1x1x64x64xf32, #tpu.memory_space<vmem>>, vector<1x1x64x64xf32>
    %1355 = vector.shape_cast %1354 : vector<1x1x64x64xf32> to vector<64x64xf32>
    %cst_389 = arith.constant dense<0.000000e+00> : vector<4x64xf32>
    %1356 = tpu.matmul %1205, %1355, %cst_389 {dimension_numbers = #tpu.dot_dimension_numbers<[1], [0], [0], [1], [0, 0, 1, 1], [], []>} : vector<4x64xf32>, vector<64x64xf32>, vector<4x64xf32> -> vector<4x64xf32>
    %1357 = vector.broadcast %1105 : f32 to vector<4x64xf32>
    %1358 = arith.mulf %1098, %1357 : vector<4x64xf32>
    %1359 = arith.subf %1356, %1358 : vector<4x64xf32>
    %1360 = arith.mulf %1100, %1105 : f32
    %cst_390 = arith.constant 0.000000e+00 : f32
    %1361 = arith.subf %cst_390, %1360 : f32
    %1362 = vector.broadcast %1361 : f32 to vector<4x64xf32>
    %1363 = arith.maximumf %1362, %1359 : vector<4x64xf32>
    %1364 = vector.broadcast %1360 : f32 to vector<4x64xf32>
    %1365 = arith.minimumf %1364, %1363 : vector<4x64xf32>
    %1366 = arith.subf %1359, %1365 : vector<4x64xf32>
    %1367 = arith.subf %1366, %1359 : vector<4x64xf32>
    %1368 = vector.broadcast %1102 : f32 to vector<4x64xf32>
    %1369 = arith.mulf %1368, %1367 : vector<4x64xf32>
    %c23 = arith.constant 23 : index
    %1370 = memref.load %arg2[%c23] : memref<36xf32, #tpu.memory_space<smem>>
    %c29 = arith.constant 29 : index
    %1371 = memref.load %arg2[%c29] : memref<36xf32, #tpu.memory_space<smem>>
    %c35 = arith.constant 35 : index
    %1372 = memref.load %arg2[%c35] : memref<36xf32, #tpu.memory_space<smem>>
    %1373 = vector.broadcast %1370 : f32 to vector<4x64xf32>
    %1374 = arith.mulf %1373, %1366 : vector<4x64xf32>
    %1375 = arith.addf %1369, %1374 : vector<4x64xf32>
    %c0_391 = arith.constant 0 : index
    %c0_392 = arith.constant 0 : index
    %c0_393 = arith.constant 0 : index
    %c0_394 = arith.constant 0 : index
    %1376 = vector.load %arg8[%c0_391, %c0_392, %c0_393, %c0_394] : memref<1x1x64x64xf32, #tpu.memory_space<vmem>>, vector<1x1x64x64xf32>
    %1377 = vector.shape_cast %1376 : vector<1x1x64x64xf32> to vector<64x64xf32>
    %cst_395 = arith.constant dense<0.000000e+00> : vector<4x64xf32>
    %1378 = tpu.matmul %1375, %1377, %cst_395 {dimension_numbers = #tpu.dot_dimension_numbers<[1], [0], [0], [1], [0, 0, 1, 1], [], []>} : vector<4x64xf32>, vector<64x64xf32>, vector<4x64xf32> -> vector<4x64xf32>
    %cst_396 = arith.constant 5.000000e-01 : f32
    %1379 = vector.broadcast %cst_396 : f32 to vector<4x64xf32>
    %1380 = arith.mulf %1378, %1379 : vector<4x64xf32>
    %1381 = vector.broadcast %1371 : f32 to vector<4x64xf32>
    %1382 = arith.mulf %1381, %1275 : vector<4x64xf32>
    %1383 = vector.broadcast %1372 : f32 to vector<4x64xf32>
    %1384 = arith.mulf %1383, %1345 : vector<4x64xf32>
    %1385 = arith.addf %1382, %1384 : vector<4x64xf32>
    %cst_397 = arith.constant 5.000000e-01 : f32
    %1386 = vector.broadcast %cst_397 : f32 to vector<4x64xf32>
    %1387 = arith.mulf %1385, %1386 : vector<4x64xf32>
    %1388 = arith.addf %1380, %1387 : vector<4x64xf32>
    %1389 = arith.addf %1349, %1353 : vector<4x64xf32>
    %cst_398 = arith.constant 5.000000e-01 : f32
    %1390 = vector.broadcast %cst_398 : f32 to vector<4x64xf32>
    %1391 = arith.mulf %1389, %1390 : vector<4x64xf32>
    %1392 = arith.subf %1388, %1391 : vector<4x64xf32>
    %1393 = arith.addf %1392, %8 : vector<4x64xf32>
    %1394 = vector.broadcast %6 : vector<1x64xf32> to vector<4x64xf32>
    %1395 = arith.mulf %1394, %1205 : vector<4x64xf32>
    %1396 = arith.addf %1371, %1372 : f32
    %cst_399 = arith.constant 5.000000e-01 : f32
    %1397 = arith.mulf %1396, %cst_399 : f32
    %1398 = vector.broadcast %1397 : f32 to vector<4x64xf32>
    %1399 = arith.mulf %1398, %1205 : vector<4x64xf32>
    %1400 = arith.addf %1395, %1399 : vector<4x64xf32>
    %cst_400 = arith.constant 5.000000e-01 : f32
    %1401 = arith.mulf %1370, %cst_400 : f32
    %c0_401 = arith.constant 0 : index
    %c0_402 = arith.constant 0 : index
    %c0_403 = arith.constant 0 : index
    %c0_404 = arith.constant 0 : index
    %1402 = vector.load %arg9[%c0_401, %c0_402, %c0_403, %c0_404] : memref<1x1x64x64xf32, #tpu.memory_space<vmem>>, vector<1x1x64x64xf32>
    %1403 = vector.shape_cast %1402 : vector<1x1x64x64xf32> to vector<64x64xf32>
    %cst_405 = arith.constant dense<0.000000e+00> : vector<4x64xf32>
    %1404 = tpu.matmul %1205, %1403, %cst_405 {dimension_numbers = #tpu.dot_dimension_numbers<[1], [0], [0], [1], [0, 0, 1, 1], [], []>} : vector<4x64xf32>, vector<64x64xf32>, vector<4x64xf32> -> vector<4x64xf32>
    %1405 = vector.broadcast %1401 : f32 to vector<4x64xf32>
    %1406 = arith.mulf %1405, %1404 : vector<4x64xf32>
    %1407 = arith.addf %1400, %1406 : vector<4x64xf32>
    %1408 = arith.subf %1393, %1407 : vector<4x64xf32>
    %c30_i32 = arith.constant 30 : i32
    %1409 = arith.addi %c30_i32, %arg1 : i32
    %1410 = arith.index_cast %1409 : i32 to index
    %1411 = memref.load %arg3[%1410] : memref<216xf32, #tpu.memory_space<smem>>
    %c66_i32 = arith.constant 66 : i32
    %1412 = arith.addi %c66_i32, %arg1 : i32
    %1413 = arith.index_cast %1412 : i32 to index
    %1414 = memref.load %arg3[%1413] : memref<216xf32, #tpu.memory_space<smem>>
    %1415 = vector.broadcast %6 : vector<1x64xf32> to vector<4x64xf32>
    %1416 = arith.mulf %1415, %1408 : vector<4x64xf32>
    %1417 = arith.addf %1371, %1372 : f32
    %cst_406 = arith.constant 5.000000e-01 : f32
    %1418 = arith.mulf %1417, %cst_406 : f32
    %1419 = vector.broadcast %1418 : f32 to vector<4x64xf32>
    %1420 = arith.mulf %1419, %1408 : vector<4x64xf32>
    %1421 = arith.addf %1416, %1420 : vector<4x64xf32>
    %cst_407 = arith.constant 5.000000e-01 : f32
    %1422 = arith.mulf %1370, %cst_407 : f32
    %c0_408 = arith.constant 0 : index
    %c0_409 = arith.constant 0 : index
    %c0_410 = arith.constant 0 : index
    %c0_411 = arith.constant 0 : index
    %1423 = vector.load %arg9[%c0_408, %c0_409, %c0_410, %c0_411] : memref<1x1x64x64xf32, #tpu.memory_space<vmem>>, vector<1x1x64x64xf32>
    %1424 = vector.shape_cast %1423 : vector<1x1x64x64xf32> to vector<64x64xf32>
    %cst_412 = arith.constant dense<0.000000e+00> : vector<4x64xf32>
    %1425 = tpu.matmul %1408, %1424, %cst_412 {dimension_numbers = #tpu.dot_dimension_numbers<[1], [0], [0], [1], [0, 0, 1, 1], [], []>} : vector<4x64xf32>, vector<64x64xf32>, vector<4x64xf32> -> vector<4x64xf32>
    %1426 = vector.broadcast %1422 : f32 to vector<4x64xf32>
    %1427 = arith.mulf %1426, %1425 : vector<4x64xf32>
    %1428 = arith.addf %1421, %1427 : vector<4x64xf32>
    %1429 = vector.broadcast %1411 : f32 to vector<4x64xf32>
    %1430 = arith.mulf %1429, %1408 : vector<4x64xf32>
    %1431 = arith.addf %1205, %1430 : vector<4x64xf32>
    %1432 = vector.broadcast %1411 : f32 to vector<4x64xf32>
    %1433 = arith.mulf %1432, %1428 : vector<4x64xf32>
    %1434 = arith.subf %1408, %1433 : vector<4x64xf32>
    %1435 = vector.broadcast %1414 : f32 to vector<4x64xf32>
    %1436 = arith.mulf %1435, %1408 : vector<4x64xf32>
    %1437 = arith.addf %1434, %1436 : vector<4x64xf32>
    %c32_i32 = arith.constant 32 : i32
    %1438 = arith.addi %c32_i32, %arg1 : i32
    %1439 = arith.index_cast %1438 : i32 to index
    %1440 = memref.load %arg3[%1439] : memref<216xf32, #tpu.memory_space<smem>>
    %c68_i32 = arith.constant 68 : i32
    %1441 = arith.addi %c68_i32, %arg1 : i32
    %1442 = arith.index_cast %1441 : i32 to index
    %1443 = memref.load %arg3[%1442] : memref<216xf32, #tpu.memory_space<smem>>
    %1444 = vector.broadcast %6 : vector<1x64xf32> to vector<4x64xf32>
    %1445 = arith.mulf %1444, %1437 : vector<4x64xf32>
    %1446 = arith.addf %1371, %1372 : f32
    %cst_413 = arith.constant 5.000000e-01 : f32
    %1447 = arith.mulf %1446, %cst_413 : f32
    %1448 = vector.broadcast %1447 : f32 to vector<4x64xf32>
    %1449 = arith.mulf %1448, %1437 : vector<4x64xf32>
    %1450 = arith.addf %1445, %1449 : vector<4x64xf32>
    %cst_414 = arith.constant 5.000000e-01 : f32
    %1451 = arith.mulf %1370, %cst_414 : f32
    %c0_415 = arith.constant 0 : index
    %c0_416 = arith.constant 0 : index
    %c0_417 = arith.constant 0 : index
    %c0_418 = arith.constant 0 : index
    %1452 = vector.load %arg9[%c0_415, %c0_416, %c0_417, %c0_418] : memref<1x1x64x64xf32, #tpu.memory_space<vmem>>, vector<1x1x64x64xf32>
    %1453 = vector.shape_cast %1452 : vector<1x1x64x64xf32> to vector<64x64xf32>
    %cst_419 = arith.constant dense<0.000000e+00> : vector<4x64xf32>
    %1454 = tpu.matmul %1437, %1453, %cst_419 {dimension_numbers = #tpu.dot_dimension_numbers<[1], [0], [0], [1], [0, 0, 1, 1], [], []>} : vector<4x64xf32>, vector<64x64xf32>, vector<4x64xf32> -> vector<4x64xf32>
    %1455 = vector.broadcast %1451 : f32 to vector<4x64xf32>
    %1456 = arith.mulf %1455, %1454 : vector<4x64xf32>
    %1457 = arith.addf %1450, %1456 : vector<4x64xf32>
    %1458 = vector.broadcast %1440 : f32 to vector<4x64xf32>
    %1459 = arith.mulf %1458, %1437 : vector<4x64xf32>
    %1460 = arith.addf %1431, %1459 : vector<4x64xf32>
    %1461 = vector.broadcast %1440 : f32 to vector<4x64xf32>
    %1462 = arith.mulf %1461, %1457 : vector<4x64xf32>
    %1463 = arith.subf %1434, %1462 : vector<4x64xf32>
    %1464 = vector.broadcast %1443 : f32 to vector<4x64xf32>
    %1465 = arith.mulf %1464, %1437 : vector<4x64xf32>
    %1466 = arith.addf %1463, %1465 : vector<4x64xf32>
    %c34_i32 = arith.constant 34 : i32
    %1467 = arith.addi %c34_i32, %arg1 : i32
    %1468 = arith.index_cast %1467 : i32 to index
    %1469 = memref.load %arg3[%1468] : memref<216xf32, #tpu.memory_space<smem>>
    %1470 = vector.broadcast %1469 : f32 to vector<4x64xf32>
    %1471 = arith.mulf %1470, %1466 : vector<4x64xf32>
    %1472 = arith.addf %1460, %1471 : vector<4x64xf32>
    %1473 = arith.index_cast %arg1 : i32 to index
    %1474 = memref.load %arg4[%1473] : memref<2xf32, #tpu.memory_space<smem>>
    %1475 = vector.broadcast %1474 : f32 to vector<4x64xf32>
    %1476 = arith.mulf %1475, %1472 : vector<4x64xf32>
    %c0_i32_420 = arith.constant 0 : i32
    %1477 = arith.cmpi eq, %arg1, %c0_i32_420 : i32
    %1478 = arith.extui %1477 : i1 to i32
    %c0_i32_421 = arith.constant 0 : i32
    %1479 = arith.cmpi ne, %1478, %c0_i32_421 : i32
    scf.if %1479 {
      %c0_424 = arith.constant 0 : index
      %c0_425 = arith.constant 0 : index
      %c0_426 = arith.constant 0 : index
      %1483 = vector.load %arg10[%c0_424, %c0_425, %c0_426] : memref<1x4x64xf32, #tpu.memory_space<vmem>>, vector<1x4x64xf32>
      %1484 = vector.shape_cast %1483 : vector<1x4x64xf32> to vector<4x64xf32>
      %1485 = vector.shape_cast %1476 : vector<4x64xf32> to vector<1x4x64xf32>
      tpu.vector_store %arg10[%c0_424, %c0_425, %c0_426], %1485 {strides = array<i32>} : memref<1x4x64xf32, #tpu.memory_space<vmem>>, vector<1x4x64xf32>,
    } else {
    }
    %c0_i32_422 = arith.constant 0 : i32
    %1480 = arith.cmpi ne, %arg1, %c0_i32_422 : i32
    %1481 = arith.extui %1480 : i1 to i32
    %c0_i32_423 = arith.constant 0 : i32
    %1482 = arith.cmpi ne, %1481, %c0_i32_423 : i32
    scf.if %1482 {
      %c0_424 = arith.constant 0 : index
      %c0_425 = arith.constant 0 : index
      %c0_426 = arith.constant 0 : index
      %1483 = vector.load %arg10[%c0_424, %c0_425, %c0_426] : memref<1x4x64xf32, #tpu.memory_space<vmem>>, vector<1x4x64xf32>
      %1484 = vector.shape_cast %1483 : vector<1x4x64xf32> to vector<4x64xf32>
      %1485 = arith.addf %1484, %1476 : vector<4x64xf32>
      %c0_427 = arith.constant 0 : index
      %c0_428 = arith.constant 0 : index
      %c0_429 = arith.constant 0 : index
      %1486 = vector.load %arg10[%c0_427, %c0_428, %c0_429] : memref<1x4x64xf32, #tpu.memory_space<vmem>>, vector<1x4x64xf32>
      %1487 = vector.shape_cast %1486 : vector<1x4x64xf32> to vector<4x64xf32>
      %1488 = vector.shape_cast %1485 : vector<4x64xf32> to vector<1x4x64xf32>
      tpu.vector_store %arg10[%c0_427, %c0_428, %c0_429], %1488 {strides = array<i32>} : memref<1x4x64xf32, #tpu.memory_space<vmem>>, vector<1x4x64xf32>,
    } else {
    }
    return
  }
  func.func @transform_0(%arg0: i32, %arg1: i32) -> i32 {
    %c0_i32 = arith.constant 0 : i32
    %c0_i32_0 = arith.constant 0 : i32
    return %c0_i32 : i32
  }
  func.func @transform_1(%arg0: i32, %arg1: i32) -> i32 {
    %c0_i32 = arith.constant 0 : i32
    %c0_i32_0 = arith.constant 0 : i32
    return %c0_i32 : i32
  }
  func.func @transform_2(%arg0: i32, %arg1: i32) -> i32 {
    %c0_i32 = arith.constant 0 : i32
    %c0_i32_0 = arith.constant 0 : i32
    return %c0_i32 : i32
  }
  func.func @transform_3(%arg0: i32, %arg1: i32) -> (i32, i32, i32) {
    %c0_i32 = arith.constant 0 : i32
    %c0_i32_0 = arith.constant 0 : i32
    %c0_i32_1 = arith.constant 0 : i32
    return %arg0, %c0_i32, %c0_i32_0 : i32, i32, i32
  }
  func.func @transform_4(%arg0: i32, %arg1: i32) -> (i32, i32, i32, i32) {
    %c0_i32 = arith.constant 0 : i32
    %c0_i32_0 = arith.constant 0 : i32
    %c0_i32_1 = arith.constant 0 : i32
    return %arg0, %arg1, %c0_i32, %c0_i32_0 : i32, i32, i32, i32
  }
  func.func @transform_5(%arg0: i32, %arg1: i32) -> (i32, i32, i32, i32) {
    %c0_i32 = arith.constant 0 : i32
    %c0_i32_0 = arith.constant 0 : i32
    %c0_i32_1 = arith.constant 0 : i32
    return %arg0, %arg1, %c0_i32, %c0_i32_0 : i32, i32, i32, i32
  }
  func.func @transform_6(%arg0: i32, %arg1: i32) -> (i32, i32, i32, i32) {
    %c0_i32 = arith.constant 0 : i32
    %c0_i32_0 = arith.constant 0 : i32
    %c0_i32_1 = arith.constant 0 : i32
    return %arg0, %arg1, %c0_i32, %c0_i32_0 : i32, i32, i32, i32
  }
  func.func @transform_7(%arg0: i32, %arg1: i32) -> (i32, i32, i32, i32) {
    %c0_i32 = arith.constant 0 : i32
    %c0_i32_0 = arith.constant 0 : i32
    %c0_i32_1 = arith.constant 0 : i32
    return %arg0, %arg1, %c0_i32, %c0_i32_0 : i32, i32, i32, i32
  }
  func.func @transform_8(%arg0: i32, %arg1: i32) -> (i32, i32, i32) {
    %c0_i32 = arith.constant 0 : i32
    %c0_i32_0 = arith.constant 0 : i32
    %c0_i32_1 = arith.constant 0 : i32
    return %arg0, %c0_i32, %c0_i32_0 : i32, i32, i32
  }
}

</mosaic_0001>

<bundles_post_ra>
// kernel: admm_block_forward.1
= control target key start
LH: loop header
LB: loop body
LE: loop exit
PB: predicated region body
PF: predicated region fallthrough
CT: control target
= control target key end

     0   :  { %s5339_s0 = inlined_call_operand.vmem [shape: f32[36], index: 0, kind: input, shape index: {}]   ;;  %s5340_s1 = inlined_call_operand.vmem [shape: f32[216], index: 1, kind: input, shape index: {}]   ;;  %s5341_s2 = inlined_call_operand.vmem [shape: f32[2], index: 2, kind: input, shape index: {}]   ;;  %s5342_s3 = inlined_call_operand.vmem [shape: f32[2,4,64], index: 3, kind: input, shape index: {}]   ;;  %s5343_s4 = inlined_call_operand.vmem [shape: f32[2,2,64,64], index: 4, kind: input, shape index: {}]   ;;  %s5344_s5 = inlined_call_operand.vmem [shape: f32[2,2,64,64], index: 5, kind: input, shape index: {}]   ;;  %s5345_s6 = inlined_call_operand.vmem [shape: f32[2,2,64,64], index: 6, kind: input, shape index: {}]   ;;  %s5346_s7 = inlined_call_operand.vmem [shape: f32[2,2,64,64], index: 7, kind: input, shape index: {}]   ;;  %s5347_s8 = inlined_call_operand.vmem [shape: f32[2,4,64], index: 8, kind: output, shape index: {}]  }
   0x1   :  { %5350 = sst [smem:[#allocation9_spill]] %s5339_s0 }
   0x2   :  { %5351 = sst [smem:[#allocation10_spill]] %s5340_s1 }
   0x3   :  { %5352 = sst [smem:[#allocation11_spill]] %s5341_s2 }
   0x4   :  { %13 = vsyncpa [#allocation3], 0 }
   0x5   :  { %14 = vsyncpa [#allocation5], 0  ;;  %s3518_s27 = smov 0   ;;  %s3520_s28 = smov 0  }
   0x6   :  { %s3522_s29 = smov 0   ;;  %s3524_s30 = smov 0  }
   0x7   :  { %s3526_s9 = smov 0  }
   0x8 LB: > { %s5353_s1 = sld [smem:[#allocation10_spill]]  ;;  %s3098_s13 = sadd.s32 4294967295, %s3467_s9   ;;  %s3467_s9 = sphi %s3526_s9, %s20_s9   ;;  %s3463_s30 = sphi %s3524_s30, %s5366_s30   ;;  %s3459_s29 = sphi %s3522_s29, %s5365_s29   ;;  %s3455_s28 = sphi %s3520_s28, %s5364_s28   ;;  %s3451_s27 = sphi %s3518_s27, %s5363_s27  }
   0x9   : > { %p3100_p0 = scmp.ge.s32.totalorder %s3467_s9, 1  ;;  %p264_p1 = scmp.lt.s32.totalorder %s3467_s9, 5 }
   0xa   : > { %p3549_p2 = scmp.eq.s32.totalorder %s3098_s13, 0  ;;  %s29_s17 = sadd.s32 1, %s3459_s29 }
   0xb   : > { %p3553_p3 = pnand %p3100_p0, %p264_p1  ;;  %p30_p6 = scmp.ge.s32.totalorder %s29_s17, 2 }
   0xc   : > { %s3469_s18 = smov [#allocation4]   ;;  %s32_s19 = sadd.s32 1, %s3463_s30 }
   0xd   : > { %p3242_p4 = pneg %p3553_p3  ;;  %s5368_s17 = smov (%p30_p6, %s29_s17), 0 }
   0xe   : > { %s286_s12 = sshll.u32 %s5353_s1, 4  ;;  %s5357_s0 = sld [smem:[#allocation9_spill]]  ;;  %s287_s12 = int_to_ptr.vmem [resolvable:$true] %s286_s12 }
   0xf   : > { %p3561_p5 = pnand %p3549_p2, %p3242_p4  ;;  %s5370_s19 = smov (!%p30_p6, %s32_s19), %s3463_s30 }
  0x10   : > { %p34_p7 = scmp.ge.s32.totalorder %s5370_s19, 2  ;;  %s5358_s2 = sld [smem:[#allocation11_spill]] }
  0x11   : > { %3248 = dma.vmem_to_smem (!%p3561_p5), %s287_s12, 32, %s3469_s18, [#allocation5]  }
  0x12   : > { %s3470_s26 = smov [#allocation2]   ;;  %s5372_s19 = smov (%p34_p7, %s5370_s19), 0 }
  0x13   : > { %s3471_s10 = smov [#allocation6]   ;;  %364 = sbr.rel (%p3553_p3) target bundleno = 4076 (0xfec), region = 52 }
  0x14   : > { %s276_s22 = sshll.u32 %s5357_s0, 4  ;;  %s277_s22 = int_to_ptr.vmem [resolvable:$true] %s276_s22 }
  0x15   : > { %3245 = dma.vmem_to_smem (!%p3561_p5), %s277_s22, 16, %s3470_s26, [#allocation3]  }
  0x16   : > { %s296_s25 = sshll.u32 %s5358_s2, 4  ;;  %s297_s25 = int_to_ptr.vmem [resolvable:$true] %s296_s25 }
  0x17   : > { %3251 = dma.vmem_to_smem (!%p3561_p5), %s297_s25, 16, %s3471_s10, [#allocation5]  }
  0x18   : > { %3442 = dma.done.wait (%p3549_p2), [#allocation3], 16  }
  0x19   : > { %3444 = vsyncadd (%p3549_p2), [#allocation3], 4294967280 }
  0x1a   : > { %3446 = dma.done.wait (%p3549_p2), [#allocation5], 48  }
  0x1b   : > { %3448 = vsyncadd (%p3549_p2), [#allocation5], 4294967248 }
  0x1c   : > { %381 = sfence }
  0x1d   : > { %p444_p8 = scmp.lt.s32.totalorder %s3455_s28, 1  ;;  %p450_p9 = scmp.lt.s32.totalorder %s3451_s27, 1  ;;  %vm503_vm0 = vcmask 523264   ;;  %v489_v37 = vlaneseq  ;;  %v3472_v43 = vmov 0.0  }
  0x1e   : > { %s3847_s23 = sld [smem:[#allocation2 + $0x18]]  ;;  %s828_s2 = sadd.s32 76, %s3451_s27 }
  0x1f   : > { %s5374_s28 = smov (!%p444_p8, %s3455_s28), 1  ;;  %s3849_s25 = sld [smem:[#allocation2 + $0x1e]]  ;;  %v490_v38 = vand.u32 127, %v489_v37 }
  0x20   : > { %s451_s11 = scalar_select %p450_p9, %s3451_s27, 1 }
  0x21   : > { %s3111_s12 = sshll.u32 %s5374_s28, 4  ;;  %s3109_s13 = sshll.u32 %s5374_s28, 2  ;;  %vm491_vm1 = vcmp.lt.s32.totalorder %v490_v38, 48 }
  0x22   : > { %s3110_s15 = sshll.u32 %s451_s11, 3  ;;  %s3607_s20 = scalar_lea.vmem %s5347_s8, %s3109_s13  ;;  %v3861_v44 = vsel %vm491_vm1, 1.0, %v3472_v43 }
  0x23   : > { %s454_s16 = sadd.s32 %s3111_s12, %s3110_s15  ;;  %s447_s18 = scalar_lea.vmem %s5342_s3, %s3109_s13 }
  0x24   : > { %s3609_s21 = sshll.u32 %s454_s16, 3  ;;  %v3719_v21 = vld [vmem:[%s447_s18] sm:$0xf]  ;;  %v584_v39 = vstv %s3847_s23  ;;  %s632_s16 = sadd.s32 36, %s3451_s27 }
  0x25   : > { %s3615_s24 = scalar_lea.vmem %s5344_s5, %s3609_s21  ;;  %s3621_s10 = scalar_lea.vmem %s5346_s7, %s3609_s21  ;;  %v586_v40 = vstv %s3849_s25  ;;  %v585_v41 = vmul.f32 %v584_v39, %v3719_v21  ;;  %v3866_v47 = vmul.f32 %v3861_v44, %v3719_v21 }
  0x26   : > { %v3624_v0 = vld [vmem:[%s3615_s24 + $0x38] sm:$0xff]  ;;  %v3628_v1 = vld [vmem:[%s3621_s10 + $0x30] sm:$0xff]  ;;  %v3636_v3 = vld [vmem:[%s3621_s10 + $0x28] sm:$0xff]  ;;  %s3645_s15 = scalar_lea.vmem %s5345_s6, %s3609_s21  ;;  %s3727_s22 = scalar_lea.vmem %s5343_s4, %s3609_s21  ;;  %v587_v42 = vmul.f32 %v586_v40, %v3719_v21 }
  0x27   : > { %515 = vmatpush.msra.mxu0 %v3624_v0  ;;  %v3631_v2 = vld [vmem:[%s3621_s10 + $0x38] sm:$0xff]  ;;  %v3639_v4 = vld [vmem:[%s3615_s24 + $0x30] sm:$0xff]  ;;  %v3649_v5 = vld [vmem:[%s3615_s24 + $0x28] sm:$0xff]  ;;  %s3822_s21 = sld [smem:[#allocation2 + $0x12]]  ;;  %s670_s13 = sadd.s32 2, %s3451_s27 }
  0x28   : > { %615 = vmatpush.msra.mxu2 %v3631_v2  ;;  %648 = vmatpush.msra.mxu3 %v3631_v2  ;;  %v3653_v6 = vld [vmem:[%s3621_s10 + $0x20] sm:$0xff]  ;;  %v3661_v8 = vld [vmem:[%s3645_s15 + $0x38] sm:$0xff]  ;;  %v3664_v9 = vld [vmem:[%s3645_s15 + $0x30] sm:$0xff]  ;;  %s593_s26 = sadd.f32 %s3849_s25, %s3847_s23  ;;  %v588_v46 = vadd.f32 %v587_v42, %v585_v41  ;;  %p3216_p10 = scmp.ne.s32.totalorder %s3451_s27, 0 }
  0x29   : > { %516 = vmatpush.msra.mxu0 %v3639_v4  ;;  %v3656_v7 = vld [vmem:[%s3615_s24 + $0x20] sm:$0xff]  ;;  %v3668_v10 = vld [vmem:[%s3621_s10 + $0x18] sm:$0xff]  ;;  %571 = vmatpush.msra.mxu1 %v3661_v8  ;;  %v3677_v12 = vld [vmem:[%s3645_s15 + $0x28] sm:$0xff]  ;;  %s3888_s14 = sld [smem:[#allocation4 + %s3451_s27]] }
  0x2a   : > { %616 = vmatpush.msra.mxu2 %v3628_v1  ;;  %649 = vmatpush.msra.mxu3 %v3628_v1  ;;  %v3671_v11 = vld [vmem:[%s3615_s24 + $0x18] sm:$0xff]  ;;  %v3681_v13 = vld [vmem:[%s3621_s10 + $0x10] sm:$0xff]  ;;  %v3690_v15 = vld [vmem:[%s3645_s15 + $0x20] sm:$0xff]  ;;  %s594_s11 = smul.f32 0.5, %s593_s26  ;;  %v589_v51 = vmul.f32 0.5, %v588_v46  ;;  %s633_s18 = sld [smem:[#allocation4 + %s632_s16]] }
  0x2b   : > { %517 = vmatpush.msra.mxu0 %v3649_v5  ;;  %v3684_v14 = vld [vmem:[%s3615_s24 + $0x10] sm:$0xff]  ;;  %572 = vmatpush.msra.mxu1 %v3664_v9  ;;  %v3699_v16 = vld [vmem:[%s3621_s10 + $0x8] sm:$0xff]  ;;  %v3708_v18 = vld [vmem:[%s3645_s15 + $0x18] sm:$0xff]  ;;  %s3906_s28 = sld [smem:[#allocation2 + $0x13]] }
  0x2c   : > { %617 = vmatpush.msra.mxu2 %v3636_v3  ;;  %650 = vmatpush.msra.mxu3 %v3636_v3  ;;  %v3702_v17 = vld [vmem:[%s3615_s24 + $0x8] sm:$0xff]  ;;  %v3712_v19 = vld [vmem:[%s3621_s10] sm:$0xff]  ;;  %v3738_v22 = vld [vmem:[%s3727_s22 + $0x38] sm:$0xff]  ;;  %v595_v45 = vstv %s594_s11  ;;  %s3910_s26 = sld [smem:[#allocation4 + %s670_s13]]  ;;  %s715_s13 = smul.f32 0.5, %s3847_s23 }
  0x2d   : > { %518 = vmatpush.msra.mxu0 %v3656_v7  ;;  %573 = vmatpush.msra.mxu1 %v3677_v12  ;;  %v3715_v20 = vld [vmem:[%s3615_s24] sm:$0xff]  ;;  %v3745_v23 = vld [vmem:[%s3727_s22 + $0x30] sm:$0xff]  ;;  %v3751_v24 = vld [vmem:[%s3727_s22 + $0x28] sm:$0xff]  ;;  %v3825_v33 = vstv %s3822_s21  ;;  %s598_s12 = smul.f32 0.5, %s3822_s21  ;;  %v596_v48 = vmul.f32 %v595_v45, %v3719_v21  ;;  %s672_s21 = sadd.s32 38, %s3451_s27 }
  0x2e   : > { %618 = vmatpush.msra.mxu2 %v3653_v6  ;;  %651 = vmatpush.msra.mxu3 %v3653_v6  ;;  %v3757_v25 = vld [vmem:[%s3727_s22 + $0x20] sm:$0xff]  ;;  %v3763_v26 = vld [vmem:[%s3727_s22 + $0x18] sm:$0xff]  ;;  %v3769_v27 = vld [vmem:[%s3727_s22 + $0x10] sm:$0xff]  ;;  %3302 = vrcp.f32 %v3825_v33  ;;  %s3912_s11 = sld [smem:[#allocation4 + %s672_s21]]  ;;  %vm539_vm2 = vweird.f32 %v3825_v33  ;;  %s833_s21 = smul.f32 0.5, %s3849_s25 }
  0x2f   : > { %519 = vmatpush.msra.mxu0 %v3671_v11  ;;  %574 = vmatpush.msra.mxu1 %v3690_v15  ;;  %v3775_v28 = vld [vmem:[%s3727_s22 + $0x8] sm:$0xff]  ;;  %v3781_v29 = vld [vmem:[%s3727_s22] sm:$0xff]  ;;  %v3803_v30 = vld [vmem:[%s3645_s15 + $0x10] sm:$0xff]  ;;  %v3871_v50 = vstv %s598_s12  ;;  %v597_v54 = vadd.f32 %v596_v48, %v3866_v47  ;;  %s710_s12 = sadd.s32 4, %s3451_s27  ;;  %s1055_s23 = sadd.s32 6, %s3451_s27 }
  0x30   : > { %619 = vmatpush.msra.mxu2 %v3668_v10  ;;  %652 = vmatpush.msra.mxu3 %v3668_v10  ;;  %v3807_v31 = vld [vmem:[%s3645_s15 + $0x8] sm:$0xff]  ;;  %v3811_v32 = vld [vmem:[%s3645_s15] sm:$0xff]  ;;  %v662_v37 = vstv %s3888_s14  ;;  %v667_v38 = vstv %s633_s18  ;;  %s3917_s16 = sld [smem:[#allocation4 + %s710_s12]]  ;;  %s1057_s25 = sadd.s32 42, %s3451_s27 }
  0x31   : > { %520 = vmatpush.msra.mxu0 %v3684_v14  ;;  %575 = vmatpush.msra.mxu1 %v3708_v18  ;;  %s3924_s14 = sld [smem:[#allocation2]] }
  0x32   : > { %620 = vmatpush.msra.mxu2 %v3681_v13  ;;  %653 = vmatpush.msra.mxu3 %v3681_v13  ;;  %s3929_s18 = sld [smem:[#allocation2 + $0xc]] }
  0x33   : > { %521 = vmatpush.msra.mxu0 %v3702_v17  ;;  %576 = vmatpush.msra.mxu1 %v3803_v30 }
  0x34   : > { %621 = vmatpush.msra.mxu2 %v3699_v16  ;;  %654 = vmatpush.msra.mxu3 %v3699_v16  ;;  %v3303_v48 = vpop.eup %3302 }
  0x35   : > { %522 = vmatpush.msra.mxu0 %v3715_v20  ;;  %577 = vmatpush.msra.mxu1 %v3807_v31  ;;  %vm540_vm3 = vweird.f32 %v3303_v48 }
  0x36   : > { %622 = vmatpush.msra.mxu2 %v3712_v19  ;;  %3124 = vmatmul.msk.f32.vlgmr.msra.gmra.mxu0 %vm503_vm0, %v3719_v21  ;;  %vm3934_vm4 = vmor %vm539_vm2, %vm540_vm3 }
  0x37   : > { %3132 = vmatmul.msk.f32.vlgmr.msra.gmra.mxu2 %vm503_vm0, %v3719_v21  ;;  %655 = vmatpush.msra.mxu3 %v3712_v19 }
  0x38   : > { %688 = vmatpush.msrb.mxu0 %v3631_v2  ;;  %767 = vmatpush.msrb.mxu2 %v3738_v22 }
  0x39   : > { %805 = vmatpush.msrb.mxu3 %v3738_v22  ;;  %578 = vmatpush.msra.mxu1 %v3811_v32 }
  0x3a   : > { %689 = vmatpush.msrb.mxu0 %v3628_v1  ;;  %768 = vmatpush.msrb.mxu2 %v3745_v23 }
  0x3b   : > { %806 = vmatpush.msrb.mxu3 %v3745_v23  ;;  %735 = vmatpush.msrb.mxu1 %v3738_v22 }
  0x3c   : > { %690 = vmatpush.msrb.mxu0 %v3636_v3  ;;  %769 = vmatpush.msrb.mxu2 %v3751_v24 }
  0x3d   : > { %807 = vmatpush.msrb.mxu3 %v3751_v24  ;;  %736 = vmatpush.msrb.mxu1 %v3745_v23 }
  0x3e   : > { %691 = vmatpush.msrb.mxu0 %v3653_v6  ;;  %770 = vmatpush.msrb.mxu2 %v3757_v25 }
  0x3f   : > { %808 = vmatpush.msrb.mxu3 %v3757_v25  ;;  %737 = vmatpush.msrb.mxu1 %v3751_v24 }
  0x40   : > { %692 = vmatpush.msrb.mxu0 %v3668_v10  ;;  %771 = vmatpush.msrb.mxu2 %v3763_v26 }
  0x41   : > { %809 = vmatpush.msrb.mxu3 %v3763_v26  ;;  %738 = vmatpush.msrb.mxu1 %v3757_v25 }
  0x42   : > { %693 = vmatpush.msrb.mxu0 %v3681_v13  ;;  %772 = vmatpush.msrb.mxu2 %v3769_v27 }
  0x43   : > { %810 = vmatpush.msrb.mxu3 %v3769_v27  ;;  %739 = vmatpush.msrb.mxu1 %v3763_v26 }
  0x44   : > { %694 = vmatpush.msrb.mxu0 %v3699_v16  ;;  %773 = vmatpush.msrb.mxu2 %v3775_v28 }
  0x45   : > { %811 = vmatpush.msrb.mxu3 %v3775_v28  ;;  %740 = vmatpush.msrb.mxu1 %v3769_v27 }
  0x46   : > { %695 = vmatpush.msrb.mxu0 %v3712_v19  ;;  %774 = vmatpush.msrb.mxu2 %v3781_v29 }
  0x47   : > { %812 = vmatpush.msrb.mxu3 %v3781_v29  ;;  %741 = vmatpush.msrb.mxu1 %v3775_v28 }
  0x48   : > { %857 = vmatpush.msra.mxu0 %v3631_v2  ;;  %940 = vmatpush.msra.mxu2 %v3624_v0 }
  0x49   : > { %742 = vmatpush.msrb.mxu1 %v3781_v29 }
  0x4a   : > { %858 = vmatpush.msra.mxu0 %v3628_v1  ;;  %941 = vmatpush.msra.mxu2 %v3639_v4 }
  0x4c   : > { %859 = vmatpush.msra.mxu0 %v3636_v3  ;;  %942 = vmatpush.msra.mxu2 %v3649_v5 }
  0x4e   : > { %860 = vmatpush.msra.mxu0 %v3653_v6  ;;  %943 = vmatpush.msra.mxu2 %v3656_v7 }
  0x50   : > { %861 = vmatpush.msra.mxu0 %v3668_v10  ;;  %944 = vmatpush.msra.mxu2 %v3671_v11 }
  0x52   : > { %862 = vmatpush.msra.mxu0 %v3681_v13  ;;  %945 = vmatpush.msra.mxu2 %v3684_v14 }
  0x54   : > { %863 = vmatpush.msra.mxu0 %v3699_v16  ;;  %946 = vmatpush.msra.mxu2 %v3702_v17 }
  0x56   : > { %864 = vmatpush.msra.mxu0 %v3712_v19  ;;  %947 = vmatpush.msra.mxu2 %v3715_v20 }
  0xb3   : > { %v524_v34 = vpop.f32.mrf.mxu0 }
  0xb4   : > { %v550_v35 = vmul.f32 %v3825_v33, %v524_v34 }
  0xb6   : > { %v551_v36 = vadd.f32 0.1, %v550_v35 }
  0xb8   : > { %3130 = vmatmul.msk.f32.vlgmr.msra.gmra.mxu1 %vm503_vm0, %v551_v36 }
  0xb9   : > { %895 = vmatpush.msra.mxu1 %v3631_v2 }
  0xba   : > { %v3869_v49 = vpop.f32.mrf.mxu2 }
  0xbb   : > { %896 = vmatpush.msra.mxu1 %v3628_v1  ;;  %v628_v55 = vmul.f32 %v3871_v50, %v3869_v49 }
  0xbd   : > { %897 = vmatpush.msra.mxu1 %v3636_v3  ;;  %v629_v58 = vadd.f32 %v628_v55, %v597_v54  ;;  %v545_v54 = vand.u32 2147483648, %v3825_v33  ;;  %v3922_v55 = vstv %s3906_s28 }
  0xbe   : > { %3304 = vrcp.f32 %v3922_v55  ;;  %vm976_vm6 = vweird.f32 %v3922_v55 }
  0xbf   : > { %898 = vmatpush.msra.mxu1 %v3653_v6 }
  0xc0   : > { %3135 = vmatmul.msk.f32.vlgmr.msrb.gmra.mxu1 %vm503_vm0, %v3719_v21 }
  0xc1   : > { %899 = vmatpush.msra.mxu1 %v3668_v10 }
  0xc3   : > { %900 = vmatpush.msra.mxu1 %v3681_v13 }
  0xc5   : > { %901 = vmatpush.msra.mxu1 %v3699_v16 }
  0xc7   : > { %902 = vmatpush.msra.mxu1 %v3712_v19 }
  0xc9   : > { %1073 = vmatpush.msrb.mxu1 %v3631_v2 }
  0xcb   : > { %1074 = vmatpush.msrb.mxu1 %v3628_v1 }
  0xcd   : > { %1075 = vmatpush.msrb.mxu1 %v3636_v3 }
  0xcf   : > { %1076 = vmatpush.msrb.mxu1 %v3653_v6 }
  0xd1   : > { %1077 = vmatpush.msrb.mxu1 %v3668_v10 }
  0xd3   : > { %1078 = vmatpush.msrb.mxu1 %v3681_v13 }
  0xd5   : > { %1079 = vmatpush.msrb.mxu1 %v3699_v16 }
  0xd7   : > { %1080 = vmatpush.msrb.mxu1 %v3712_v19 }
 0x135   : > { %v580_v52 = vpop.f32.mrf.mxu1 }
 0x136   : > { %v583_v53 = vmul.f32 0.5, %v580_v52 }
 0x138   : > { %v590_v56 = vadd.f32 %v589_v51, %v583_v53  ;;  %v535_v53 = vmul.f32 %v3303_v48, %v3825_v33 }
 0x13a   : > { %v3131_v57 = vadd.f32 -0.075, %v590_v56  ;;  %v536_v56 = vsub.f32 1.0, %v535_v53  ;;  %v712_v53 = vstv %s3917_s16 }
 0x13c   : > { %v592_v59 = vadd.f32 %v3131_v57, %v3866_v47  ;;  %v543_v57 = vand.u32 2147483647, %v3825_v33 }
 0x13e   : > { %v630_v60 = vsub.f32 %v592_v59, %v629_v58  ;;  %vm544_vm5 = vcmp.eq.f32.partialorder %v543_v57, 8.507059e+37  ;;  %v3950_v57 = vstv %s3924_s14  ;;  %s752_s14 = sadd.s32 72, %s3451_s27 }
 0x140   : > { %3133 = vmatmul.msk.f32.vlgmr.msra.gmra.mxu3 %vm503_vm0, %v630_v60  ;;  %v634_v61 = vmul.f32 %v3861_v44, %v630_v60  ;;  %v635_v62 = vmul.f32 %v630_v60, %v595_v45  ;;  %v668_v43 = vmul.f32 %v667_v38, %v630_v60  ;;  %v663_v58 = vmul.f32 %v662_v37, %v630_v60 }
 0x141   : > { %1000 = vmatpush.msra.mxu3 %v3661_v8  ;;  %v707_v38 = vstv %s3912_s11  ;;  %s844_s11 = sadd.s32 180, %s3451_s27 }
 0x142   : > { %v636_v34 = vadd.f32 %v635_v62, %v634_v61  ;;  %v537_v62 = vmul.f32 %v3303_v48, %v536_v56  ;;  %s845_s16 = sld [smem:[#allocation4 + %s844_s11]] }
 0x143   : > { %1001 = vmatpush.msra.mxu3 %v3664_v9 }
 0x145   : > { %1002 = vmatpush.msra.mxu3 %v3677_v12 }
 0x147   : > { %1003 = vmatpush.msra.mxu3 %v3690_v15 }
 0x149   : > { %1004 = vmatpush.msra.mxu3 %v3708_v18 }
 0x14b   : > { %1005 = vmatpush.msra.mxu3 %v3803_v30 }
 0x14d   : > { %1006 = vmatpush.msra.mxu3 %v3807_v31 }
 0x14f   : > { %1007 = vmatpush.msra.mxu3 %v3811_v32 }
 0x1c3   : > { %v657_v63 = vpop.f32.mrf.mxu3 }
 0x1c4   : > { %v660_v35 = vmul.f32 %v657_v63, %v3871_v50  ;;  %v702_v63 = vstv %s3910_s26  ;;  %s842_s26 = sadd.s32 144, %s3451_s27 }
 0x1c5   : > { %s4019_s12 = sld [smem:[#allocation4 + %s842_s26]] }
 0x1c6   : > { %v661_v36 = vadd.f32 %v660_v35, %v636_v34  ;;  %v546_v35 = vor.u32 1.1754944e-38, %v545_v54  ;;  %v3958_v34 = vstv %s3929_s18  ;;  %s3125_s18 = sld [smem:[#allocation2 + $0x6]] }
 0x1c8   : > { %v665_v41 = vmul.f32 %v662_v37, %v661_v36  ;;  %v664_v37 = vadd.f32 %v663_v58, %v3719_v21  ;;  %v982_v58 = vand.u32 2147483648, %v3922_v55 }
 0x1ca   : > { %v3893_v42 = vsub.f32 %v630_v60, %v665_v41  ;;  %v538_v60 = vadd.f32 %v3303_v48, %v537_v62 }
 0x1cc   : > { %v669_v46 = vadd.f32 %v668_v43, %v3893_v42 }
 0x1ce   : > { %3134 = vmatmul.msk.f32.vlgmr.msrb.gmra.mxu0 %vm503_vm0, %v669_v46  ;;  %v674_v51 = vmul.f32 %v3861_v44, %v669_v46  ;;  %v675_v52 = vmul.f32 %v669_v46, %v595_v45  ;;  %v703_v41 = vmul.f32 %v702_v63, %v669_v46 }
 0x1cf   : > { %1039 = vmatpush.msrb.mxu0 %v3631_v2 }
 0x1d0   : > { %v676_v59 = vadd.f32 %v675_v52, %v674_v51  ;;  %v542_v51 = vsel %vm3934_vm4, %v3303_v48, %v538_v60  ;;  %v708_v52 = vmul.f32 %v707_v38, %v669_v46  ;;  %v980_v46 = vand.u32 2147483647, %v3922_v55 }
 0x1d1   : > { %1040 = vmatpush.msrb.mxu0 %v3628_v1  ;;  %v547_v56 = vsel %vm544_vm5, %v546_v35, %v542_v51 }
 0x1d2   : > { %3220 = vpush %v547_v56  ;;  %vm981_vm9 = vcmp.eq.f32.partialorder %v980_v46, 8.507059e+37  ;;  %v838_v56 = vmul.f32 %v3958_v34, %v3869_v49 }
 0x1d3   : > { %1041 = vmatpush.msrb.mxu0 %v3636_v3 }
 0x1d5   : > { %1042 = vmatpush.msrb.mxu0 %v3653_v6 }
 0x1d7   : > { %1043 = vmatpush.msrb.mxu0 %v3668_v10 }
 0x1d9   : > { %1044 = vmatpush.msrb.mxu0 %v3681_v13 }
 0x1db   : > { %1045 = vmatpush.msrb.mxu0 %v3699_v16 }
 0x1dd   : > { %1046 = vmatpush.msrb.mxu0 %v3712_v19 }
 0x203   : > { %s3221_s1 = spop %3220 }
 0x204   : > { %s955_s26 = smul.f32 %s3221_s1, %s3125_s18  ;;  %s918_s18 = sadd.s32 148, %s3451_s27 }
 0x206   : > { %s956_s11 = ssub.f32 0.0, %s955_s26 }
 0x24b   : > { %v697_v45 = vpop.f32.mrf.mxu0 }
 0x24c   : > { %v700_v61 = vmul.f32 %v697_v45, %v3871_v50  ;;  %v3305_v50 = vpop.eup %3304 }
 0x24d   : > { %v972_v54 = vmul.f32 %v3305_v50, %v3922_v55  ;;  %vm977_vm7 = vweird.f32 %v3305_v50 }
 0x24e   : > { %v701_v36 = vadd.f32 %v700_v61, %v676_v59  ;;  %v3947_v59 = vstv %s715_s13  ;;  %v744_v61 = vpop.f32.mrf.mxu1  ;;  %vm978_vm8 = vmor %vm976_vm6, %vm977_vm7  ;;  %s754_s13 = sadd.s32 108, %s3451_s27 }
 0x24f   : > { %v973_v62 = vsub.f32 1.0, %v972_v54  ;;  %v748_v38 = vmul.f32 %v3950_v57, %v744_v61  ;;  %v749_v60 = vmul.f32 %v3947_v59, %v3719_v21  ;;  %s755_s0 = sld [smem:[#allocation4 + %s754_s13]] }
 0x250   : > { %v705_v43 = vmul.f32 %v702_v63, %v701_v36  ;;  %v3955_v63 = vstv %s833_s21  ;;  %s4026_s21 = sld [smem:[#allocation4 + %s752_s14]] }
 0x251   : > { %v974_v35 = vmul.f32 %v3305_v50, %v973_v62  ;;  %s919_s13 = sld [smem:[#allocation4 + %s918_s18]] }
 0x252   : > { %v706_v45 = vsub.f32 %v3893_v42, %v705_v43  ;;  %v704_v42 = vadd.f32 %v703_v41, %v664_v37  ;;  %v983_v43 = vor.u32 1.1754944e-38, %v982_v58  ;;  %s4099_s18 = sld [smem:[#allocation2 + $0x19]] }
 0x253   : > { %v975_v51 = vadd.f32 %v3305_v50, %v974_v35 }
 0x254   : > { %v709_v48 = vadd.f32 %v708_v52, %v706_v45  ;;  %v839_v52 = vmul.f32 %v3955_v63, %v3719_v21 }
 0x255   : > { %v979_v37 = vsel %vm978_vm8, %v3305_v50, %v975_v51 }
 0x256   : > { %v713_v36 = vmul.f32 %v712_v53, %v709_v48  ;;  %v750_v53 = vadd.f32 %v749_v60, %v748_v38  ;;  %v984_v61 = vsel %vm981_vm9, %v983_v43, %v979_v37  ;;  %v840_v58 = vadd.f32 %v839_v52, %v838_v56 }
 0x257   : > { %3222 = vpush %v984_v61  ;;  %v872_v38 = vstv %s4019_s12  ;;  %v877_v60 = vstv %s845_s16 }
 0x258   : > { %v3967_v54 = vadd.f32 %v713_v36, %v704_v42 }
 0x25a   : > { %v717_v41 = vmul.f32 %v3947_v59, %v3967_v54  ;;  %v835_v45 = vmul.f32 %v3955_v63, %v3967_v54 }
 0x25c   : > { %v718_v62 = vadd.f32 0.025, %v717_v41  ;;  %v836_v46 = vadd.f32 0.05, %v835_v45 }
 0x25e   : > { %v3973_v48 = vsub.f32 %v718_v62, %v750_v53  ;;  %v3975_v49 = vsub.f32 %v836_v46, %v840_v58  ;;  %v952_v53 = vstv %s3221_s1  ;;  %v782_v58 = vstv %s4026_s21  ;;  %s882_s1 = sadd.s32 182, %s3451_s27  ;;  %s1030_s21 = smul.f32 0.5, %s3906_s28 }
 0x25f   : > { %v787_v62 = vstv %s755_s0  ;;  %s880_s0 = sadd.s32 146, %s3451_s27  ;;  %s883_s14 = sld [smem:[#allocation4 + %s882_s1]] }
 0x260   : > { %3136 = vmatmul.msk.f32.vlgmr.msrb.gmra.mxu2 %vm503_vm0, %v3973_v48  ;;  %3138 = vmatmul.msk.f32.vlgmr.msra.gmra.mxu0 %vm503_vm0, %v3975_v49  ;;  %v870_v35 = vmul.f32 %v3975_v49, %v3955_v63  ;;  %v878_v52 = vmul.f32 %v877_v60, %v3975_v49  ;;  %v780_v41 = vmul.f32 %v3973_v48, %v3947_v59  ;;  %s881_s16 = sld [smem:[#allocation4 + %s880_s0]] }
 0x261   : > { %1113 = vmatpush.msrb.mxu2 %v3631_v2  ;;  %1188 = vmatpush.msra.mxu0 %v3738_v22  ;;  %s4175_s28 = sld [smem:[#allocation4 + %s1055_s23]] }
 0x263   : > { %1114 = vmatpush.msrb.mxu2 %v3628_v1  ;;  %1189 = vmatpush.msra.mxu0 %v3745_v23 }
 0x265   : > { %1115 = vmatpush.msrb.mxu2 %v3636_v3  ;;  %1190 = vmatpush.msra.mxu0 %v3751_v24 }
 0x267   : > { %1116 = vmatpush.msrb.mxu2 %v3653_v6  ;;  %1191 = vmatpush.msra.mxu0 %v3757_v25 }
 0x268   : > { %3140 = vmatmul.msk.f32.vlgmr.msra.gmra.mxu2 %vm503_vm0, %v3967_v54  ;;  %3148 = vmatmul.msk.f32.vlgmr.msrb.gmra.mxu0 %vm503_vm0, %v3967_v54 }
 0x269   : > { %1117 = vmatpush.msrb.mxu2 %v3668_v10  ;;  %1192 = vmatpush.msra.mxu0 %v3763_v26 }
 0x26b   : > { %1118 = vmatpush.msrb.mxu2 %v3681_v13  ;;  %1193 = vmatpush.msra.mxu0 %v3769_v27 }
 0x26d   : > { %1119 = vmatpush.msrb.mxu2 %v3699_v16  ;;  %1194 = vmatpush.msra.mxu0 %v3775_v28 }
 0x26f   : > { %1120 = vmatpush.msrb.mxu2 %v3712_v19  ;;  %1195 = vmatpush.msra.mxu0 %v3781_v29 }
 0x271   : > { %1270 = vmatpush.msra.mxu2 %v3631_v2  ;;  %1340 = vmatpush.msrb.mxu0 %v3631_v2 }
 0x273   : > { %1271 = vmatpush.msra.mxu2 %v3628_v1  ;;  %1341 = vmatpush.msrb.mxu0 %v3628_v1 }
 0x275   : > { %1272 = vmatpush.msra.mxu2 %v3636_v3  ;;  %1342 = vmatpush.msrb.mxu0 %v3636_v3 }
 0x277   : > { %1273 = vmatpush.msra.mxu2 %v3653_v6  ;;  %1343 = vmatpush.msrb.mxu0 %v3653_v6 }
 0x279   : > { %1274 = vmatpush.msra.mxu2 %v3668_v10  ;;  %1344 = vmatpush.msrb.mxu0 %v3668_v10 }
 0x27b   : > { %1275 = vmatpush.msra.mxu2 %v3681_v13  ;;  %1345 = vmatpush.msrb.mxu0 %v3681_v13 }
 0x27d   : > { %1276 = vmatpush.msra.mxu2 %v3699_v16  ;;  %1346 = vmatpush.msrb.mxu0 %v3699_v16 }
 0x27f   : > { %1277 = vmatpush.msra.mxu2 %v3712_v19  ;;  %1347 = vmatpush.msrb.mxu0 %v3712_v19 }
 0x2dd   : > { %v866_v50 = vpop.f32.mrf.mxu0 }
 0x2de   : > { %v869_v42 = vmul.f32 %v866_v50, %v3958_v34  ;;  %v953_v50 = vmul.f32 0.1, %v952_v53 }
 0x2e0   : > { %v871_v36 = vadd.f32 %v870_v35, %v869_v42  ;;  %v788_v35 = vmul.f32 %v787_v62, %v3973_v48 }
 0x2e2   : > { %v875_v43 = vmul.f32 %v872_v38, %v871_v36  ;;  %v957_v36 = vstv %s956_s11  ;;  %s792_s11 = sadd.s32 110, %s3451_s27 }
 0x2e3   : > { %v776_v51 = vpop.f32.mrf.mxu2  ;;  %s793_s1 = sld [smem:[#allocation4 + %s792_s11]]  ;;  %s1097_s11 = sadd.s32 44, %s3451_s27 }
 0x2e4   : > { %v4032_v56 = vsub.f32 %v3975_v49, %v875_v43  ;;  %v779_v37 = vmul.f32 %v776_v51, %v3950_v57 }
 0x2e6   : > { %v4039_v45 = vadd.f32 %v878_v52, %v4032_v56  ;;  %v781_v61 = vadd.f32 %v780_v41, %v779_v37  ;;  %v959_v52 = vstv %s955_s26  ;;  %s790_s26 = sadd.s32 74, %s3451_s27 }
 0x2e7   : > { %s791_s0 = sld [smem:[#allocation4 + %s790_s26]]  ;;  %s1095_s26 = sadd.s32 8, %s3451_s27 }
 0x2e8   : > { %v785_v46 = vmul.f32 %v782_v58, %v781_v61  ;;  %3139 = vmatmul.msk.f32.vlgmr.msra.gmra.mxu1 %vm503_vm0, %v4039_v45 }
 0x2e9   : > { %1226 = vmatpush.msra.mxu1 %v3738_v22 }
 0x2ea   : > { %v4048_v42 = vsub.f32 %v3973_v48, %v785_v46 }
 0x2eb   : > { %v949_v60 = vpop.f32.mrf.mxu2  ;;  %1227 = vmatpush.msra.mxu1 %v3745_v23 }
 0x2ec   : > { %v954_v43 = vsub.f32 %v949_v60, %v953_v50  ;;  %v4053_v51 = vadd.f32 %v788_v35, %v4048_v42 }
 0x2ed   : > { %1228 = vmatpush.msra.mxu1 %v3751_v24 }
 0x2ee   : > { %v958_v37 = vmax.f32 %v957_v36, %v954_v43  ;;  %3137 = vmatmul.msk.f32.vlgmr.msrb.gmra.mxu3 %vm503_vm0, %v4053_v51  ;;  %v908_v36 = vmul.f32 %v4039_v45, %v3955_v63 }
 0x2ef   : > { %1156 = vmatpush.msrb.mxu3 %v3738_v22  ;;  %1229 = vmatpush.msra.mxu1 %v3757_v25 }
 0x2f0   : > { %v960_v41 = vmin.f32 %v959_v52, %v958_v37  ;;  %v915_v37 = vstv %s883_s14  ;;  %s4105_s14 = sld [smem:[#allocation2 + $0x1f]] }
 0x2f1   : > { %1157 = vmatpush.msrb.mxu3 %v3745_v23  ;;  %1230 = vmatpush.msra.mxu1 %v3763_v26 }
 0x2f2   : > { %v961_v53 = vsub.f32 %v954_v43, %v960_v41 }
 0x2f3   : > { %1158 = vmatpush.msrb.mxu3 %v3751_v24  ;;  %1231 = vmatpush.msra.mxu1 %v3769_v27 }
 0x2f4   : > { %v962_v61 = vsub.f32 %v961_v53, %v954_v43  ;;  %v987_v46 = vmul.f32 %v3922_v55, %v961_v53  ;;  %v910_v43 = vstv %s881_s16  ;;  %v916_v53 = vmul.f32 %v915_v37, %v4039_v45  ;;  %s829_s16 = sld [smem:[#allocation4 + %s828_s2]] }
 0x2f5   : > { %1159 = vmatpush.msrb.mxu3 %v3757_v25  ;;  %1232 = vmatpush.msra.mxu1 %v3775_v28 }
 0x2f6   : > { %v4067_v62 = vmul.f32 %v962_v61, %v3825_v33  ;;  %v920_v61 = vstv %s919_s13  ;;  %s1025_s2 = sadd.f32 %s4105_s14, %s4099_s18  ;;  %s1255_s23 = smul.f32 0.5, %s4105_s14 }
 0x2f7   : > { %1160 = vmatpush.msrb.mxu3 %v3763_v26  ;;  %1233 = vmatpush.msra.mxu1 %v3781_v29  ;;  %s1058_s13 = sld [smem:[#allocation4 + %s1057_s25]]  ;;  %s1141_s25 = smul.f32 0.5, %s4099_s18 }
 0x2f8   : > { %v988_v50 = vadd.f32 %v987_v46, %v4067_v62  ;;  %s1026_s12 = smul.f32 0.5, %s1025_s2 }
 0x2f9   : > { %1161 = vmatpush.msrb.mxu3 %v3769_v27 }
 0x2fa   : > { %3147 = vmatmul.msk.f32.vlgmr.msra.gmra.mxu3 %vm503_vm0, %v988_v50  ;;  %v911_v50 = vmul.f32 %v910_v43, %v4039_v45  ;;  %v783_v45 = vmul.f32 %v782_v58, %v3973_v48 }
 0x2fb   : > { %1162 = vmatpush.msrb.mxu3 %v3775_v28 }
 0x2fd   : > { %1163 = vmatpush.msrb.mxu3 %v3781_v29 }
 0x2ff   : > { %1302 = vmatpush.msra.mxu3 %v3631_v2 }
 0x301   : > { %1303 = vmatpush.msra.mxu3 %v3628_v1 }
 0x303   : > { %1304 = vmatpush.msra.mxu3 %v3636_v3 }
 0x305   : > { %1305 = vmatpush.msra.mxu3 %v3653_v6 }
 0x307   : > { %1306 = vmatpush.msra.mxu3 %v3668_v10 }
 0x309   : > { %1307 = vmatpush.msra.mxu3 %v3681_v13 }
 0x30b   : > { %1308 = vmatpush.msra.mxu3 %v3699_v16 }
 0x30d   : > { %1309 = vmatpush.msra.mxu3 %v3712_v19 }
 0x365   : > { %v904_v33 = vpop.f32.mrf.mxu1 }
 0x366   : > { %v907_v35 = vmul.f32 %v904_v33, %v3958_v34  ;;  %v873_v34 = vmul.f32 %v872_v38, %v3975_v49 }
 0x368   : > { %v909_v60 = vadd.f32 %v908_v36, %v907_v35  ;;  %v874_v35 = vadd.f32 %v873_v34, %v3719_v21  ;;  %v820_v36 = vstv %s791_s0  ;;  %v784_v34 = vadd.f32 %v783_v45, %v3719_v21  ;;  %s1096_s0 = sld [smem:[#allocation4 + %s1095_s26]]  ;;  %s1175_s26 = sadd.s32 114, %s3451_s27 }
 0x36a   : > { %v913_v52 = vmul.f32 %v910_v43, %v909_v60  ;;  %v825_v60 = vstv %s793_s1  ;;  %v912_v43 = vadd.f32 %v911_v50, %v874_v35  ;;  %v1015_v50 = vstv %s4105_s14  ;;  %s1098_s1 = sld [smem:[#allocation4 + %s1097_s11]]  ;;  %s1502_s14 = sadd.s32 48, %s3451_s27 }
 0x36c   : > { %v914_v41 = vsub.f32 %v4032_v56, %v913_v52  ;;  %v818_v56 = vmul.f32 %v4053_v51, %v3947_v59  ;;  %v821_v59 = vmul.f32 %v820_v36, %v4053_v51 }
 0x36e   : > { %v917_v63 = vadd.f32 %v916_v53, %v914_v41  ;;  %v826_v41 = vmul.f32 %v825_v60, %v4053_v51  ;;  %v830_v53 = vstv %s829_s16  ;;  %v822_v48 = vadd.f32 %v821_v59, %v784_v34  ;;  %s1135_s16 = sadd.s32 10, %s3451_s27 }
 0x36f   : > { %s1136_s2 = sld [smem:[#allocation4 + %s1135_s16]]  ;;  %s1289_s16 = sadd.s32 186, %s3451_s27 }
 0x370   : > { %v921_v49 = vmul.f32 %v920_v61, %v917_v63 }
 0x371   : > { %v814_v46 = vpop.f32.mrf.mxu3 }
 0x372   : > { %v817_v33 = vmul.f32 %v814_v46, %v3950_v57  ;;  %v4111_v52 = vadd.f32 %v921_v49, %v912_v43  ;;  %v1013_v46 = vstv %s4099_s18  ;;  %v1048_v43 = vpop.f32.mrf.mxu0  ;;  %s1500_s18 = sadd.s32 12, %s3451_s27 }
 0x374   : > { %v819_v38 = vadd.f32 %v818_v56, %v817_v33  ;;  %v926_v61 = vsub.f32 %v3967_v54, %v4111_v52  ;;  %v1016_v56 = vmul.f32 %v1015_v50, %v4111_v52 }
 0x376   : > { %v823_v57 = vmul.f32 %v820_v36, %v819_v38  ;;  %v927_v51 = vmul.f32 %v926_v61, %v586_v40  ;;  %v4141_v38 = vstv %s1026_s12  ;;  %s3141_s12 = sld [smem:[#allocation2 + $0x1]] }
 0x378   : > { %v824_v37 = vsub.f32 %v4048_v42, %v823_v57  ;;  %v4146_v60 = vadd.f32 0.1, %v927_v51  ;;  %v4148_v57 = vstv %s1030_s21  ;;  %s3143_s21 = sld [smem:[#allocation2 + $0xd]] }
 0x37a   : > { %v827_v63 = vadd.f32 %v826_v41, %v824_v37  ;;  %v1052_v37 = vmul.f32 %v4148_v57, %v1048_v43 }
 0x37c   : > { %v831_v58 = vmul.f32 %v830_v53, %v827_v63 }
 0x37d   : > { %v1009_v36 = vpop.f32.mrf.mxu3 }
 0x37e   : > { %v4123_v33 = vadd.f32 %v831_v58, %v822_v48  ;;  %v1012_v59 = vmul.f32 0.5, %v1009_v36  ;;  %v4213_v36 = vstv %s1255_s23  ;;  %s3223_s23 = spop %3222 }
 0x380   : > { %v923_v42 = vsub.f32 %v3967_v54, %v4123_v33  ;;  %v1014_v21 = vmul.f32 %v1013_v46, %v4123_v33  ;;  %3151 = vmatmul.msk.f32.vlgmr.msrb.gmra.mxu3 %vm503_vm0, %v4123_v33 }
 0x381   : > { %1484 = vmatpush.msrb.mxu3 %v3631_v2  ;;  %v1024_v2 = vmul.f32 %v3861_v44, %v3967_v54 }
 0x382   : > { %v924_v35 = vmul.f32 %v923_v42, %v584_v39  ;;  %v1017_v49 = vadd.f32 %v1016_v56, %v1014_v21  ;;  %v1028_v39 = vmul.f32 %v4141_v38, %v3967_v54  ;;  %v4209_v21 = vstv %s3141_s12  ;;  %s1290_s12 = sld [smem:[#allocation4 + %s1289_s16]] }
 0x383   : > { %1485 = vmatpush.msrb.mxu3 %v3628_v1 }
 0x384   : > { %v4144_v40 = vadd.f32 0.05, %v924_v35  ;;  %v1018_v45 = vmul.f32 0.5, %v1017_v49  ;;  %v1029_v34 = vadd.f32 %v1028_v39, %v1024_v2  ;;  %v4211_v35 = vstv %s3143_s21  ;;  %s3142_s21 = sld [smem:[#allocation2 + $0x7]] }
 0x385   : > { %1486 = vmatpush.msrb.mxu3 %v3636_v3  ;;  %v1254_v2 = vmul.f32 0.5, %v4146_v60  ;;  %v1284_v39 = vmul.f32 %v4213_v36, %v4111_v52 }
 0x386   : > { %v1020_v1 = vadd.f32 %v4146_v60, %v4144_v40  ;;  %v1019_v41 = vadd.f32 %v1018_v45, %v1012_v59  ;;  %v1053_v63 = vadd.f32 %v1052_v37, %v1029_v34  ;;  %v4215_v45 = vstv %s1141_s25 }
 0x387   : > { %1487 = vmatpush.msrb.mxu3 %v3653_v6  ;;  %v1170_v59 = vmul.f32 %v4215_v45, %v4123_v33  ;;  %v1140_v37 = vmul.f32 0.5, %v4144_v40 }
 0x388   : > { %v1021_v53 = vmul.f32 0.5, %v1020_v1 }
 0x389   : > { %1488 = vmatpush.msrb.mxu3 %v3668_v10 }
 0x38a   : > { %v1022_v3 = vsub.f32 %v1019_v41, %v1021_v53  ;;  %s1400_s25 = smul.f32 %s3223_s23, %s3142_s21 }
 0x38b   : > { %1489 = vmatpush.msrb.mxu3 %v3681_v13  ;;  %v1092_v13 = vstv %s1058_s13  ;;  %s1173_s13 = sadd.s32 78, %s3451_s27 }
 0x38c   : > { %v1023_v48 = vadd.f32 %v1022_v3, %v3866_v47  ;;  %s4316_s11 = sld [smem:[#allocation4 + %s1173_s13]]  ;;  %s1211_s13 = sadd.s32 80, %s3451_s27 }
 0x38d   : > { %1490 = vmatpush.msrb.mxu3 %v3699_v16 }
 0x38e   : > { %v1054_v58 = vsub.f32 %v1023_v48, %v1053_v63 }
 0x38f   : > { %1491 = vmatpush.msrb.mxu3 %v3712_v19 }
 0x390   : > { %3149 = vmatmul.msk.f32.vlgmr.msrb.gmra.mxu1 %vm503_vm0, %v1054_v58 }
 0x391   : > { %1385 = vmatpush.msrb.mxu1 %v3624_v0  ;;  %v1059_v0 = vmul.f32 %v3861_v44, %v1054_v58 }
 0x393   : > { %1386 = vmatpush.msrb.mxu1 %v3639_v4  ;;  %v1060_v4 = vmul.f32 %v1054_v58, %v4141_v38 }
 0x395   : > { %1387 = vmatpush.msrb.mxu1 %v3649_v5  ;;  %v1061_v6 = vadd.f32 %v1060_v4, %v1059_v0  ;;  %v4240_v0 = vld [vmem:[%s3621_s10 + $0x38] sm:$0xff] }
 0x396   : > { %v4244_v4 = vld [vmem:[%s3727_s22 + $0x38] sm:$0xff] }
 0x397   : > { %1388 = vmatpush.msrb.mxu1 %v3656_v7 }
 0x399   : > { %1389 = vmatpush.msrb.mxu1 %v3671_v11  ;;  %v1087_v11 = vstv %s4175_s28  ;;  %s4304_s28 = sld [smem:[#allocation2 + $0x14]] }
 0x39b   : > { %1390 = vmatpush.msrb.mxu1 %v3684_v14 }
 0x39d   : > { %1391 = vmatpush.msrb.mxu1 %v3702_v17  ;;  %v1093_v17 = vmul.f32 %v1092_v13, %v1054_v58  ;;  %v4268_v13 = vld [vmem:[%s3727_s22 + $0x20] sm:$0xff] }
 0x39f   : > { %1392 = vmatpush.msrb.mxu1 %v3715_v20 }
 0x403   : > { %v1165_v51 = vpop.f32.mrf.mxu3 }
 0x404   : > { %v1169_v43 = vmul.f32 %v4209_v21, %v1165_v51 }
 0x406   : > { %v1171_v53 = vadd.f32 %v1170_v59, %v1169_v43  ;;  %v1322_v59 = vstv %s1290_s12  ;;  %s1249_s12 = sadd.s32 82, %s3451_s27 }
 0x407   : > { %s1250_s21 = sld [smem:[#allocation4 + %s1249_s12]] }
 0x40d   : > { %v1082_v5 = vpop.f32.mrf.mxu1 }
 0x40e   : > { %v1085_v7 = vmul.f32 %v1082_v5, %v4148_v57  ;;  %v4248_v5 = vld [vmem:[%s3621_s10 + $0x30] sm:$0xff] }
 0x410   : > { %v1086_v10 = vadd.f32 %v1085_v7, %v1061_v6  ;;  %v4252_v6 = vld [vmem:[%s3727_s22 + $0x30] sm:$0xff]  ;;  %v4256_v7 = vld [vmem:[%s3621_s10 + $0x28] sm:$0xff] }
 0x412   : > { %v1090_v14 = vmul.f32 %v1087_v11, %v1086_v10  ;;  %v4260_v10 = vld [vmem:[%s3727_s22 + $0x28] sm:$0xff] }
 0x414   : > { %v1091_v16 = vsub.f32 %v1054_v58, %v1090_v14  ;;  %v4274_v14 = vld [vmem:[%s3621_s10 + $0x18] sm:$0xff] }
 0x416   : > { %v1094_v19 = vadd.f32 %v1093_v17, %v1091_v16  ;;  %v4282_v17 = vld [vmem:[%s3621_s10 + $0x10] sm:$0xff] }
 0x418   : > { %3150 = vmatmul.msk.f32.vlgmr.msrb.gmra.mxu2 %vm503_vm0, %v1094_v19 }
 0x419   : > { %1445 = vmatpush.msrb.mxu2 %v3661_v8  ;;  %v1099_v8 = vmul.f32 %v3861_v44, %v1094_v19 }
 0x41b   : > { %1446 = vmatpush.msrb.mxu2 %v3664_v9  ;;  %v1100_v9 = vmul.f32 %v1094_v19, %v4141_v38 }
 0x41d   : > { %1447 = vmatpush.msrb.mxu2 %v3677_v12 }
 0x41f   : > { %1448 = vmatpush.msrb.mxu2 %v3690_v15  ;;  %v1101_v15 = vadd.f32 %v1100_v9, %v1099_v8  ;;  %v4292_v8 = vld [vmem:[%s3621_s10] sm:$0xff] }
 0x420   : > { %3154 = vmatmul.msk.f32.vlgmr.msra.gmra.mxu2 %vm503_vm0, %v4111_v52 }
 0x421   : > { %1449 = vmatpush.msrb.mxu2 %v3708_v18 }
 0x423   : > { %1450 = vmatpush.msrb.mxu2 %v3803_v30 }
 0x425   : > { %1451 = vmatpush.msrb.mxu2 %v3807_v31 }
 0x427   : > { %1452 = vmatpush.msrb.mxu2 %v3811_v32  ;;  %v1137_v32 = vstv %s1136_s2 }
 0x429   : > { %1601 = vmatpush.msra.mxu2 %v3738_v22  ;;  %v1127_v22 = vstv %s1096_s0  ;;  %s1176_s0 = sld [smem:[#allocation4 + %s1175_s26]] }
 0x42a   : > { %s1401_s26 = ssub.f32 0.0, %s1400_s25 }
 0x42b   : > { %1602 = vmatpush.msra.mxu2 %v3745_v23  ;;  %v1132_v23 = vstv %s1098_s1  ;;  %s1287_s1 = sadd.s32 150, %s3451_s27 }
 0x42c   : > { %v1133_v31 = vmul.f32 %v1132_v23, %v1094_v19  ;;  %s4323_s2 = sld [smem:[#allocation4 + %s1287_s1]]  ;;  %s1213_s1 = sadd.s32 116, %s3451_s27 }
 0x42d   : > { %1603 = vmatpush.msra.mxu2 %v3751_v24  ;;  %v1088_v24 = vmul.f32 %v1087_v11, %v1054_v58  ;;  %v4264_v11 = vld [vmem:[%s3621_s10 + $0x20] sm:$0xff]  ;;  %s1214_s16 = sld [smem:[#allocation4 + %s1213_s1]] }
 0x42e   : > { %s4440_s1 = sld [smem:[#allocation2 + $0x1a]] }
 0x42f   : > { %1604 = vmatpush.msra.mxu2 %v3757_v25  ;;  %v1089_v61 = vadd.f32 %v1088_v24, %v3967_v54 }
 0x431   : > { %1605 = vmatpush.msra.mxu2 %v3763_v26  ;;  %v1128_v26 = vmul.f32 %v1127_v22, %v1094_v19  ;;  %v4287_v19 = vld [vmem:[%s3621_s10 + $0x8] sm:$0xff] }
 0x433   : > { %1606 = vmatpush.msra.mxu2 %v3769_v27  ;;  %v1129_v49 = vadd.f32 %v1128_v26, %v1089_v61  ;;  %v1208_v61 = vstv %s1176_s0  ;;  %s1212_s0 = sld [smem:[#allocation4 + %s1211_s13]] }
 0x435   : > { %1607 = vmatpush.msra.mxu2 %v3775_v28 }
 0x437   : > { %1608 = vmatpush.msra.mxu2 %v3781_v29 }
 0x49b   : > { %v1122_v12 = vpop.f32.mrf.mxu2 }
 0x49c   : > { %v1125_v18 = vmul.f32 %v1122_v12, %v4148_v57 }
 0x49e   : > { %v1126_v20 = vadd.f32 %v1125_v18, %v1101_v15 }
 0x4a0   : > { %v1130_v25 = vmul.f32 %v1127_v22, %v1126_v20 }
 0x4a2   : > { %v1131_v30 = vsub.f32 %v1091_v16, %v1130_v25  ;;  %v4278_v16 = vld [vmem:[%s3727_s22 + $0x18] sm:$0xff] }
 0x4a3   : > { %v1279_v56 = vpop.f32.mrf.mxu2 }
 0x4a4   : > { %v1134_v42 = vadd.f32 %v1133_v31, %v1131_v30  ;;  %v1283_v54 = vmul.f32 %v4211_v35, %v1279_v56 }
 0x4a6   : > { %v1138_v38 = vmul.f32 %v1137_v32, %v1134_v42  ;;  %v1285_v3 = vadd.f32 %v1284_v39, %v1283_v54  ;;  %v1203_v32 = vstv %s4316_s11  ;;  %v1317_v39 = vstv %s4323_s2  ;;  %s1325_s11 = sadd.s32 152, %s3451_s27 }
 0x4a8   : > { %v4218_v57 = vadd.f32 %v1138_v38, %v1129_v49 }
 0x4aa   : > { %v1257_v1 = vmul.f32 %v4213_v36, %v4218_v57  ;;  %v1143_v41 = vmul.f32 %v4215_v45, %v4218_v57 }
 0x4ac   : > { %v1258_v34 = vadd.f32 %v1257_v1, %v1254_v2  ;;  %v1144_v63 = vadd.f32 %v1143_v41, %v1140_v37 }
 0x4ae   : > { %v4231_v48 = vsub.f32 %v1258_v34, %v1285_v3  ;;  %v4233_v58 = vsub.f32 %v1144_v63, %v1171_v53  ;;  %v4369_v34 = vld [vmem:[%s3727_s22 + $0x10] sm:$0xff]  ;;  %v4374_v3 = vld [vmem:[%s3727_s22 + $0x8] sm:$0xff]  ;;  %v4379_v63 = vld [vmem:[%s3727_s22] sm:$0xff] }
 0x4b0   : > { %3152 = vmatmul.msk.f32.vlgmr.msra.gmra.mxu0 %vm503_vm0, %v4233_v58  ;;  %3155 = vmatmul.msk.f32.vlgmr.msra.gmra.mxu3 %vm503_vm0, %v4231_v48  ;;  %v1201_v30 = vmul.f32 %v4233_v58, %v4215_v45  ;;  %v1209_v49 = vmul.f32 %v1208_v61, %v4233_v58  ;;  %v1315_v43 = vmul.f32 %v4231_v48, %v4213_v36 }
 0x4b1   : > { %1518 = vmatpush.msra.mxu0 %v4240_v0  ;;  %1633 = vmatpush.msra.mxu3 %v4244_v4  ;;  %v1323_v41 = vmul.f32 %v1322_v59, %v4231_v48  ;;  %v1251_v59 = vstv %s1250_s21  ;;  %s1475_s21 = smul.f32 0.5, %s4304_s28 }
 0x4b3   : > { %1519 = vmatpush.msra.mxu0 %v4248_v5  ;;  %1634 = vmatpush.msra.mxu3 %v4252_v6 }
 0x4b5   : > { %1520 = vmatpush.msra.mxu0 %v4256_v7  ;;  %1635 = vmatpush.msra.mxu3 %v4260_v10 }
 0x4b7   : > { %1521 = vmatpush.msra.mxu0 %v4264_v11  ;;  %1636 = vmatpush.msra.mxu3 %v4268_v13 }
 0x4b8   : > { %3165 = vmatmul.msk.f32.vlgmr.msrb.gmra.mxu3 %vm503_vm0, %v4218_v57 }
 0x4b9   : > { %1522 = vmatpush.msra.mxu0 %v4274_v14  ;;  %1637 = vmatpush.msra.mxu3 %v4278_v16 }
 0x4bb   : > { %1523 = vmatpush.msra.mxu0 %v4282_v17  ;;  %1638 = vmatpush.msra.mxu3 %v3769_v27  ;;  %v4307_v27 = vstv %s4304_s28  ;;  %s4521_s28 = sld [smem:[#allocation4 + %s1500_s18]]  ;;  %s1586_s18 = smul.f32 0.5, %s4440_s1 }
 0x4bc   : > { %3306 = vrcp.f32 %v4307_v27  ;;  %v1427_v9 = vand.u32 2147483648, %v4307_v27  ;;  %vm1421_vm10 = vweird.f32 %v4307_v27  ;;  %v1425_v15 = vand.u32 2147483647, %v4307_v27 }
 0x4bd   : > { %1524 = vmatpush.msra.mxu0 %v4287_v19  ;;  %1639 = vmatpush.msra.mxu3 %v3775_v28 }
 0x4be   : > { %v1428_v20 = vor.u32 1.1754944e-38, %v1427_v9  ;;  %vm1426_vm13 = vcmp.eq.f32.partialorder %v1425_v15, 8.507059e+37 }
 0x4bf   : > { %1525 = vmatpush.msra.mxu0 %v4292_v8  ;;  %1640 = vmatpush.msra.mxu3 %v3781_v29 }
 0x4c1   : > { %1785 = vmatpush.msrb.mxu3 %v4240_v0 }
 0x4c2   : > { %v3307_v28 = vpop.eup %3306 }
 0x4c3   : > { %1786 = vmatpush.msrb.mxu3 %v4248_v5  ;;  %v1417_v29 = vmul.f32 %v3307_v28, %v4307_v27  ;;  %vm1422_vm11 = vweird.f32 %v3307_v28 }
 0x4c4   : > { %vm1423_vm12 = vmor %vm1421_vm10, %vm1422_vm11 }
 0x4c5   : > { %1787 = vmatpush.msrb.mxu3 %v4256_v7  ;;  %v1418_v12 = vsub.f32 1.0, %v1417_v29  ;;  %v1397_v29 = vstv %s3223_s23  ;;  %s1326_s23 = sld [smem:[#allocation4 + %s1325_s11]] }
 0x4c6   : > { %v1398_v15 = vmul.f32 %v1397_v29, %v4067_v62  ;;  %s1503_s11 = sld [smem:[#allocation4 + %s1502_s14]] }
 0x4c7   : > { %1788 = vmatpush.msrb.mxu3 %v4264_v11  ;;  %v1419_v18 = vmul.f32 %v3307_v28, %v1418_v12 }
 0x4c9   : > { %1789 = vmatpush.msrb.mxu3 %v4274_v14  ;;  %v1420_v22 = vadd.f32 %v3307_v28, %v1419_v18  ;;  %v1402_v18 = vstv %s1401_s26  ;;  %s1363_s26 = sadd.s32 154, %s3451_s27 }
 0x4cb   : > { %1790 = vmatpush.msrb.mxu3 %v4282_v17  ;;  %v1424_v23 = vsel %vm1423_vm12, %v3307_v28, %v1420_v22  ;;  %v1355_v29 = vstv %s1326_s23  ;;  %s1540_s23 = sadd.s32 14, %s3451_s27 }
 0x4cc   : > { %v1429_v25 = vsel %vm1426_vm13, %v1428_v20, %v1424_v23 }
 0x4cd   : > { %1791 = vmatpush.msrb.mxu3 %v4287_v19  ;;  %3224 = vpush %v1429_v25  ;;  %v1404_v25 = vstv %s1400_s25  ;;  %s1327_s25 = sadd.s32 188, %s3451_s27 }
 0x4ce   : > { %s1328_s13 = sld [smem:[#allocation4 + %s1327_s25]]  ;;  %s1542_s25 = sadd.s32 50, %s3451_s27 }
 0x4cf   : > { %1792 = vmatpush.msrb.mxu3 %v4292_v8 }
 0x52d   : > { %v1197_v24 = vpop.f32.mrf.mxu0 }
 0x52e   : > { %v1200_v26 = vmul.f32 %v1197_v24, %v4209_v21 }
 0x530   : > { %v1202_v31 = vadd.f32 %v1201_v30, %v1200_v26  ;;  %v1241_v26 = vstv %s1212_s0  ;;  %s1364_s0 = sld [smem:[#allocation4 + %s1363_s26]] }
 0x531   : > { %s1543_s26 = sld [smem:[#allocation4 + %s1542_s25]]  ;;  %s1732_s25 = sadd.s32 156, %s3451_s27 }
 0x532   : > { %v1206_v42 = vmul.f32 %v1203_v32, %v1202_v31 }
 0x533   : > { %v1311_v51 = vpop.f32.mrf.mxu3 }
 0x534   : > { %v4329_v56 = vsub.f32 %v4233_v58, %v1206_v42  ;;  %v1314_v38 = vmul.f32 %v1311_v51, %v4211_v35 }
 0x536   : > { %v4336_v54 = vadd.f32 %v1209_v49, %v4329_v56  ;;  %v1316_v2 = vadd.f32 %v1315_v43, %v1314_v38  ;;  %v1204_v38 = vmul.f32 %v1203_v32, %v4233_v58 }
 0x538   : > { %v1320_v1 = vmul.f32 %v1317_v39, %v1316_v2  ;;  %3153 = vmatmul.msk.f32.vlgmr.msra.gmra.mxu1 %vm503_vm0, %v4336_v54  ;;  %v1239_v12 = vmul.f32 %v4336_v54, %v4215_v45 }
 0x539   : > { %1558 = vmatpush.msra.mxu1 %v4240_v0 }
 0x53a   : > { %v4345_v37 = vsub.f32 %v4231_v48, %v1320_v1  ;;  %v1242_v1 = vmul.f32 %v1241_v26, %v4336_v54 }
 0x53b   : > { %1559 = vmatpush.msra.mxu1 %v4248_v5 }
 0x53c   : > { %v4350_v53 = vadd.f32 %v1323_v41, %v4345_v37 }
 0x53d   : > { %1560 = vmatpush.msra.mxu1 %v4256_v7 }
 0x53e   : > { %3156 = vmatmul.msk.f32.vlgmr.msrb.gmra.mxu0 %vm503_vm0, %v4350_v53 }
 0x53f   : > { %1561 = vmatpush.msra.mxu1 %v4264_v11  ;;  %1671 = vmatpush.msrb.mxu0 %v4244_v4 }
 0x540   : > { %3157 = vmatmul.msk.f32.vlgmr.msrb.gmra.mxu1 %vm503_vm0, %v4218_v57 }
 0x541   : > { %1562 = vmatpush.msra.mxu1 %v4274_v14  ;;  %1672 = vmatpush.msrb.mxu0 %v4252_v6 }
 0x543   : > { %1563 = vmatpush.msra.mxu1 %v4282_v17  ;;  %1673 = vmatpush.msrb.mxu0 %v4260_v10 }
 0x545   : > { %1564 = vmatpush.msra.mxu1 %v4287_v19  ;;  %1674 = vmatpush.msrb.mxu0 %v4268_v13 }
 0x547   : > { %1565 = vmatpush.msra.mxu1 %v4292_v8  ;;  %1675 = vmatpush.msrb.mxu0 %v4278_v16 }
 0x549   : > { %1715 = vmatpush.msrb.mxu1 %v4240_v0  ;;  %1676 = vmatpush.msrb.mxu0 %v4369_v34 }
 0x54b   : > { %1716 = vmatpush.msrb.mxu1 %v4248_v5  ;;  %1677 = vmatpush.msrb.mxu0 %v4374_v3 }
 0x54d   : > { %1717 = vmatpush.msrb.mxu1 %v4256_v7  ;;  %1678 = vmatpush.msrb.mxu0 %v4379_v63 }
 0x54f   : > { %1718 = vmatpush.msrb.mxu1 %v4264_v11 }
 0x551   : > { %1719 = vmatpush.msrb.mxu1 %v4274_v14 }
 0x553   : > { %1720 = vmatpush.msrb.mxu1 %v4282_v17 }
 0x555   : > { %1721 = vmatpush.msrb.mxu1 %v4287_v19 }
 0x557   : > { %1722 = vmatpush.msrb.mxu1 %v4292_v8 }
 0x5b5   : > { %v1235_v28 = vpop.f32.mrf.mxu1 }
 0x5b6   : > { %v1238_v9 = vmul.f32 %v1235_v28, %v4209_v21  ;;  %v1246_v21 = vstv %s1214_s16  ;;  %s4442_s16 = sld [smem:[#allocation2 + $0x20]] }
 0x5b7   : > { %v1247_v62 = vmul.f32 %v1246_v21, %v4336_v54  ;;  %v1353_v54 = vmul.f32 %v4350_v53, %v4213_v36  ;;  %v1356_v36 = vmul.f32 %v1355_v29, %v4350_v53 }
 0x5b8   : > { %v1240_v22 = vadd.f32 %v1239_v12, %v1238_v9  ;;  %v1360_v12 = vstv %s1328_s13  ;;  %s1541_s13 = sld [smem:[#allocation4 + %s1540_s23]]  ;;  %s1620_s23 = sadd.s32 120, %s3451_s27 }
 0x5ba   : > { %v1244_v30 = vmul.f32 %v1241_v26, %v1240_v22  ;;  %v1365_v22 = vstv %s1364_s0  ;;  %v5348_v26 = vstv %s4440_s1  ;;  %s1580_s0 = sadd.s32 16, %s3451_s27 }
 0x5bc   : > { %v1245_v42 = vsub.f32 %v4329_v56, %v1244_v30  ;;  %v1205_v56 = vadd.f32 %v1204_v38, %v4123_v33  ;;  %v1349_v33 = vpop.f32.mrf.mxu0  ;;  %s1470_s2 = sadd.f32 %s4442_s16, %s4440_s1  ;;  %s1700_s14 = smul.f32 0.5, %s4442_s16 }
 0x5bd   : > { %v1394_v20 = vpop.f32.mrf.mxu1  ;;  %v1352_v32 = vmul.f32 %v1349_v33, %v4211_v35 }
 0x5be   : > { %v1399_v23 = vsub.f32 %v1394_v20, %v1398_v15  ;;  %v1248_v43 = vadd.f32 %v1247_v62, %v1245_v42  ;;  %v1318_v20 = vmul.f32 %v1317_v39, %v4231_v48  ;;  %s1471_s12 = smul.f32 0.5, %s1470_s2  ;;  %s1581_s2 = sld [smem:[#allocation4 + %s1580_s0]] }
 0x5bf   : > { %v1354_v28 = vadd.f32 %v1353_v54, %v1352_v32  ;;  %s1621_s0 = sld [smem:[#allocation4 + %s1620_s23]] }
 0x5c0   : > { %v1403_v24 = vmax.f32 %v1402_v18, %v1399_v23  ;;  %v1252_v41 = vmul.f32 %v1251_v59, %v1248_v43  ;;  %v1361_v18 = vmul.f32 %v1360_v12, %v4350_v53  ;;  %v5349_v53 = vstv %s4442_s16  ;;  %v4500_v12 = vld [vmem:[%s3615_s24 + $0x20] sm:$0xff] }
 0x5c1   : > { %v1358_v9 = vmul.f32 %v1355_v29, %v1354_v28  ;;  %v4471_v62 = vstv %s1471_s12  ;;  %v4488_v28 = vld [vmem:[%s3615_s24 + $0x38] sm:$0xff]  ;;  %v4492_v29 = vld [vmem:[%s3615_s24 + $0x30] sm:$0xff]  ;;  %s3158_s12 = sld [smem:[#allocation2 + $0x2]] }
 0x5c2   : > { %v1405_v31 = vmin.f32 %v1404_v25, %v1403_v24  ;;  %v1473_v43 = vmul.f32 %v4471_v62, %v4218_v57 }
 0x5c3   : > { %v1359_v15 = vsub.f32 %v4345_v37, %v1358_v9  ;;  %v4496_v9 = vld [vmem:[%s3615_s24 + $0x28] sm:$0xff] }
 0x5c4   : > { %v1406_v61 = vsub.f32 %v1399_v23, %v1405_v31 }
 0x5c5   : > { %v1362_v35 = vadd.f32 %v1361_v18, %v1359_v15  ;;  %v4504_v15 = vld [vmem:[%s3615_s24 + $0x18] sm:$0xff]  ;;  %v4508_v18 = vld [vmem:[%s3615_s24 + $0x10] sm:$0xff] }
 0x5c6   : > { %v1407_v45 = vsub.f32 %v1406_v61, %v1399_v23  ;;  %v1432_v49 = vmul.f32 %v4307_v27, %v1406_v61  ;;  %v1319_v23 = vadd.f32 %v1318_v20, %v4111_v52  ;;  %v4512_v20 = vld [vmem:[%s3615_s24 + $0x8] sm:$0xff] }
 0x5c7   : > { %v1366_v24 = vmul.f32 %v1365_v22, %v1362_v35  ;;  %v4516_v35 = vld [vmem:[%s3615_s24] sm:$0xff] }
 0x5c8   : > { %v4397_v51 = vmul.f32 %v1407_v45, %v3922_v55  ;;  %v1243_v55 = vadd.f32 %v1242_v1, %v1205_v56  ;;  %v1357_v37 = vadd.f32 %v1356_v36, %v1319_v23 }
 0x5ca   : > { %v1433_v2 = vadd.f32 %v1432_v49, %v4397_v51  ;;  %v4410_v58 = vadd.f32 %v1252_v41, %v1243_v55  ;;  %v4444_v48 = vadd.f32 %v1366_v24, %v1357_v37  ;;  %v4475_v49 = vstv %s1475_s21  ;;  %s3160_s21 = sld [smem:[#allocation2 + $0xe]] }
 0x5cc   : > { %3164 = vmatmul.msk.f32.vlgmr.msrb.gmra.mxu2 %vm503_vm0, %v1433_v2  ;;  %v1371_v39 = vsub.f32 %v4218_v57, %v4444_v48  ;;  %v1368_v52 = vsub.f32 %v4218_v57, %v4410_v58  ;;  %v1461_v31 = vmul.f32 %v5349_v53, %v4444_v48  ;;  %v1459_v21 = vmul.f32 %v5348_v26, %v4410_v58 }
 0x5cd   : > { %1747 = vmatpush.msrb.mxu2 %v4240_v0 }
 0x5ce   : > { %v1372_v25 = vmul.f32 %v1371_v39, %v1015_v50  ;;  %v1369_v30 = vmul.f32 %v1368_v52, %v1013_v46  ;;  %v1462_v45 = vadd.f32 %v1461_v31, %v1459_v21  ;;  %v1493_v50 = vpop.f32.mrf.mxu3  ;;  %v1532_v52 = vstv %s4521_s28  ;;  %s4640_s28 = sld [smem:[#allocation2 + $0x15]] }
 0x5cf   : > { %1748 = vmatpush.msrb.mxu2 %v4248_v5  ;;  %v1497_v59 = vmul.f32 %v4475_v49, %v1493_v50  ;;  %v4537_v50 = vld [vmem:[%s3645_s15 + $0x30] sm:$0xff] }
 0x5d0   : > { %v4462_v61 = vadd.f32 %v1372_v25, %v4146_v60  ;;  %v4469_v42 = vadd.f32 %v1369_v30, %v4144_v40  ;;  %v1469_v60 = vmul.f32 %v3861_v44, %v4218_v57  ;;  %v1463_v2 = vmul.f32 0.5, %v1462_v45 }
 0x5d1   : > { %1749 = vmatpush.msrb.mxu2 %v4256_v7  ;;  %v1537_v25 = vstv %s1503_s11  ;;  %s1618_s11 = sadd.s32 84, %s3451_s27 }
 0x5d2   : > { %v1465_v46 = vadd.f32 %v4462_v61, %v4469_v42  ;;  %v1474_v41 = vadd.f32 %v1473_v43, %v1469_v60  ;;  %v4545_v60 = vld [vmem:[%s3645_s15 + $0x20] sm:$0xff]  ;;  %v4551_v43 = vld [vmem:[%s3645_s15 + $0x18] sm:$0xff] }
 0x5d3   : > { %1750 = vmatpush.msrb.mxu2 %v4264_v11 }
 0x5d4   : > { %3168 = vmatmul.msk.f32.vlgmr.msra.gmra.mxu2 %vm503_vm0, %v4410_v58  ;;  %v1466_v56 = vmul.f32 0.5, %v1465_v46  ;;  %v1498_v33 = vadd.f32 %v1497_v59, %v1474_v41  ;;  %v4533_v46 = vld [vmem:[%s3645_s15 + $0x38] sm:$0xff]  ;;  %v4563_v59 = vld [vmem:[%s3645_s15] sm:$0xff] }
 0x5d5   : > { %1751 = vmatpush.msrb.mxu2 %v4274_v14 }
 0x5d7   : > { %1752 = vmatpush.msrb.mxu2 %v4282_v17 }
 0x5d9   : > { %1753 = vmatpush.msrb.mxu2 %v4287_v19 }
 0x5db   : > { %1754 = vmatpush.msrb.mxu2 %v4292_v8 }
 0x5dd   : > { %1929 = vmatpush.msra.mxu2 %v4240_v0 }
 0x5df   : > { %1930 = vmatpush.msra.mxu2 %v4248_v5 }
 0x5e1   : > { %1931 = vmatpush.msra.mxu2 %v4256_v7 }
 0x5e3   : > { %1932 = vmatpush.msra.mxu2 %v4264_v11 }
 0x5e5   : > { %1933 = vmatpush.msra.mxu2 %v4274_v14 }
 0x5e7   : > { %1934 = vmatpush.msra.mxu2 %v4282_v17 }
 0x5e9   : > { %1935 = vmatpush.msra.mxu2 %v4287_v19 }
 0x5eb   : > { %1936 = vmatpush.msra.mxu2 %v4292_v8 }
 0x64f   : > { %v1454_v38 = vpop.f32.mrf.mxu2 }
 0x650   : > { %v1457_v40 = vmul.f32 0.5, %v1454_v38  ;;  %v4541_v38 = vld [vmem:[%s3645_s15 + $0x28] sm:$0xff] }
 0x652   : > { %v1464_v1 = vadd.f32 %v1463_v2, %v1457_v40  ;;  %v4555_v40 = vld [vmem:[%s3645_s15 + $0x10] sm:$0xff]  ;;  %v4559_v2 = vld [vmem:[%s3645_s15 + $0x8] sm:$0xff] }
 0x654   : > { %v1467_v55 = vsub.f32 %v1464_v1, %v1466_v56 }
 0x656   : > { %v1468_v32 = vadd.f32 %v1467_v55, %v3866_v47 }
 0x657   : > { %v1610_v26 = vpop.f32.mrf.mxu2 }
 0x658   : > { %v4483_v54 = vsub.f32 %v1468_v32, %v1498_v33 }
 0x65a   : > { %3166 = vmatmul.msk.f32.vlgmr.msra.gmra.mxu0 %vm503_vm0, %v4483_v54  ;;  %v1504_v22 = vmul.f32 %v3861_v44, %v4483_v54  ;;  %v1505_v36 = vmul.f32 %v4483_v54, %v4471_v62  ;;  %v1538_v21 = vmul.f32 %v1537_v25, %v4483_v54 }
 0x65b   : > { %1830 = vmatpush.msra.mxu0 %v4488_v28 }
 0x65c   : > { %v1506_v24 = vadd.f32 %v1505_v36, %v1504_v22  ;;  %v1572_v22 = vstv %s1541_s13  ;;  %v1577_v36 = vstv %s1543_s26  ;;  %s4653_s13 = sld [smem:[#allocation4 + %s1618_s11]]  ;;  %s1734_s26 = sadd.s32 192, %s3451_s27 }
 0x65d   : > { %1831 = vmatpush.msra.mxu0 %v4492_v29  ;;  %s1656_s11 = sadd.s32 86, %s3451_s27 }
 0x65f   : > { %1832 = vmatpush.msra.mxu0 %v4496_v9 }
 0x661   : > { %1833 = vmatpush.msra.mxu0 %v4500_v12 }
 0x663   : > { %1834 = vmatpush.msra.mxu0 %v4504_v15 }
 0x665   : > { %1835 = vmatpush.msra.mxu0 %v4508_v18 }
 0x667   : > { %1836 = vmatpush.msra.mxu0 %v4512_v20 }
 0x669   : > { %1837 = vmatpush.msra.mxu0 %v4516_v35 }
 0x6d7   : > { %v1527_v23 = vpop.f32.mrf.mxu0 }
 0x6d8   : > { %v1530_v37 = vmul.f32 %v1527_v23, %v4475_v49  ;;  %v1533_v23 = vmul.f32 %v1532_v52, %v4483_v54 }
 0x6da   : > { %v1531_v39 = vadd.f32 %v1530_v37, %v1506_v24 }
 0x6dc   : > { %v1535_v30 = vmul.f32 %v1532_v52, %v1531_v39  ;;  %v4590_v52 = vstv %s1700_s14 }
 0x6de   : > { %v1536_v31 = vsub.f32 %v4483_v54, %v1535_v30  ;;  %v1534_v30 = vadd.f32 %v1533_v23, %v4218_v57  ;;  %v1585_v23 = vmul.f32 0.5, %v4469_v42 }
 0x6e0   : > { %v1539_v45 = vadd.f32 %v1538_v21, %v1536_v31 }
 0x6e2   : > { %3167 = vmatmul.msk.f32.vlgmr.msra.gmra.mxu1 %vm503_vm0, %v1539_v45  ;;  %v1544_v1 = vmul.f32 %v3861_v44, %v1539_v45  ;;  %v1545_v56 = vmul.f32 %v1539_v45, %v4471_v62  ;;  %v1573_v37 = vmul.f32 %v1572_v22, %v1539_v45  ;;  %v1578_v25 = vmul.f32 %v1577_v36, %v1539_v45 }
 0x6e3   : > { %1890 = vmatpush.msra.mxu1 %v4533_v46  ;;  %v1582_v62 = vstv %s1581_s2  ;;  %s4656_s2 = sld [smem:[#allocation4 + %s1732_s25]] }
 0x6e4   : > { %v1546_v55 = vadd.f32 %v1545_v56, %v1544_v1  ;;  %v4584_v1 = vstv %s3158_s12  ;;  %v4586_v56 = vstv %s3160_s21  ;;  %s1735_s12 = sld [smem:[#allocation4 + %s1734_s26]]  ;;  %s1658_s26 = sadd.s32 122, %s3451_s27 }
 0x6e5   : > { %1891 = vmatpush.msra.mxu1 %v4537_v50  ;;  %s3159_s21 = sld [smem:[#allocation2 + $0x8]] }
 0x6e6   : > { %s1657_s25 = sld [smem:[#allocation4 + %s1656_s11]] }
 0x6e7   : > { %1892 = vmatpush.msra.mxu1 %v4541_v38 }
 0x6e9   : > { %1893 = vmatpush.msra.mxu1 %v4545_v60 }
 0x6ea   : > { %3171 = vmatmul.msk.f32.vlgmr.msrb.gmra.mxu1 %vm503_vm0, %v4444_v48 }
 0x6eb   : > { %1894 = vmatpush.msra.mxu1 %v4551_v43 }
 0x6ed   : > { %1895 = vmatpush.msra.mxu1 %v4555_v40 }
 0x6ef   : > { %1896 = vmatpush.msra.mxu1 %v4559_v2 }
 0x6f1   : > { %1897 = vmatpush.msra.mxu1 %v4563_v59 }
 0x6f3   : > { %2046 = vmatpush.msrb.mxu1 %v4244_v4 }
 0x6f5   : > { %2047 = vmatpush.msrb.mxu1 %v4252_v6 }
 0x6f7   : > { %2048 = vmatpush.msrb.mxu1 %v4260_v10 }
 0x6f9   : > { %2049 = vmatpush.msrb.mxu1 %v4268_v13 }
 0x6fb   : > { %2050 = vmatpush.msrb.mxu1 %v4278_v16 }
 0x6fd   : > { %2051 = vmatpush.msrb.mxu1 %v4369_v34 }
 0x6ff   : > { %2052 = vmatpush.msrb.mxu1 %v4374_v3 }
 0x701   : > { %2053 = vmatpush.msrb.mxu1 %v4379_v63 }
 0x75f   : > { %v1567_v41 = vpop.f32.mrf.mxu1 }
 0x760   : > { %v1570_v33 = vmul.f32 %v1567_v41, %v4475_v49  ;;  %v4588_v41 = vstv %s1586_s18  ;;  %s3225_s18 = spop %3224 }
 0x761   : > { %v1615_v57 = vmul.f32 %v4588_v41, %v4410_v58  ;;  %s1845_s14 = smul.f32 %s3225_s18, %s3159_s21 }
 0x762   : > { %v1571_v32 = vadd.f32 %v1570_v33, %v1546_v55  ;;  %v1574_v55 = vadd.f32 %v1573_v37, %v1534_v30 }
 0x763   : > { %s1846_s23 = ssub.f32 0.0, %s1845_s14 }
 0x764   : > { %v1575_v24 = vmul.f32 %v1572_v22, %v1571_v32  ;;  %v1729_v32 = vmul.f32 %v4590_v52, %v4444_v48  ;;  %v1699_v22 = vmul.f32 0.5, %v4462_v61 }
 0x766   : > { %v1576_v39 = vsub.f32 %v1536_v31, %v1575_v24  ;;  %v1614_v31 = vmul.f32 %v4584_v1, %v1610_v26 }
 0x767   : > { %v1724_v49 = vpop.f32.mrf.mxu1 }
 0x768   : > { %v1579_v21 = vadd.f32 %v1578_v25, %v1576_v39  ;;  %v1728_v33 = vmul.f32 %v4586_v56, %v1724_v49  ;;  %v1616_v24 = vadd.f32 %v1615_v57, %v1614_v31 }
 0x76a   : > { %v1583_v54 = vmul.f32 %v1582_v62, %v1579_v21  ;;  %v1730_v39 = vadd.f32 %v1729_v32, %v1728_v33  ;;  %v4643_v21 = vstv %s4640_s28 }
 0x76b   : > { %3308 = vrcp.f32 %v4643_v21  ;;  %vm1866_vm14 = vweird.f32 %v4643_v21  ;;  %v1870_v33 = vand.u32 2147483647, %v4643_v21 }
 0x76c   : > { %v4593_v45 = vadd.f32 %v1583_v54, %v1574_v55  ;;  %v1872_v54 = vand.u32 2147483648, %v4643_v21 }
 0x76d   : > { %vm1871_vm2 = vcmp.eq.f32.partialorder %v1870_v33, 8.507059e+37  ;;  %v1653_v33 = vstv %s1621_s0  ;;  %s1659_s0 = sld [smem:[#allocation4 + %s1658_s26]] }
 0x76e   : > { %v1702_v36 = vmul.f32 %v4590_v52, %v4593_v45  ;;  %v1588_v26 = vmul.f32 %v4588_v41, %v4593_v45  ;;  %v1873_v32 = vor.u32 1.1754944e-38, %v1872_v54  ;;  %s4767_s26 = sld [smem:[#allocation2 + $0x1b]] }
 0x770   : > { %v1703_v37 = vadd.f32 %v1702_v36, %v1699_v22  ;;  %v1589_v25 = vadd.f32 %v1588_v26, %v1585_v23 }
 0x771   : > { %v3309_v49 = vpop.eup %3308 }
 0x772   : > { %v4606_v62 = vsub.f32 %v1703_v37, %v1730_v39  ;;  %v4608_v30 = vsub.f32 %v1589_v25, %v1616_v24  ;;  %v1862_v55 = vmul.f32 %v3309_v49, %v4643_v21  ;;  %vm1867_vm15 = vweird.f32 %v3309_v49 }
 0x773   : > { %vm1868_vm1 = vmor %vm1866_vm14, %vm1867_vm15 }
 0x774   : > { %3169 = vmatmul.msk.f32.vlgmr.msra.gmra.mxu3 %vm503_vm0, %v4608_v30  ;;  %3172 = vmatmul.msk.f32.vlgmr.msrb.gmra.mxu2 %vm503_vm0, %v4606_v62  ;;  %v1863_v31 = vsub.f32 1.0, %v1862_v55  ;;  %v1646_v39 = vmul.f32 %v4608_v30, %v4588_v41  ;;  %v1760_v55 = vmul.f32 %v4606_v62, %v4590_v52 }
 0x775   : > { %1963 = vmatpush.msra.mxu3 %v4240_v0  ;;  %2078 = vmatpush.msrb.mxu2 %v4244_v4 }
 0x776   : > { %v1864_v57 = vmul.f32 %v3309_v49, %v1863_v31 }
 0x777   : > { %1964 = vmatpush.msra.mxu3 %v4248_v5  ;;  %2079 = vmatpush.msrb.mxu2 %v4252_v6 }
 0x778   : > { %v1865_v22 = vadd.f32 %v3309_v49, %v1864_v57  ;;  %v1762_v57 = vstv %s4656_s2 }
 0x779   : > { %1965 = vmatpush.msra.mxu3 %v4256_v7  ;;  %2080 = vmatpush.msrb.mxu2 %v4260_v10 }
 0x77a   : > { %v1869_v36 = vsel %vm1868_vm1, %v3309_v49, %v1865_v22  ;;  %v1648_v49 = vstv %s4653_s13  ;;  %v1767_v22 = vstv %s1735_s12  ;;  %s1694_s12 = sadd.s32 88, %s3451_s27  ;;  %s1770_s13 = sadd.s32 158, %s3451_s27 }
 0x77b   : > { %1966 = vmatpush.msra.mxu3 %v4264_v11  ;;  %2081 = vmatpush.msrb.mxu2 %v4268_v13  ;;  %v1874_v23 = vsel %vm1871_vm2, %v1873_v32, %v1869_v36  ;;  %v1768_v53 = vmul.f32 %v1767_v22, %v4606_v62  ;;  %v1686_v22 = vstv %s1657_s25  ;;  %s1695_s21 = sld [smem:[#allocation4 + %s1694_s12]] }
 0x77c   : > { %3182 = vmatmul.msk.f32.vlgmr.msra.gmra.mxu2 %vm503_vm0, %v4593_v45  ;;  %3226 = vpush %v1874_v23 }
 0x77d   : > { %1967 = vmatpush.msra.mxu3 %v4274_v14  ;;  %2082 = vmatpush.msrb.mxu2 %v4278_v16 }
 0x77f   : > { %1968 = vmatpush.msra.mxu3 %v4282_v17  ;;  %2083 = vmatpush.msrb.mxu2 %v4369_v34 }
 0x781   : > { %1969 = vmatpush.msra.mxu3 %v4287_v19  ;;  %2084 = vmatpush.msrb.mxu2 %v4374_v3 }
 0x783   : > { %1970 = vmatpush.msra.mxu3 %v4292_v8  ;;  %2085 = vmatpush.msrb.mxu2 %v4379_v63 }
 0x785   : > { %2230 = vmatpush.msra.mxu2 %v4240_v0 }
 0x787   : > { %2231 = vmatpush.msra.mxu2 %v4248_v5 }
 0x789   : > { %2232 = vmatpush.msra.mxu2 %v4256_v7 }
 0x78b   : > { %2233 = vmatpush.msra.mxu2 %v4264_v11 }
 0x78d   : > { %2234 = vmatpush.msra.mxu2 %v4274_v14 }
 0x78f   : > { %2235 = vmatpush.msra.mxu2 %v4282_v17 }
 0x791   : > { %2236 = vmatpush.msra.mxu2 %v4287_v19 }
 0x793   : > { %2237 = vmatpush.msra.mxu2 %v4292_v8 }
 0x7f7   : > { %v1642_v26 = vpop.f32.mrf.mxu3  ;;  %v1756_v24 = vpop.f32.mrf.mxu2 }
 0x7f8   : > { %v1645_v37 = vmul.f32 %v1642_v26, %v4584_v1  ;;  %v1759_v25 = vmul.f32 %v1756_v24, %v4586_v56  ;;  %v1654_v26 = vmul.f32 %v1653_v33, %v4608_v30  ;;  %v1849_v33 = vstv %s1845_s14  ;;  %s1772_s14 = sadd.s32 194, %s3451_s27 }
 0x7f9   : > { %s1773_s11 = sld [smem:[#allocation4 + %s1772_s14]]  ;;  %s1987_s14 = sadd.s32 56, %s3451_s27 }
 0x7fa   : > { %v1647_v54 = vadd.f32 %v1646_v39, %v1645_v37  ;;  %v1761_v31 = vadd.f32 %v1760_v55, %v1759_v25 }
 0x7fc   : > { %v1651_v32 = vmul.f32 %v1648_v49, %v1647_v54  ;;  %v1765_v36 = vmul.f32 %v1762_v57, %v1761_v31 }
 0x7fe   : > { %v4671_v23 = vsub.f32 %v4608_v30, %v1651_v32  ;;  %v4675_v24 = vsub.f32 %v4606_v62, %v1765_v36 }
 0x800   : > { %v4679_v37 = vadd.f32 %v1654_v26, %v4671_v23  ;;  %v4682_v39 = vadd.f32 %v1768_v53, %v4675_v24  ;;  %v1847_v53 = vstv %s1846_s23  ;;  %s1808_s23 = sadd.s32 160, %s3451_s27 }
 0x801   : > { %s1809_s25 = sld [smem:[#allocation4 + %s1808_s23]] }
 0x802   : > { %3170 = vmatmul.msk.f32.vlgmr.msrb.gmra.mxu0 %vm503_vm0, %v4679_v37  ;;  %3173 = vmatmul.msk.f32.vlgmr.msrb.gmra.mxu3 %vm503_vm0, %v4682_v39  ;;  %s1988_s23 = sld [smem:[#allocation4 + %s1987_s14]]  ;;  %s2063_s14 = sadd.s32 90, %s3451_s27 }
 0x803   : > { %2003 = vmatpush.msrb.mxu0 %v4240_v0  ;;  %2116 = vmatpush.msrb.mxu3 %v4244_v4 }
 0x805   : > { %2004 = vmatpush.msrb.mxu0 %v4248_v5  ;;  %2117 = vmatpush.msrb.mxu3 %v4252_v6  ;;  %v1842_v6 = vstv %s3225_s18  ;;  %s1771_s18 = sld [smem:[#allocation4 + %s1770_s13]] }
 0x807   : > { %2005 = vmatpush.msrb.mxu0 %v4256_v7  ;;  %2118 = vmatpush.msrb.mxu3 %v4260_v10 }
 0x809   : > { %2006 = vmatpush.msrb.mxu0 %v4264_v11  ;;  %2119 = vmatpush.msrb.mxu3 %v4268_v13  ;;  %v1684_v13 = vmul.f32 %v4679_v37, %v4588_v41 }
 0x80a   : > { %3174 = vmatmul.msk.f32.vlgmr.msra.gmra.mxu0 %vm503_vm0, %v4593_v45 }
 0x80b   : > { %2007 = vmatpush.msrb.mxu0 %v4274_v14  ;;  %2120 = vmatpush.msrb.mxu3 %v4278_v16  ;;  %v1843_v16 = vmul.f32 %v1842_v6, %v4397_v51 }
 0x80d   : > { %2008 = vmatpush.msrb.mxu0 %v4282_v17  ;;  %2121 = vmatpush.msrb.mxu3 %v4369_v34 }
 0x80f   : > { %2009 = vmatpush.msrb.mxu0 %v4287_v19  ;;  %2122 = vmatpush.msrb.mxu3 %v4374_v3 }
 0x811   : > { %2010 = vmatpush.msrb.mxu0 %v4292_v8  ;;  %2123 = vmatpush.msrb.mxu3 %v4379_v63 }
 0x813   : > { %2160 = vmatpush.msra.mxu0 %v4240_v0 }
 0x815   : > { %2161 = vmatpush.msra.mxu0 %v4248_v5 }
 0x817   : > { %2162 = vmatpush.msra.mxu0 %v4256_v7 }
 0x819   : > { %2163 = vmatpush.msra.mxu0 %v4264_v11 }
 0x81b   : > { %2164 = vmatpush.msra.mxu0 %v4274_v14 }
 0x81d   : > { %2165 = vmatpush.msra.mxu0 %v4282_v17 }
 0x81f   : > { %2166 = vmatpush.msra.mxu0 %v4287_v19 }
 0x821   : > { %2167 = vmatpush.msra.mxu0 %v4292_v8 }
 0x87f   : > { %v1680_v4 = vpop.f32.mrf.mxu0 }
 0x880   : > { %v1683_v10 = vmul.f32 %v1680_v4, %v4584_v1  ;;  %v1691_v1 = vstv %s1659_s0  ;;  %s4769_s0 = sld [smem:[#allocation2 + $0x21]] }
 0x881   : > { %v1692_v51 = vmul.f32 %v1691_v1, %v4679_v37 }
 0x882   : > { %v1685_v55 = vadd.f32 %v1684_v13, %v1683_v10  ;;  %v1649_v13 = vmul.f32 %v1648_v49, %v4608_v30  ;;  %v1763_v49 = vmul.f32 %v1762_v57, %v4606_v62 }
 0x884   : > { %v1689_v32 = vmul.f32 %v1686_v22, %v1685_v55  ;;  %v1687_v55 = vmul.f32 %v1686_v22, %v4679_v37  ;;  %v1810_v37 = vstv %s1809_s25  ;;  %v5361_v22 = vstv %s4442_s16  ;;  %s1947_s16 = sadd.s32 54, %s3451_s27  ;;  %s2025_s25 = sadd.s32 22, %s3451_s27 }
 0x885   : > { %s1948_s13 = sld [smem:[#allocation4 + %s1947_s16]] }
 0x886   : > { %v1690_v4 = vsub.f32 %v4671_v23, %v1689_v32  ;;  %v1650_v23 = vadd.f32 %v1649_v13, %v4410_v58  ;;  %v1794_v58 = vpop.f32.mrf.mxu3  ;;  %s1915_s2 = sadd.f32 %s4769_s0, %s4767_s26  ;;  %s2145_s16 = smul.f32 0.5, %s4769_s0 }
 0x887   : > { %v1839_v25 = vpop.f32.mrf.mxu0 }
 0x888   : > { %v1844_v54 = vsub.f32 %v1839_v25, %v1843_v16  ;;  %v1693_v16 = vadd.f32 %v1692_v51, %v1690_v4  ;;  %v1696_v25 = vstv %s1695_s21  ;;  %s1916_s12 = smul.f32 0.5, %s1915_s2  ;;  %s2026_s2 = sld [smem:[#allocation4 + %s2025_s25]] }
 0x889   : > { %s1920_s21 = smul.f32 0.5, %s4640_s28 }
 0x88a   : > { %v1848_v31 = vmax.f32 %v1847_v53, %v1844_v54 }
 0x88c   : > { %v1850_v36 = vmin.f32 %v1849_v33, %v1848_v31  ;;  %v1764_v31 = vadd.f32 %v1763_v49, %v4444_v48 }
 0x88e   : > { %v1851_v26 = vsub.f32 %v1844_v54, %v1850_v36  ;;  %v1903_v36 = vstv %s4767_s26 }
 0x890   : > { %v1852_v41 = vsub.f32 %v1851_v26, %v1844_v54  ;;  %v1877_v10 = vmul.f32 %v4643_v21, %v1851_v26  ;;  %v1697_v54 = vmul.f32 %v1696_v25, %v1693_v16  ;;  %v5362_v26 = vstv %s4440_s1  ;;  %v1938_v25 = vpop.f32.mrf.mxu2  ;;  %s1945_s1 = sadd.s32 18, %s3451_s27 }
 0x891   : > { %v4798_v16 = vstv %s1916_s12  ;;  %s4824_s28 = sld [smem:[#allocation4 + %s1945_s1]]  ;;  %s2031_s1 = smul.f32 0.5, %s4767_s26 }
 0x892   : > { %v4724_v6 = vmul.f32 %v1852_v41, %v4307_v27  ;;  %v1688_v27 = vadd.f32 %v1687_v55, %v1650_v23  ;;  %v4802_v55 = vstv %s1920_s21  ;;  %s3175_s12 = sld [smem:[#allocation2 + $0x3]]  ;;  %s2390_s26 = sadd.s32 24, %s3451_s27 }
 0x893   : > { %s3177_s21 = sld [smem:[#allocation2 + $0xf]] }
 0x894   : > { %v1878_v53 = vadd.f32 %v1877_v10, %v4724_v6  ;;  %v4737_v30 = vadd.f32 %v1697_v54, %v1688_v27  ;;  %v1918_v54 = vmul.f32 %v4798_v16, %v4593_v45 }
 0x896   : > { %3181 = vmatmul.msk.f32.vlgmr.msra.gmra.mxu1 %vm503_vm0, %v1878_v53  ;;  %v1813_v48 = vsub.f32 %v4593_v45, %v4737_v30  ;;  %v1904_v51 = vmul.f32 %v1903_v36, %v4737_v30 }
 0x897   : > { %2192 = vmatpush.msra.mxu1 %v4240_v0 }
 0x898   : > { %v1814_v1 = vmul.f32 %v1813_v48, %v5362_v26 }
 0x899   : > { %2193 = vmatpush.msra.mxu1 %v4248_v5 }
 0x89a   : > { %v4796_v10 = vadd.f32 %v1814_v1, %v4469_v42  ;;  %v1942_v42 = vmul.f32 %v4802_v55, %v1938_v25 }
 0x89b   : > { %2194 = vmatpush.msra.mxu1 %v4256_v7 }
 0x89d   : > { %2195 = vmatpush.msra.mxu1 %v4264_v11 }
 0x89e   : > { %3185 = vmatmul.msk.f32.vlgmr.msrb.gmra.mxu1 %vm503_vm0, %v4737_v30 }
 0x89f   : > { %2196 = vmatpush.msra.mxu1 %v4274_v14 }
 0x8a1   : > { %2197 = vmatpush.msra.mxu1 %v4282_v17 }
 0x8a3   : > { %2198 = vmatpush.msra.mxu1 %v4287_v19 }
 0x8a5   : > { %2199 = vmatpush.msra.mxu1 %v4292_v8 }
 0x8a7   : > { %2374 = vmatpush.msrb.mxu1 %v4240_v0  ;;  %v1797_v0 = vmul.f32 %v1794_v58, %v4586_v56 }
 0x8a9   : > { %2375 = vmatpush.msrb.mxu1 %v4248_v5  ;;  %v1798_v5 = vmul.f32 %v4682_v39, %v4590_v52 }
 0x8ab   : > { %2376 = vmatpush.msrb.mxu1 %v4256_v7  ;;  %v1799_v7 = vadd.f32 %v1798_v5, %v1797_v0 }
 0x8ad   : > { %2377 = vmatpush.msrb.mxu1 %v4264_v11  ;;  %v1800_v11 = vstv %s1771_s18  ;;  %s1985_s18 = sadd.s32 20, %s3451_s27 }
 0x8ae   : > { %v1801_v52 = vmul.f32 %v1800_v11, %v4682_v39 }
 0x8af   : > { %2378 = vmatpush.msrb.mxu1 %v4274_v14  ;;  %v1803_v14 = vmul.f32 %v1800_v11, %v1799_v7 }
 0x8b1   : > { %2379 = vmatpush.msrb.mxu1 %v4282_v17  ;;  %v1805_v17 = vstv %s1773_s11  ;;  %s1986_s11 = sld [smem:[#allocation4 + %s1985_s18]] }
 0x8b3   : > { %2380 = vmatpush.msrb.mxu1 %v4287_v19  ;;  %v1804_v19 = vsub.f32 %v4675_v24, %v1803_v14  ;;  %v1802_v24 = vadd.f32 %v1801_v52, %v1764_v31  ;;  %v2022_v31 = vstv %s1988_s23  ;;  %s4986_s23 = sld [smem:[#allocation4 + %s2063_s14]]  ;;  %s2139_s14 = sadd.s32 94, %s3451_s27 }
 0x8b5   : > { %2381 = vmatpush.msrb.mxu1 %v4292_v8  ;;  %v1806_v8 = vmul.f32 %v1805_v17, %v4682_v39  ;;  %v1905_v39 = vstv %s4769_s0  ;;  %s2392_s0 = sadd.s32 60, %s3451_s27 }
 0x8b7   : > { %v1807_v56 = vadd.f32 %v1806_v8, %v1804_v19 }
 0x8b9   : > { %v1811_v33 = vmul.f32 %v1810_v37, %v1807_v56 }
 0x8bb   : > { %v4771_v62 = vadd.f32 %v1811_v33, %v1802_v24 }
 0x8bd   : > { %v1816_v57 = vsub.f32 %v4593_v45, %v4771_v62  ;;  %v1906_v4 = vmul.f32 %v1905_v39, %v4771_v62 }
 0x8bf   : > { %v1817_v32 = vmul.f32 %v1816_v57, %v5361_v22  ;;  %v1907_v13 = vadd.f32 %v1906_v4, %v1904_v51  ;;  %v4878_v51 = vstv %s3175_s12  ;;  %s3227_s12 = spop %3226 }
 0x8c1   : > { %v4789_v41 = vadd.f32 %v1817_v32, %v4462_v61  ;;  %v1914_v61 = vmul.f32 %v3861_v44, %v4593_v45  ;;  %v1908_v58 = vmul.f32 0.5, %v1907_v13  ;;  %v2027_v32 = vstv %s2026_s2  ;;  %s3176_s2 = sld [smem:[#allocation2 + $0x9]] }
 0x8c3   : > { %v1910_v53 = vadd.f32 %v4789_v41, %v4796_v10  ;;  %v1919_v7 = vadd.f32 %v1918_v54, %v1914_v61 }
 0x8c5   : > { %v1911_v5 = vmul.f32 0.5, %v1910_v53  ;;  %v1943_v14 = vadd.f32 %v1942_v42, %v1919_v7  ;;  %v4882_v53 = vstv %s2031_s1  ;;  %v2144_v42 = vmul.f32 0.5, %v4789_v41  ;;  %s2101_s1 = sadd.s32 92, %s3451_s27 }
 0x913   : > { %v1899_v23 = vpop.f32.mrf.mxu1 }
 0x914   : > { %v1902_v27 = vmul.f32 0.5, %v1899_v23  ;;  %v4884_v23 = vstv %s2145_s16 }
 0x916   : > { %v1909_v0 = vadd.f32 %v1908_v58, %v1902_v27  ;;  %v2060_v27 = vmul.f32 %v4882_v53, %v4737_v30  ;;  %v2174_v58 = vmul.f32 %v4884_v23, %v4771_v62 }
 0x918   : > { %v1912_v11 = vsub.f32 %v1909_v0, %v1911_v5  ;;  %v2030_v5 = vmul.f32 0.5, %v4796_v10 }
 0x91a   : > { %v1913_v17 = vadd.f32 %v1912_v11, %v3866_v47 }
 0x91b   : > { %v2055_v4 = vpop.f32.mrf.mxu1 }
 0x91c   : > { %v4810_v19 = vsub.f32 %v1913_v17, %v1943_v14  ;;  %v2059_v61 = vmul.f32 %v4878_v51, %v2055_v4 }
 0x91e   : > { %3183 = vmatmul.msk.f32.vlgmr.msra.gmra.mxu3 %vm503_vm0, %v4810_v19  ;;  %v2061_v11 = vadd.f32 %v2060_v27, %v2059_v61 }
 0x91f   : > { %2275 = vmatpush.msra.mxu3 %v4488_v28  ;;  %v1949_v28 = vmul.f32 %v3861_v44, %v4810_v19 }
 0x921   : > { %2276 = vmatpush.msra.mxu3 %v4492_v29  ;;  %v1950_v29 = vmul.f32 %v4810_v19, %v4798_v16 }
 0x923   : > { %2277 = vmatpush.msra.mxu3 %v4496_v9 }
 0x925   : > { %2278 = vmatpush.msra.mxu3 %v4500_v12  ;;  %v1951_v12 = vadd.f32 %v1950_v29, %v1949_v28 }
 0x927   : > { %2279 = vmatpush.msra.mxu3 %v4504_v15 }
 0x929   : > { %2280 = vmatpush.msra.mxu3 %v4508_v18 }
 0x92b   : > { %2281 = vmatpush.msra.mxu3 %v4512_v20  ;;  %v1977_v20 = vstv %s4824_s28  ;;  %s2179_s28 = sadd.s32 198, %s3451_s27 }
 0x92c   : > { %v1978_v33 = vmul.f32 %v1977_v20, %v4810_v19  ;;  %s2180_s18 = sld [smem:[#allocation4 + %s2179_s28]]  ;;  %s2103_s28 = sadd.s32 128, %s3451_s27 }
 0x92d   : > { %2282 = vmatpush.msra.mxu3 %v4516_v35  ;;  %v1982_v35 = vstv %s1948_s13 }
 0x92e   : > { %v1983_v56 = vmul.f32 %v1982_v35, %v4810_v19  ;;  %v1979_v26 = vadd.f32 %v1978_v33, %v4593_v45  ;;  %v4936_v35 = vld [vmem:[%s3621_s10 + $0x10] sm:$0xff] }
 0x9a1   : > { %v1972_v9 = vpop.f32.mrf.mxu3 }
 0x9a2   : > { %v1975_v15 = vmul.f32 %v1972_v9, %v4802_v55  ;;  %v4909_v9 = vld [vmem:[%s3621_s10 + $0x38] sm:$0xff] }
 0x9a4   : > { %v1976_v18 = vadd.f32 %v1975_v15, %v1951_v12  ;;  %v4914_v12 = vld [vmem:[%s3621_s10 + $0x30] sm:$0xff]  ;;  %v4919_v15 = vld [vmem:[%s3621_s10 + $0x28] sm:$0xff] }
 0x9a6   : > { %v1980_v8 = vmul.f32 %v1977_v20, %v1976_v18  ;;  %v4924_v18 = vld [vmem:[%s3621_s10 + $0x20] sm:$0xff]  ;;  %v4931_v20 = vld [vmem:[%s3621_s10 + $0x18] sm:$0xff] }
 0x9a8   : > { %v1981_v49 = vsub.f32 %v4810_v19, %v1980_v8  ;;  %v4940_v8 = vld [vmem:[%s3727_s22 + $0x10] sm:$0xff] }
 0x9aa   : > { %v1984_v37 = vadd.f32 %v1983_v56, %v1981_v49  ;;  %v4948_v56 = vld [vmem:[%s3727_s22 + $0x8] sm:$0xff] }
 0x9ac   : > { %3184 = vmatmul.msk.f32.vlgmr.msrb.gmra.mxu0 %vm503_vm0, %v1984_v37  ;;  %v2023_v22 = vmul.f32 %v2022_v31, %v1984_v37 }
 0x9ad   : > { %2335 = vmatpush.msrb.mxu0 %v4533_v46  ;;  %v4846_v46 = vld [vmem:[%s3727_s22 + $0x38] sm:$0xff] }
 0x9af   : > { %2336 = vmatpush.msrb.mxu0 %v4537_v50  ;;  %v4850_v50 = vld [vmem:[%s3727_s22 + $0x30] sm:$0xff] }
 0x9b1   : > { %2337 = vmatpush.msrb.mxu0 %v4541_v38  ;;  %v4854_v38 = vld [vmem:[%s3727_s22 + $0x28] sm:$0xff] }
 0x9b3   : > { %2338 = vmatpush.msrb.mxu0 %v4545_v60  ;;  %v4858_v60 = vld [vmem:[%s3727_s22 + $0x20] sm:$0xff] }
 0x9b4   : > { %3188 = vmatmul.msk.f32.vlgmr.msra.gmra.mxu0 %vm503_vm0, %v4771_v62 }
 0x9b5   : > { %2339 = vmatpush.msrb.mxu0 %v4551_v43  ;;  %v4862_v43 = vld [vmem:[%s3727_s22 + $0x18] sm:$0xff] }
 0x9b7   : > { %2340 = vmatpush.msrb.mxu0 %v4555_v40  ;;  %v1989_v40 = vmul.f32 %v3861_v44, %v1984_v37 }
 0x9b9   : > { %2341 = vmatpush.msrb.mxu0 %v4559_v2  ;;  %v1990_v2 = vmul.f32 %v1984_v37, %v4798_v16  ;;  %v4880_v16 = vstv %s3177_s21  ;;  %s2290_s21 = smul.f32 %s3227_s12, %s3176_s2  ;;  %s2217_s2 = sadd.s32 200, %s3451_s27 }
 0x9bb   : > { %2342 = vmatpush.msrb.mxu0 %v4563_v59  ;;  %v1991_v52 = vadd.f32 %v1990_v2, %v1989_v40  ;;  %v4956_v40 = vld [vmem:[%s3727_s22] sm:$0xff]  ;;  %s2177_s22 = sadd.s32 162, %s3451_s27  ;;  %s2291_s16 = ssub.f32 0.0, %s2290_s21 }
 0x9bc   : > { %s4977_s13 = sld [smem:[#allocation4 + %s2177_s22]] }
 0x9bd   : > { %2491 = vmatpush.msra.mxu0 %v4846_v46  ;;  %s2102_s22 = sld [smem:[#allocation4 + %s2101_s1]] }
 0x9bf   : > { %2492 = vmatpush.msra.mxu0 %v4850_v50 }
 0x9c1   : > { %2493 = vmatpush.msra.mxu0 %v4854_v38 }
 0x9c2   : > { %v2207_v4 = vstv %s4977_s13 }
 0x9c3   : > { %2494 = vmatpush.msra.mxu0 %v4858_v60 }
 0x9c5   : > { %2495 = vmatpush.msra.mxu0 %v4862_v43 }
 0x9c7   : > { %2496 = vmatpush.msra.mxu0 %v4369_v34 }
 0x9c9   : > { %2497 = vmatpush.msra.mxu0 %v4374_v3 }
 0x9cb   : > { %2498 = vmatpush.msra.mxu0 %v4379_v63  ;;  %v2017_v63 = vstv %s1986_s11  ;;  %s2065_s11 = sadd.s32 126, %s3451_s27 }
 0x9cc   : > { %v2018_v57 = vmul.f32 %v2017_v63, %v1984_v37  ;;  %v4952_v37 = vld [vmem:[%s3621_s10] sm:$0xff]  ;;  %s2066_s25 = sld [smem:[#allocation4 + %s2065_s11]] }
 0x9cd   : > { %s2140_s11 = sld [smem:[#allocation4 + %s2139_s14]] }
 0x9ce   : > { %v2019_v25 = vadd.f32 %v2018_v57, %v1979_v26  ;;  %s2393_s14 = sld [smem:[#allocation4 + %s2392_s0]] }
 0xa29   : > { %v2012_v59 = vpop.f32.mrf.mxu0 }
 0xa2a   : > { %v2015_v34 = vmul.f32 %v2012_v59, %v4802_v55 }
 0xa2c   : > { %v2016_v3 = vadd.f32 %v2015_v34, %v1991_v52 }
 0xa2e   : > { %v2020_v24 = vmul.f32 %v2017_v63, %v2016_v3 }
 0xa30   : > { %v2021_v48 = vsub.f32 %v1981_v49, %v2020_v24  ;;  %v4944_v49 = vld [vmem:[%s3621_s10 + $0x8] sm:$0xff]  ;;  %s4967_s10 = sld [smem:[#allocation2 + $0x16]] }
 0xa31   : > { %v2169_v13 = vpop.f32.mrf.mxu0 }
 0xa32   : > { %v2024_v1 = vadd.f32 %v2023_v22, %v2021_v48  ;;  %v2173_v45 = vmul.f32 %v4880_v16, %v2169_v13  ;;  %v2212_v13 = vstv %s2180_s18  ;;  %s2104_s18 = sld [smem:[#allocation4 + %s2103_s28]] }
 0xa34   : > { %v2028_v55 = vmul.f32 %v2027_v32, %v2024_v1  ;;  %v2175_v17 = vadd.f32 %v2174_v58, %v2173_v45 }
 0xa36   : > { %v4887_v54 = vadd.f32 %v2028_v55, %v2019_v25  ;;  %v4970_v2 = vstv %s4967_s10 }
 0xa37   : > { %3310 = vrcp.f32 %v4970_v2  ;;  %v2317_v34 = vand.u32 2147483648, %v4970_v2  ;;  %vm2311_vm3 = vweird.f32 %v4970_v2  ;;  %v2315_v63 = vand.u32 2147483647, %v4970_v2 }
 0xa38   : > { %v2147_v0 = vmul.f32 %v4884_v23, %v4887_v54  ;;  %v2033_v7 = vmul.f32 %v4882_v53, %v4887_v54 }
 0xa39   : > { %v2318_v33 = vor.u32 1.1754944e-38, %v2317_v34  ;;  %vm2316_vm6 = vcmp.eq.f32.partialorder %v2315_v63, 8.507059e+37  ;;  %v2294_v34 = vstv %s2290_s21  ;;  %s2253_s21 = sadd.s32 166, %s3451_s27 }
 0xa3a   : > { %v2148_v14 = vadd.f32 %v2147_v0, %v2144_v42  ;;  %v2034_v19 = vadd.f32 %v2033_v7, %v2030_v5  ;;  %v2093_v5 = vstv %s4986_s23  ;;  %v2098_v7 = vstv %s2066_s25  ;;  %s2215_s23 = sadd.s32 164, %s3451_s27  ;;  %s2254_s1 = sld [smem:[#allocation4 + %s2253_s21]] }
 0xa3b   : > { %s2216_s25 = sld [smem:[#allocation4 + %s2215_s23]] }
 0xa3c   : > { %v4900_v28 = vsub.f32 %v2148_v14, %v2175_v17  ;;  %v4902_v29 = vsub.f32 %v2034_v19, %v2061_v11  ;;  %s3192_s21 = sld [smem:[#allocation2 + $0x4]] }
 0xa3d   : > { %v3311_v59 = vpop.eup %3310 }
 0xa3e   : > { %3186 = vmatmul.msk.f32.vlgmr.msrb.gmra.mxu2 %vm503_vm0, %v4902_v29  ;;  %3189 = vmatmul.msk.f32.vlgmr.msra.gmra.mxu1 %vm503_vm0, %v4900_v28  ;;  %v2307_v52 = vmul.f32 %v3311_v59, %v4970_v2  ;;  %vm2312_vm4 = vweird.f32 %v3311_v59  ;;  %v2205_v22 = vmul.f32 %v4900_v28, %v4884_v23  ;;  %v2213_v45 = vmul.f32 %v2212_v13, %v4900_v28 }
 0xa3f   : > { %2408 = vmatpush.msrb.mxu2 %v4909_v9  ;;  %2523 = vmatpush.msra.mxu1 %v4846_v46  ;;  %vm2313_vm5 = vmor %vm2311_vm3, %vm2312_vm4  ;;  %v2091_v58 = vmul.f32 %v4902_v29, %v4882_v53  ;;  %v2099_v17 = vmul.f32 %v2098_v7, %v4902_v29 }
 0xa40   : > { %v2308_v3 = vsub.f32 1.0, %v2307_v52 }
 0xa41   : > { %2409 = vmatpush.msrb.mxu2 %v4914_v12  ;;  %2524 = vmatpush.msra.mxu1 %v4850_v50 }
 0xa42   : > { %v2309_v31 = vmul.f32 %v3311_v59, %v2308_v3  ;;  %v2131_v3 = vstv %s2102_s22  ;;  %s5086_s22 = sld [smem:[#allocation2 + $0x22]] }
 0xa43   : > { %2410 = vmatpush.msrb.mxu2 %v4919_v15  ;;  %2525 = vmatpush.msra.mxu1 %v4854_v38 }
 0xa44   : > { %v2310_v24 = vadd.f32 %v3311_v59, %v2309_v31 }
 0xa45   : > { %2411 = vmatpush.msrb.mxu2 %v4924_v18  ;;  %2526 = vmatpush.msra.mxu1 %v4858_v60 }
 0xa46   : > { %3199 = vmatmul.msk.f32.vlgmr.msrb.gmra.mxu1 %vm503_vm0, %v4887_v54  ;;  %v2314_v32 = vsel %vm2313_vm5, %v3311_v59, %v2310_v24  ;;  %v2136_v24 = vstv %s2104_s18  ;;  %s2365_s18 = smul.f32 0.5, %s4967_s10  ;;  %s5141_s10 = sld [smem:[#allocation4 + %s2390_s26]] }
 0xa47   : > { %2412 = vmatpush.msrb.mxu2 %v4931_v20  ;;  %2527 = vmatpush.msra.mxu1 %v4862_v43  ;;  %v2319_v26 = vsel %vm2316_vm6, %v2318_v33, %v2314_v32  ;;  %s2622_s26 = sadd.s32 168, %s3451_s27 }
 0xa48   : > { %3228 = vpush %v2319_v26 }
 0xa49   : > { %2413 = vmatpush.msrb.mxu2 %v4936_v35  ;;  %2528 = vmatpush.msra.mxu1 %v4940_v8 }
 0xa4b   : > { %2414 = vmatpush.msrb.mxu2 %v4944_v49  ;;  %2529 = vmatpush.msra.mxu1 %v4948_v56 }
 0xa4d   : > { %2415 = vmatpush.msrb.mxu2 %v4952_v37  ;;  %2530 = vmatpush.msra.mxu1 %v4956_v40 }
 0xa4f   : > { %2675 = vmatpush.msrb.mxu1 %v4909_v9 }
 0xa51   : > { %2676 = vmatpush.msrb.mxu1 %v4914_v12 }
 0xa53   : > { %2677 = vmatpush.msrb.mxu1 %v4919_v15 }
 0xa55   : > { %2678 = vmatpush.msrb.mxu1 %v4924_v18 }
 0xa57   : > { %2679 = vmatpush.msrb.mxu1 %v4931_v20 }
 0xa59   : > { %2680 = vmatpush.msrb.mxu1 %v4936_v35 }
 0xa5b   : > { %2681 = vmatpush.msrb.mxu1 %v4944_v49 }
 0xa5d   : > { %2682 = vmatpush.msrb.mxu1 %v4952_v37 }
 0xabb   : > { %v2201_v57 = vpop.f32.mrf.mxu1 }
 0xabc   : > { %v2204_v48 = vmul.f32 %v2201_v57, %v4880_v16 }
 0xabe   : > { %v2206_v1 = vadd.f32 %v2205_v22, %v2204_v48  ;;  %v2094_v22 = vmul.f32 %v2093_v5, %v4902_v29 }
 0xac0   : > { %v2210_v25 = vmul.f32 %v2207_v4, %v2206_v1  ;;  %v2141_v1 = vstv %s2140_s11  ;;  %s2432_s11 = sadd.s32 62, %s3451_s27 }
 0xac1   : > { %v2087_v55 = vpop.f32.mrf.mxu2 }
 0xac2   : > { %v4992_v61 = vsub.f32 %v4900_v28, %v2210_v25  ;;  %v2090_v27 = vmul.f32 %v2087_v55, %v4878_v51  ;;  %v2095_v25 = vadd.f32 %v2094_v22, %v4737_v30 }
 0xac4   : > { %v4999_v42 = vadd.f32 %v2213_v45, %v4992_v61  ;;  %v2092_v0 = vadd.f32 %v2091_v58, %v2090_v27 }
 0xac6   : > { %v2096_v11 = vmul.f32 %v2093_v5, %v2092_v0  ;;  %3190 = vmatmul.msk.f32.vlgmr.msra.gmra.mxu2 %vm503_vm0, %v4999_v42  ;;  %v2243_v27 = vmul.f32 %v4999_v42, %v4884_v23  ;;  %v2245_v0 = vstv %s2216_s25  ;;  %s2433_s25 = sld [smem:[#allocation4 + %s2432_s11]] }
 0xac7   : > { %2561 = vmatpush.msra.mxu2 %v4846_v46  ;;  %v2246_v23 = vmul.f32 %v2245_v0, %v4999_v42 }
 0xac8   : > { %v2097_v14 = vsub.f32 %v4902_v29, %v2096_v11 }
 0xac9   : > { %2562 = vmatpush.msra.mxu2 %v4850_v50  ;;  %v2287_v50 = vstv %s3227_s12  ;;  %s2218_s12 = sld [smem:[#allocation4 + %s2217_s2]]  ;;  %s2470_s2 = sadd.s32 28, %s3451_s27 }
 0xaca   : > { %v2100_v19 = vadd.f32 %v2099_v17, %v2097_v14  ;;  %v2208_v17 = vmul.f32 %v2207_v4, %v4900_v28 }
 0xacb   : > { %2563 = vmatpush.msra.mxu2 %v4854_v38 }
 0xacc   : > { %3187 = vmatmul.msk.f32.vlgmr.msrb.gmra.mxu3 %vm503_vm0, %v2100_v19  ;;  %v2132_v13 = vmul.f32 %v2131_v3, %v2100_v19 }
 0xacd   : > { %2448 = vmatpush.msrb.mxu3 %v4909_v9  ;;  %2564 = vmatpush.msra.mxu2 %v4858_v60  ;;  %v2129_v60 = vmul.f32 %v2100_v19, %v4882_v53  ;;  %v2137_v53 = vmul.f32 %v2136_v24, %v2100_v19  ;;  %v2255_v19 = vstv %s2254_s1  ;;  %s3194_s1 = sld [smem:[#allocation2 + $0x10]] }
 0xace   : > { %v2133_v45 = vadd.f32 %v2132_v13, %v2095_v25  ;;  %v3361_v13 = vld [vmem:[%s3615_s24 + $0x30] sm:$0xff]  ;;  %v3362_v25 = vld [vmem:[%s3615_s24 + $0x28] sm:$0xff] }
 0xacf   : > { %2449 = vmatpush.msrb.mxu3 %v4914_v12  ;;  %2565 = vmatpush.msra.mxu2 %v4862_v43  ;;  %v2288_v43 = vmul.f32 %v2287_v50, %v4724_v6  ;;  %v2250_v7 = vstv %s2218_s12  ;;  %s2471_s12 = sld [smem:[#allocation4 + %s2470_s2]] }
 0xad1   : > { %2450 = vmatpush.msrb.mxu3 %v4919_v15  ;;  %2566 = vmatpush.msra.mxu2 %v4940_v8  ;;  %v2292_v8 = vstv %s2291_s16  ;;  %s5084_s16 = sld [smem:[#allocation2 + $0x1c]] }
 0xad3   : > { %2451 = vmatpush.msrb.mxu3 %v4924_v18  ;;  %2567 = vmatpush.msra.mxu2 %v4948_v56 }
 0xad4   : > { %3191 = vmatmul.msk.f32.vlgmr.msra.gmra.mxu3 %vm503_vm0, %v4887_v54 }
 0xad5   : > { %2452 = vmatpush.msrb.mxu3 %v4931_v20  ;;  %2568 = vmatpush.msra.mxu2 %v4956_v40 }
 0xad7   : > { %2453 = vmatpush.msrb.mxu3 %v4936_v35  ;;  %s2360_s13 = sadd.f32 %s5086_s22, %s5084_s16  ;;  %v2348_v50 = vstv %s5084_s16 }
 0xad9   : > { %2454 = vmatpush.msrb.mxu3 %v4944_v49  ;;  %s2361_s28 = smul.f32 0.5, %s2360_s13 }
 0xada   : > { %s2476_s13 = smul.f32 0.5, %s5084_s16  ;;  %s2816_s16 = sadd.s32 30, %s3451_s27 }
 0xadb   : > { %2455 = vmatpush.msrb.mxu3 %v4952_v37 }
 0xadd   : > { %2605 = vmatpush.msra.mxu3 %v4909_v9 }
 0xadf   : > { %2606 = vmatpush.msra.mxu3 %v4914_v12 }
 0xae1   : > { %2607 = vmatpush.msra.mxu3 %v4919_v15 }
 0xae3   : > { %2608 = vmatpush.msra.mxu3 %v4924_v18 }
 0xae5   : > { %2609 = vmatpush.msra.mxu3 %v4931_v20 }
 0xae7   : > { %2610 = vmatpush.msra.mxu3 %v4936_v35 }
 0xae9   : > { %2611 = vmatpush.msra.mxu3 %v4944_v49 }
 0xaeb   : > { %2612 = vmatpush.msra.mxu3 %v4952_v37 }
 0xb49   : > { %v2239_v30 = vpop.f32.mrf.mxu2 }
 0xb4a   : > { %v2242_v29 = vmul.f32 %v2239_v30, %v4880_v16  ;;  %v3365_v30 = vld [vmem:[%s3615_s24 + $0x10] sm:$0xff] }
 0xb4c   : > { %v2244_v58 = vadd.f32 %v2243_v27, %v2242_v29  ;;  %v3366_v29 = vld [vmem:[%s3615_s24 + $0x8] sm:$0xff]  ;;  %v3367_v27 = vld [vmem:[%s3615_s24] sm:$0xff] }
 0xb4e   : > { %v2248_v5 = vmul.f32 %v2245_v0, %v2244_v58 }
 0xb4f   : > { %v2125_v46 = vpop.f32.mrf.mxu3 }
 0xb50   : > { %v2128_v38 = vmul.f32 %v2125_v46, %v4878_v51  ;;  %v2249_v11 = vsub.f32 %v4992_v61, %v2248_v5  ;;  %v2209_v46 = vadd.f32 %v2208_v17, %v4771_v62  ;;  %v2422_v17 = vstv %s5141_s10  ;;  %s2624_s10 = sadd.s32 204, %s3451_s27 }
 0xb51   : > { %s2625_s11 = sld [smem:[#allocation4 + %s2624_s10]]  ;;  %s3229_s10 = spop %3228 }
 0xb52   : > { %v2130_v40 = vadd.f32 %v2129_v60, %v2128_v38  ;;  %v2247_v28 = vadd.f32 %v2246_v23, %v2209_v46  ;;  %v2350_v60 = vstv %s5086_s22 }
 0xb54   : > { %v2134_v63 = vmul.f32 %v2131_v3, %v2130_v40  ;;  %v5119_v3 = vstv %s2365_s18  ;;  %s2510_s18 = sadd.s32 132, %s3451_s27 }
 0xb56   : > { %v2135_v51 = vsub.f32 %v2097_v14, %v2134_v63  ;;  %v2251_v14 = vmul.f32 %v2250_v7, %v4999_v42 }
 0xb57   : > { %v2284_v56 = vpop.f32.mrf.mxu3 }
 0xb58   : > { %v2289_v59 = vsub.f32 %v2284_v56, %v2288_v43  ;;  %v2138_v32 = vadd.f32 %v2137_v53, %v2135_v51  ;;  %v2252_v16 = vadd.f32 %v2251_v14, %v2249_v11 }
 0xb5a   : > { %v2293_v52 = vmax.f32 %v2292_v8, %v2289_v59  ;;  %v2142_v55 = vmul.f32 %v2141_v1, %v2138_v32  ;;  %v2256_v61 = vmul.f32 %v2255_v19, %v2252_v16  ;;  %v3360_v1 = vld [vmem:[%s3615_s24 + $0x38] sm:$0xff]  ;;  %v2427_v16 = vstv %s2393_s14  ;;  %s2511_s14 = sld [smem:[#allocation4 + %s2510_s18]] }
 0xb5c   : > { %v2295_v31 = vmin.f32 %v2294_v34, %v2293_v52  ;;  %v5088_v4 = vadd.f32 %v2256_v61, %v2247_v28  ;;  %v5115_v34 = vstv %s2361_s28  ;;  %v3368_v28 = vld [vmem:[%s3645_s15 + $0x38] sm:$0xff]  ;;  %s2508_s28 = sadd.s32 96, %s3451_s27 }
 0xb5d   : > { %s5215_s0 = sld [smem:[#allocation4 + %s2508_s28]] }
 0xb5e   : > { %v2296_v33 = vsub.f32 %v2289_v59, %v2295_v31  ;;  %v2261_v62 = vsub.f32 %v4887_v54, %v5088_v4  ;;  %v2351_v40 = vmul.f32 %v2350_v60, %v5088_v4  ;;  %v2363_v31 = vmul.f32 %v5115_v34, %v4887_v54 }
 0xb60   : > { %v2297_v57 = vsub.f32 %v2296_v33, %v2289_v59  ;;  %v2322_v6 = vmul.f32 %v4970_v2, %v2296_v33  ;;  %v2262_v43 = vmul.f32 %v2261_v62, %v1905_v39  ;;  %v3370_v62 = vld [vmem:[%s3645_s15 + $0x28] sm:$0xff] }
 0xb62   : > { %v5043_v48 = vmul.f32 %v2297_v57, %v4643_v21  ;;  %v5054_v21 = vadd.f32 %v2142_v55, %v2133_v45  ;;  %v5113_v59 = vadd.f32 %v2262_v43, %v4789_v41  ;;  %v3363_v55 = vld [vmem:[%s3615_s24 + $0x20] sm:$0xff]  ;;  %v3364_v45 = vld [vmem:[%s3615_s24 + $0x18] sm:$0xff]  ;;  %s2430_s24 = sadd.s32 26, %s3451_s27 }
 0xb63   : > { %v3372_v43 = vld [vmem:[%s3645_s15 + $0x18] sm:$0xff]  ;;  %s2431_s23 = sld [smem:[#allocation4 + %s2430_s24]] }
 0xb64   : > { %v2323_v26 = vadd.f32 %v2322_v6, %v5043_v48  ;;  %v2258_v42 = vsub.f32 %v4887_v54, %v5054_v21  ;;  %v2349_v8 = vmul.f32 %v2348_v50, %v5054_v21  ;;  %s5218_s24 = sld [smem:[#allocation4 + %s2622_s26]] }
 0xb66   : > { %3198 = vmatmul.msk.f32.vlgmr.msrb.gmra.mxu0 %vm503_vm0, %v2323_v26  ;;  %v2259_v38 = vmul.f32 %v2258_v42, %v1903_v36  ;;  %v2352_v52 = vadd.f32 %v2351_v40, %v2349_v8  ;;  %v2383_v36 = vpop.f32.mrf.mxu1  ;;  %v3369_v42 = vld [vmem:[%s3645_s15 + $0x30] sm:$0xff]  ;;  %v3374_v40 = vld [vmem:[%s3645_s15 + $0x8] sm:$0xff] }
 0xb67   : > { %2637 = vmatpush.msrb.mxu0 %v4909_v9  ;;  %v2387_v24 = vmul.f32 %v5119_v3, %v2383_v36  ;;  %v3373_v8 = vld [vmem:[%s3645_s15 + $0x10] sm:$0xff] }
 0xb68   : > { %v5106_v56 = vadd.f32 %v2259_v38, %v4796_v10  ;;  %v2359_v10 = vmul.f32 %v3861_v44, %v4887_v54  ;;  %v2353_v33 = vmul.f32 0.5, %v2352_v52  ;;  %v3371_v38 = vld [vmem:[%s3645_s15 + $0x20] sm:$0xff] }
 0xb69   : > { %2638 = vmatpush.msrb.mxu0 %v4914_v12  ;;  %v3375_v52 = vld [vmem:[%s3645_s15] sm:$0xff]  ;;  %s2590_s15 = smul.f32 0.5, %s5086_s22 }
 0xb6a   : > { %v2355_v39 = vadd.f32 %v5113_v59, %v5106_v56  ;;  %v2364_v53 = vadd.f32 %v2363_v31, %v2359_v10 }
 0xb6b   : > { %2639 = vmatpush.msrb.mxu0 %v4919_v15 }
 0xb6c   : > { %v2356_v57 = vmul.f32 0.5, %v2355_v39  ;;  %v2388_v22 = vadd.f32 %v2387_v24, %v2364_v53  ;;  %v2467_v24 = vstv %s2433_s25  ;;  %s2662_s25 = sadd.s32 206, %s3451_s27 }
 0xb6d   : > { %2640 = vmatpush.msrb.mxu0 %v4924_v18 }
 0xb6e   : > { %3202 = vmatmul.msk.f32.vlgmr.msra.gmra.mxu0 %vm503_vm0, %v5054_v21 }
 0xb6f   : > { %2641 = vmatpush.msrb.mxu0 %v4931_v20 }
 0xb71   : > { %2642 = vmatpush.msrb.mxu0 %v4936_v35 }
 0xb73   : > { %2643 = vmatpush.msrb.mxu0 %v4944_v49 }
 0xb75   : > { %2644 = vmatpush.msrb.mxu0 %v4952_v37 }
 0xb77   : > { %2800 = vmatpush.msra.mxu0 %v4909_v9 }
 0xb79   : > { %2801 = vmatpush.msra.mxu0 %v4914_v12 }
 0xb7b   : > { %2802 = vmatpush.msra.mxu0 %v4919_v15 }
 0xb7d   : > { %2803 = vmatpush.msra.mxu0 %v4924_v18 }
 0xb7f   : > { %2804 = vmatpush.msra.mxu0 %v4931_v20 }
 0xb81   : > { %2805 = vmatpush.msra.mxu0 %v4936_v35 }
 0xb83   : > { %2806 = vmatpush.msra.mxu0 %v4944_v49 }
 0xb85   : > { %2807 = vmatpush.msra.mxu0 %v4952_v37 }
 0xbe3   : > { %v2344_v63 = vpop.f32.mrf.mxu0 }
 0xbe4   : > { %v2347_v41 = vmul.f32 0.5, %v2344_v63 }
 0xbe6   : > { %v2354_v51 = vadd.f32 %v2353_v33, %v2347_v41  ;;  %v2462_v33 = vstv %s2431_s23  ;;  %s2660_s23 = sadd.s32 170, %s3451_s27 }
 0xbe7   : > { %s2661_s2 = sld [smem:[#allocation4 + %s2660_s23]] }
 0xbe8   : > { %v2357_v6 = vsub.f32 %v2354_v51, %v2356_v57  ;;  %s5274_s23 = sld [smem:[#allocation2 + $0x23]] }
 0xbea   : > { %v2358_v32 = vadd.f32 %v2357_v6, %v3866_v47 }
 0xbec   : > { %v5127_v26 = vsub.f32 %v2358_v32, %v2388_v22 }
 0xbee   : > { %3200 = vmatmul.msk.f32.vlgmr.msrb.gmra.mxu2 %vm503_vm0, %v5127_v26  ;;  %v2394_v58 = vmul.f32 %v3861_v44, %v5127_v26  ;;  %v2395_v0 = vmul.f32 %v5127_v26, %v5115_v34  ;;  %v2428_v46 = vmul.f32 %v2427_v16, %v5127_v26  ;;  %v2423_v51 = vmul.f32 %v2422_v17, %v5127_v26 }
 0xbef   : > { %2720 = vmatpush.msrb.mxu2 %v3360_v1 }
 0xbf0   : > { %v2396_v7 = vadd.f32 %v2395_v0, %v2394_v58  ;;  %v2424_v32 = vadd.f32 %v2423_v51, %v4887_v54 }
 0xbf1   : > { %2721 = vmatpush.msrb.mxu2 %v3361_v13  ;;  %v2500_v13 = vpop.f32.mrf.mxu0 }
 0xbf3   : > { %2722 = vmatpush.msrb.mxu2 %v3362_v25  ;;  %v5172_v25 = vstv %s3192_s21  ;;  %s2698_s21 = sadd.s32 172, %s3451_s27 }
 0xbf4   : > { %s5252_s28 = sld [smem:[#allocation4 + %s2698_s21]] }
 0xbf5   : > { %2723 = vmatpush.msrb.mxu2 %v3363_v55  ;;  %v5174_v55 = vstv %s3194_s1  ;;  %s3193_s1 = sld [smem:[#allocation2 + $0xa]] }
 0xbf7   : > { %2724 = vmatpush.msrb.mxu2 %v3364_v45  ;;  %v5176_v45 = vstv %s2476_s13  ;;  %s2548_s13 = sadd.s32 134, %s3451_s27 }
 0xbf8   : > { %v2505_v54 = vmul.f32 %v5176_v45, %v5054_v21  ;;  %s5258_s26 = sld [smem:[#allocation4 + %s2548_s13]] }
 0xbf9   : > { %2725 = vmatpush.msrb.mxu2 %v3365_v30 }
 0xbfb   : > { %2726 = vmatpush.msrb.mxu2 %v3366_v29  ;;  %v5178_v29 = vstv %s2590_s15  ;;  %s2546_s15 = sadd.s32 98, %s3451_s27 }
 0xbfc   : > { %s5256_s18 = sld [smem:[#allocation4 + %s2546_s15]] }
 0xbfd   : > { %2727 = vmatpush.msrb.mxu2 %v3367_v27  ;;  %v2504_v27 = vmul.f32 %v5172_v25, %v2500_v13  ;;  %s5308_s15 = sld [smem:[#allocation4 + %s2816_s16]] }
 0xbff   : > { %v2506_v16 = vadd.f32 %v2505_v54, %v2504_v27  ;;  %v2732_v54 = vstv %s3229_s10 }
 0xc71   : > { %v2417_v5 = vpop.f32.mrf.mxu2 }
 0xc72   : > { %v2420_v11 = vmul.f32 %v2417_v5, %v5119_v3  ;;  %v2619_v5 = vmul.f32 %v5178_v29, %v5088_v4 }
 0xc74   : > { %v2421_v14 = vadd.f32 %v2420_v11, %v2396_v7  ;;  %v2589_v7 = vmul.f32 0.5, %v5113_v59 }
 0xc76   : > { %v2425_v19 = vmul.f32 %v2422_v17, %v2421_v14  ;;  %v2475_v14 = vmul.f32 0.5, %v5106_v56 }
 0xc78   : > { %v2426_v23 = vsub.f32 %v5127_v26, %v2425_v19 }
 0xc7a   : > { %v2429_v61 = vadd.f32 %v2428_v46, %v2426_v23 }
 0xc7c   : > { %3201 = vmatmul.msk.f32.vlgmr.msrb.gmra.mxu3 %vm503_vm0, %v2429_v61  ;;  %v2434_v39 = vmul.f32 %v3861_v44, %v2429_v61  ;;  %v2435_v36 = vmul.f32 %v2429_v61, %v5115_v34  ;;  %v2463_v53 = vmul.f32 %v2462_v33, %v2429_v61  ;;  %v2468_v22 = vmul.f32 %v2467_v24, %v2429_v61 }
 0xc7d   : > { %2761 = vmatpush.msrb.mxu3 %v3368_v28  ;;  %v2472_v34 = vstv %s2471_s12  ;;  %s2663_s12 = sld [smem:[#allocation4 + %s2662_s25]] }
 0xc7e   : > { %v2436_v10 = vadd.f32 %v2435_v36, %v2434_v39  ;;  %v2464_v30 = vadd.f32 %v2463_v53, %v2424_v32  ;;  %v2538_v36 = vstv %s5215_s0  ;;  %s2584_s0 = sadd.s32 100, %s3451_s27  ;;  %s5276_s25 = sld [smem:[#allocation2 + $0x1d]] }
 0xc7f   : > { %2762 = vmatpush.msrb.mxu3 %v3369_v42 }
 0xc81   : > { %2763 = vmatpush.msrb.mxu3 %v3370_v62 }
 0xc83   : > { %2764 = vmatpush.msrb.mxu3 %v3371_v38 }
 0xc84   : > { %3205 = vmatmul.msk.f32.vlgmr.msra.gmra.mxu3 %vm503_vm0, %v5088_v4  ;;  %s2786_s22 = sadd.f32 %s5274_s23, %s5276_s25 }
 0xc85   : > { %2765 = vmatpush.msrb.mxu3 %v3372_v43 }
 0xc87   : > { %2766 = vmatpush.msrb.mxu3 %v3373_v8 }
 0xc89   : > { %2767 = vmatpush.msrb.mxu3 %v3374_v40 }
 0xc8b   : > { %2768 = vmatpush.msrb.mxu3 %v3375_v52 }
 0xcff   : > { %v2457_v63 = vpop.f32.mrf.mxu3 }
 0xd00   : > { %v2460_v31 = vmul.f32 %v2457_v63, %v5119_v3  ;;  %v2543_v63 = vstv %s2511_s14  ;;  %s5262_s14 = smul.f32 %s3229_s10, %s3193_s1  ;;  %s2818_s1 = sadd.s32 66, %s3451_s27 }
 0xd01   : > { %s2819_s13 = sld [smem:[#allocation4 + %s2818_s1]]  ;;  %s2896_s10 = sadd.s32 34, %s3451_s27 }
 0xd02   : > { %v2461_v41 = vadd.f32 %v2460_v31, %v2436_v10  ;;  %v2652_v10 = vstv %s5218_s24  ;;  %v2657_v31 = vstv %s2625_s11  ;;  %s5264_s24 = sld [smem:[#allocation4 + %s2584_s0]] }
 0xd03   : > { %s2736_s11 = ssub.f32 0.0, %s5262_s14 }
 0xd04   : > { %v2465_v57 = vmul.f32 %v2462_v33, %v2461_v41 }
 0xd06   : > { %v2466_v6 = vsub.f32 %v2426_v23, %v2465_v57 }
 0xd07   : > { %v2614_v3 = vpop.f32.mrf.mxu3 }
 0xd08   : > { %v2469_v1 = vadd.f32 %v2468_v22, %v2466_v6  ;;  %v2618_v0 = vmul.f32 %v5174_v55, %v2614_v3 }
 0xd0a   : > { %v2473_v26 = vmul.f32 %v2472_v34, %v2469_v1  ;;  %v2620_v23 = vadd.f32 %v2619_v5, %v2618_v0  ;;  %v2576_v0 = vstv %s5256_s18  ;;  %s2858_s18 = sadd.s32 68, %s3451_s27 }
 0xd0b   : > { %s2859_s0 = sld [smem:[#allocation4 + %s2858_s18]] }
 0xd0c   : > { %v5181_v58 = vadd.f32 %v2473_v26, %v2464_v30  ;;  %v2700_v30 = vstv %s5252_s28  ;;  %s2856_s28 = sadd.s32 32, %s3451_s27 }
 0xd0e   : > { %v2592_v11 = vmul.f32 %v5178_v29, %v5181_v58  ;;  %v2478_v17 = vmul.f32 %v5176_v45, %v5181_v58 }
 0xd10   : > { %v2593_v19 = vadd.f32 %v2592_v11, %v2589_v7  ;;  %v2479_v46 = vadd.f32 %v2478_v17, %v2475_v14  ;;  %v2581_v7 = vstv %s5258_s26  ;;  %s2857_s26 = sld [smem:[#allocation4 + %s2856_s28]] }
 0xd12   : > { %v5194_v61 = vsub.f32 %v2593_v19, %v2620_v23  ;;  %v5196_v28 = vsub.f32 %v2479_v46, %v2506_v16  ;;  %v2737_v23 = vstv %s2736_s11 }
 0xd14   : > { %3203 = vmatmul.msk.f32.vlgmr.msra.gmra.mxu1 %vm503_vm0, %v5196_v28  ;;  %3206 = vmatmul.msk.f32.vlgmr.msrb.gmra.mxu0 %vm503_vm0, %v5194_v61  ;;  %v2536_v43 = vmul.f32 %v5196_v28, %v5176_v45  ;;  %v2650_v40 = vmul.f32 %v5194_v61, %v5178_v29  ;;  %v2544_v51 = vmul.f32 %v2543_v63, %v5196_v28 }
 0xd15   : > { %2834 = vmatpush.msra.mxu1 %v4909_v9  ;;  %v2658_v53 = vmul.f32 %v2657_v31, %v5194_v61  ;;  %v2539_v5 = vmul.f32 %v2538_v36, %v5196_v28 }
 0xd17   : > { %2835 = vmatpush.msra.mxu1 %v4914_v12  ;;  %v2540_v46 = vadd.f32 %v2539_v5, %v5054_v21 }
 0xd19   : > { %2836 = vmatpush.msra.mxu1 %v4919_v15 }
 0xd1b   : > { %2837 = vmatpush.msra.mxu1 %v4924_v18 }
 0xd1c   : > { %3213 = vmatmul.msk.f32.vlgmr.msra.gmra.mxu0 %vm503_vm0, %v5181_v58 }
 0xd1d   : > { %2838 = vmatpush.msra.mxu1 %v4931_v20 }
 0xd1f   : > { %2839 = vmatpush.msra.mxu1 %v4936_v35 }
 0xd21   : > { %2840 = vmatpush.msra.mxu1 %v4944_v49 }
 0xd23   : > { %2841 = vmatpush.msra.mxu1 %v4952_v37 }
 0xd91   : > { %v2532_v42 = vpop.f32.mrf.mxu1  ;;  %v2646_v62 = vpop.f32.mrf.mxu0 }
 0xd92   : > { %v2535_v38 = vmul.f32 %v2532_v42, %v5172_v25  ;;  %v2649_v8 = vmul.f32 %v2646_v62, %v5174_v55 }
 0xd94   : > { %v2537_v52 = vadd.f32 %v2536_v43, %v2535_v38  ;;  %v2651_v39 = vadd.f32 %v2650_v40, %v2649_v8  ;;  %v2776_v40 = vstv %s5274_s23 }
 0xd96   : > { %v2541_v41 = vmul.f32 %v2538_v36, %v2537_v52  ;;  %v2655_v33 = vmul.f32 %v2652_v10, %v2651_v39  ;;  %v2739_v52 = vstv %s5262_s14  ;;  %v2774_v39 = vstv %s5276_s25  ;;  %s2897_s14 = sld [smem:[#allocation4 + %s2896_s10]] }
 0xd98   : > { %v5229_v24 = vsub.f32 %v5196_v28, %v2541_v41  ;;  %v2656_v57 = vsub.f32 %v5194_v61, %v2655_v33  ;;  %v2586_v28 = vstv %s5264_s24  ;;  %s2901_s24 = sld [smem:[#allocation6 + %s3451_s27]] }
 0xd9a   : > { %v2545_v6 = vadd.f32 %v2544_v51, %v5229_v24  ;;  %v2659_v22 = vadd.f32 %v2658_v53, %v2656_v57 }
 0xd9c   : > { %3204 = vmatmul.msk.f32.vlgmr.msra.gmra.mxu2 %vm503_vm0, %v2545_v6  ;;  %3207 = vmatmul.msk.f32.vlgmr.msrb.gmra.mxu1 %vm503_vm0, %v2659_v22  ;;  %v2582_v16 = vmul.f32 %v2581_v7, %v2545_v6  ;;  %v2853_v7 = vstv %s2819_s13 }
 0xd9d   : > { %2874 = vmatpush.msra.mxu2 %v4909_v9 }
 0xd9f   : > { %2875 = vmatpush.msra.mxu2 %v4914_v12 }
 0xda1   : > { %2876 = vmatpush.msra.mxu2 %v4919_v15  ;;  %v2688_v15 = vmul.f32 %v2659_v22, %v5178_v29 }
 0xda3   : > { %2877 = vmatpush.msra.mxu2 %v4924_v18 }
 0xda4   : > { %3208 = vmatmul.msk.f32.vlgmr.msrb.gmra.mxu2 %vm503_vm0, %v5181_v58 }
 0xda5   : > { %2878 = vmatpush.msra.mxu2 %v4931_v20  ;;  %v2690_v20 = vstv %s2661_s2  ;;  %s5282_s2 = sld [smem:[#allocation2 + $0x17]] }
 0xda6   : > { %v2691_v34 = vmul.f32 %v2690_v20, %v2659_v22 }
 0xda7   : > { %2879 = vmatpush.msra.mxu2 %v4936_v35  ;;  %v2695_v35 = vstv %s2663_s12  ;;  %s2787_s12 = smul.f32 0.5, %s2786_s22 }
 0xda8   : > { %v2696_v13 = vmul.f32 %v2695_v35, %v2659_v22 }
 0xda9   : > { %2880 = vmatpush.msra.mxu2 %v4944_v49  ;;  %v2653_v49 = vmul.f32 %v2652_v10, %v5194_v61 }
 0xdab   : > { %2881 = vmatpush.msra.mxu2 %v4952_v37  ;;  %v2654_v26 = vadd.f32 %v2653_v49, %v5088_v4  ;;  %v2733_v4 = vmul.f32 %v2732_v54, %v5043_v48  ;;  %s2791_s21 = smul.f32 0.5, %s5282_s2 }
 0xdad   : > { %v2692_v11 = vadd.f32 %v2691_v34, %v2654_v26  ;;  %v2812_v35 = vstv %s2791_s21 }
 0xe19   : > { %v2684_v9 = vpop.f32.mrf.mxu1 }
 0xe1a   : > { %v2687_v12 = vmul.f32 %v2684_v9, %v5174_v55  ;;  %v2574_v55 = vmul.f32 %v2545_v6, %v5176_v45 }
 0xe1c   : > { %v2689_v18 = vadd.f32 %v2688_v15, %v2687_v12 }
 0xe1e   : > { %v2693_v37 = vmul.f32 %v2690_v20, %v2689_v18  ;;  %v2809_v20 = vpop.f32.mrf.mxu0 }
 0xe1f   : > { %v2570_v32 = vpop.f32.mrf.mxu2 }
 0xe20   : > { %v2694_v1 = vsub.f32 %v2656_v57, %v2693_v37  ;;  %v2573_v3 = vmul.f32 %v2570_v32, %v5172_v25  ;;  %v2577_v25 = vmul.f32 %v2576_v0, %v2545_v6  ;;  %v2813_v37 = vmul.f32 %v2812_v35, %v2809_v20 }
 0xe22   : > { %v2697_v29 = vadd.f32 %v2696_v13, %v2694_v1  ;;  %v2575_v27 = vadd.f32 %v2574_v55, %v2573_v3  ;;  %v2578_v38 = vadd.f32 %v2577_v25, %v2540_v46 }
 0xe24   : > { %v2579_v14 = vmul.f32 %v2576_v0, %v2575_v27  ;;  %v2701_v17 = vmul.f32 %v2700_v30, %v2697_v29 }
 0xe26   : > { %v2580_v45 = vsub.f32 %v5229_v24, %v2579_v14  ;;  %v2702_v19 = vadd.f32 %v2701_v17, %v2692_v11  ;;  %v2747_v24 = vstv %s5282_s2 }
 0xe27   : > { %v2729_v61 = vpop.f32.mrf.mxu2 }
 0xe28   : > { %v2583_v42 = vadd.f32 %v2582_v16, %v2580_v45  ;;  %v2734_v62 = vsub.f32 %v2729_v61, %v2733_v4  ;;  %v2706_v8 = vsub.f32 %v5181_v58, %v2702_v19  ;;  %v2777_v21 = vmul.f32 %v2776_v40, %v2702_v19 }
 0xe29   : > { %v2888_v61 = vstv %s2857_s26 }
 0xe2a   : > { %v2738_v48 = vmax.f32 %v2737_v23, %v2734_v62  ;;  %v2587_v43 = vmul.f32 %v2586_v28, %v2583_v42  ;;  %v2707_v41 = vmul.f32 %v2706_v8, %v2350_v60  ;;  %v2788_v60 = vstv %s2787_s12 }
 0xe2b   : > { %v2893_v28 = vstv %s2859_s0  ;;  %v2898_v8 = vstv %s2897_s14 }
 0xe2c   : > { %v2740_v36 = vmin.f32 %v2739_v52, %v2738_v48  ;;  %v2588_v63 = vadd.f32 %v2587_v43, %v2578_v38  ;;  %v2708_v12 = vadd.f32 %v2707_v41, %v5113_v59 }
 0xe2e   : > { %v2741_v10 = vsub.f32 %v2734_v62, %v2740_v36  ;;  %v2703_v31 = vsub.f32 %v5181_v58, %v2588_v63  ;;  %v2775_v33 = vmul.f32 %v2774_v39, %v2588_v63  ;;  %v2902_v36 = vstv %s2901_s24 }
 0xe30   : > { %v2742_v51 = vsub.f32 %v2741_v10, %v2734_v62  ;;  %v2704_v57 = vmul.f32 %v2703_v31, %v2348_v50  ;;  %v2778_v53 = vadd.f32 %v2777_v21, %v2775_v33  ;;  %v2748_v22 = vmul.f32 %v2747_v24, %v2741_v10 }
 0xe32   : > { %v2743_v6 = vmul.f32 %v2742_v51, %v4970_v2  ;;  %v2705_v9 = vadd.f32 %v2704_v57, %v5106_v56  ;;  %v2785_v2 = vmul.f32 %v3861_v44, %v5181_v58  ;;  %v2789_v56 = vmul.f32 %v2788_v60, %v5181_v58 }
 0xe33   : > { %v2779_v59 = vmul.f32 0.5, %v2778_v53 }
 0xe34   : > { %v2749_v15 = vadd.f32 %v2748_v22, %v2743_v6  ;;  %v2781_v18 = vadd.f32 %v2708_v12, %v2705_v9  ;;  %v2790_v1 = vadd.f32 %v2789_v56, %v2785_v2 }
 0xe36   : > { %3212 = vmatmul.msk.f32.vlgmr.msrb.gmra.mxu3 %vm503_vm0, %v2749_v15  ;;  %v2782_v32 = vmul.f32 0.5, %v2781_v18  ;;  %v2814_v3 = vadd.f32 %v2813_v37, %v2790_v1 }
 0xeb9   : > { %v2770_v50 = vpop.f32.mrf.mxu3 }
 0xeba   : > { %v2773_v49 = vmul.f32 0.5, %v2770_v50 }
 0xebc   : > { %v2780_v34 = vadd.f32 %v2779_v59, %v2773_v49 }
 0xebe   : > { %v2783_v13 = vsub.f32 %v2780_v34, %v2782_v32 }
 0xec0   : > { %v2784_v55 = vadd.f32 %v2783_v13, %v3866_v47  ;;  %v2848_v47 = vstv %s5308_s15 }
 0xec2   : > { %v2815_v30 = vsub.f32 %v2784_v55, %v2814_v3 }
 0xec4   : > { %3214 = vmatmul.msk.f32.vlgmr.msra.gmra.mxu1 %vm503_vm0, %v2815_v30  ;;  %v2820_v26 = vmul.f32 %v3861_v44, %v2815_v30  ;;  %v2821_v29 = vmul.f32 %v2815_v30, %v2788_v60  ;;  %v2854_v17 = vmul.f32 %v2853_v7, %v2815_v30  ;;  %v2849_v42 = vmul.f32 %v2848_v47, %v2815_v30 }
 0xec6   : > { %v2822_v0 = vadd.f32 %v2821_v29, %v2820_v26  ;;  %v2850_v40 = vadd.f32 %v2849_v42, %v5181_v58 }
 0xf41   : > { %v2843_v27 = vpop.f32.mrf.mxu1 }
 0xf42   : > { %v2846_v54 = vmul.f32 %v2843_v27, %v2812_v35 }
 0xf44   : > { %v2847_v5 = vadd.f32 %v2846_v54, %v2822_v0 }
 0xf46   : > { %v2851_v11 = vmul.f32 %v2848_v47, %v2847_v5 }
 0xf48   : > { %v2852_v14 = vsub.f32 %v2815_v30, %v2851_v11 }
 0xf4a   : > { %v2855_v25 = vadd.f32 %v2854_v17, %v2852_v14 }
 0xf4c   : > { %3215 = vmatmul.msk.f32.vlgmr.msra.gmra.mxu2 %vm503_vm0, %v2855_v25  ;;  %v2860_v4 = vmul.f32 %v3861_v44, %v2855_v25  ;;  %v2861_v45 = vmul.f32 %v2855_v25, %v2788_v60  ;;  %v2889_v38 = vmul.f32 %v2888_v61, %v2855_v25  ;;  %v2894_v43 = vmul.f32 %v2893_v28, %v2855_v25 }
 0xf4e   : > { %v2862_v19 = vadd.f32 %v2861_v45, %v2860_v4  ;;  %v2890_v44 = vadd.f32 %v2889_v38, %v2850_v40 }
 0xfcf   : > { %v2883_v16 = vpop.f32.mrf.mxu2 }
 0xfd0   : > { %v2886_v23 = vmul.f32 %v2883_v16, %v2812_v35 }
 0xfd2   : > { %v2887_v46 = vadd.f32 %v2886_v23, %v2862_v19 }
 0xfd4   : > { %v2891_v62 = vmul.f32 %v2888_v61, %v2887_v46 }
 0xfd6   : > { %v2892_v48 = vsub.f32 %v2852_v14, %v2891_v62 }
 0xfd8   : > { %v2895_v52 = vadd.f32 %v2894_v43, %v2892_v48 }
 0xfda   : > { %v2899_v39 = vmul.f32 %v2898_v8, %v2895_v52  ;;  %2907 = sbr.rel (%p3216_p10) target bundleno = 4065 (0xfe1), region = 68 }
 0xfdc   : > { %v2900_v63 = vadd.f32 %v2899_v39, %v2890_v44 }
 0xfde   : > { %v2903_v21 = vmul.f32 %v2902_v36, %v2900_v63 }
 0xfdf   : > { %vm2908_vm0 = vcmask 519168  }
 0xfe0   : > { %2909 = vst.msk [vmem:[%s3607_s20] sm:$0xf] %vm2908_vm0, %v2903_v21 }
 0xfe1 PF: > { %p3217_p11 = scmp.eq.s32.totalorder %s3451_s27, 0 }
 0xfe3   : > { %2913 = sbr.rel (%p3217_p11) target bundleno = 4076 (0xfec), region = 72 }
 0xfe8   : > { %v2914_v10 = vld [vmem:[%s3607_s20] sm:$0xf]  ;;  %vm2916_vm7 = vcmask 519168  }
 0xfe9   : > { %v2915_v58 = vadd.f32 %v2914_v10, %v2903_v21 }
 0xfeb   : > { %2917 = vst.msk [vmem:[%s3607_s20] sm:$0xf] %vm2916_vm7, %v2915_v58 }
 0xfec PF: > { %s20_s9 = sadd.s32 1, %s3467_s9   ;;  %s5363_s27 = smov %s3459_s29 }
 0xfed   : > { %p17_p12 = scmp.ge.s32.totalorder %s20_s9, 6   ;;  %s5364_s28 = smov %s3463_s30 }
 0xfee   : > { %s5365_s29 = smov %s5368_s17  ;;  %s5366_s30 = smov %s5372_s19 }
 0xfef   :  { %19 = sbr.rel (!%p17_p12) target bundleno = 8 (0x8), region = 115 }
 0xff4   :  { %2937 = vsyncpa [#allocation3], 1 }
 0xff5   :  { %2939 = vsyncpa [#allocation3 + $0x1], 1 }
 0xff6   :  { %2940 = vsyncpa [#allocation5], 1 }

</bundles_post_ra>
